<compile_context>
chip_gen: v6e
topology: v6e:2x2x1
jax: 0.10.0
libtpu: 0.0.40
codegen_flags: <defaults>
</compile_context>

<pallas_src>
import functools

import numpy as np

import jax
import jax.numpy as jnp
from jax.experimental import pallas as pl
from jax.experimental.pallas import tpu as pltpu


def _round_up(x, m):
    return (x + m - 1) // m * m


def _vmem_cap():
    """Generation-aware scoped-VMEM cap (bytes), with ~20% headroom."""
    try:
        return int(pltpu.get_tpu_info().vmem_capacity_bytes * 0.8)
    except Exception:
        return 64 << 20


def _pick_time_chunk(S, Bp, Hp, *, max_tc=16, gx_budget_bytes=8 << 20):
    """Time-chunk size: as large as the gates_x VMEM budget allows, preferring an
    exact divisor of S (avoids the masked tail) when one is reasonably close."""
    tc = max(1, min(S, max_tc))
    while tc > 1 and tc * Bp * 4 * Hp * 4 > gx_budget_bytes:
        tc -= 1
    for t in range(tc, 0, -1):
        if S % t == 0 and 2 * t >= tc:
            return t
    return tc


def _sigmoid(x):
    # sigmoid(x) == 0.5 * tanh(0.5 * x) + 0.5 : single EUP op instead of exp+recip.
    return 0.5 * jnp.tanh(0.5 * x) + 0.5


def _lstm_chunk_kernel(x_ref, wih_ref, whh_ref, b_ref, h0_ref, c0_ref,
                       y_ref, cN_ref, gx_scr, h_scr, c_scr,
                       *, seq_len, mask_tail):
    """One grid step = one time chunk of Tc timesteps.

    x_ref   : (Tc*B, Ip)   bf16  current chunk of inputs (time-major rows)
    wih_ref : (Ip, 4*Hp)   bf16  W_ih^T, gate-blocked, resident
    whh_ref : (Hp, 4*Hp)   bf16  W_hh^T, gate-blocked, resident
    b_ref   : (1, 4*Hp)    f32   b_ih + b_hh
    h0/c0   : (B, Hp)      f32   initial state
    y_ref   : (Tc*B, Hp)   f32   output chunk
    cN_ref  : (B, Hp)      f32   final cell state (written at last grid step)
    gx_scr  : (Tc*B, 4*Hp) f32   hoisted input projection for the chunk
    h_scr/c_scr : (B, Hp)  f32   recurrent carry across grid steps
    """
    B, Hp = h_scr.shape
    Tc = gx_scr.shape[0] // B
    tci = pl.program_id(0)

    @pl.when(tci == 0)
    def _():
        h_scr[...] = h0_ref[...].astype(jnp.float32)
        c_scr[...] = c0_ref[...].astype(jnp.float32)

    # Hoisted input projection for the whole chunk (bias folded in once):
    #   gates_x = x_chunk @ W_ih^T + (b_ih + b_hh)      -> (Tc*B, 4*Hp)
    gx_scr[...] = (
        jnp.dot(x_ref[...], wih_ref[...], preferred_element_type=jnp.float32)
        + b_ref[...])

    # Hoist W_hh^T out of the unrolled timestep loop: it stays in vregs across
    # the Tc steps instead of being re-loaded from VMEM every step.
    whh = whh_ref[...]

    h = h_scr[...]
    c = c_scr[...]

    def step(t, hc):
        h, c = hc
        off = pl.multiple_of(t * B, 16)           # sublane-aligned row offset
        # Only the recurrent matmul sits on the sequential critical path.
        gates = gx_scr[pl.ds(off, B), :] + jnp.dot(
            h.astype(jnp.bfloat16), whh, preferred_element_type=jnp.float32)
        # PyTorch LSTMCell gate order [i, f, g, o]; lane-dense slices (Hp%128==0).
        i_g = _sigmoid(gates[:, 0 * Hp:1 * Hp])
        f_g = _sigmoid(gates[:, 1 * Hp:2 * Hp])
        g_g = jnp.tanh(gates[:, 2 * Hp:3 * Hp])
        o_g = _sigmoid(gates[:, 3 * Hp:4 * Hp])
        c_new = f_g * c + i_g * g_g
        h_new = o_g * jnp.tanh(c_new)
        y_ref[pl.ds(off, B), :] = h_new.astype(y_ref.dtype)
        if mask_tail:
            # Only taken when S % Tc != 0: the padded tail steps of the last
            # chunk must not advance the h/c carry (keeps c_N correct).
            valid = (tci * Tc + t) < seq_len
            h_new = jnp.where(valid, h_new, h)
            c_new = jnp.where(valid, c_new, c)
        return h_new, c_new

    h, c = jax.lax.fori_loop(0, Tc, step, (h, c), unroll=True)

    h_scr[...] = h
    c_scr[...] = c

    @pl.when(tci == pl.num_programs(0) - 1)
    def _():
        cN_ref[...] = c.astype(cN_ref.dtype)


def _lstm_sequence(x, w_ih_t, w_hh_t, bias, h0, c0):
    """x: (S, Bp, Ip) time-major bf16 (Bp % 16 == 0, Ip % 128 == 0, Hp % 128 == 0).

    Returns (y: (S, Bp, Hp) f32, c_N: (Bp, Hp) f32)."""
    S, Bp, Ip = x.shape
    Hp = h0.shape[1]

    cap = _vmem_cap()
    max_tc = 32 if cap > (80 << 20) else 16       # bigger chunks on 128 MiB parts
    Tc = _pick_time_chunk(S, Bp, Hp, max_tc=max_tc)
    Sp = _round_up(S, Tc)
    mask_tail = Sp != S
    if mask_tail:
        x = jnp.pad(x, ((0, Sp - S), (0, 0), (0, 0)))
    n_chunks = Sp // Tc

    x2d = x.reshape(Sp * Bp, Ip)

    # VMEM footprint estimate (double-buffered blocks + resident weights +
    # scratch) with a 2x / 8 MiB margin, capped by the per-generation budget.
    est = (2 * Tc * Bp * Ip * 2                  # x chunk bf16 (double-buffered)
           + 2 * Tc * Bp * Hp * 4                # y chunk f32
           + 2 * (Ip * 4 * Hp + Hp * 4 * Hp) * 2   # bf16 weights (double-buffered)
           + 2 * 4 * Hp * 4                      # bias
           + 2 * 2 * Bp * Hp * 4                 # h0, c0
           + 2 * Bp * Hp * 4                     # cN output
           + Tc * Bp * 4 * Hp * 4                # gates_x scratch
           + 2 * Bp * Hp * 4)                    # h/c carry scratch
    vmem_limit = int(max(16 << 20, min(2 * est + (8 << 20), cap)))

    grid_spec = pltpu.PrefetchScalarGridSpec(
        num_scalar_prefetch=0,
        grid=(n_chunks,),
        in_specs=[
            pl.BlockSpec((Tc * Bp, Ip), lambda i: (i, 0)),    # x chunk
            pl.BlockSpec((Ip, 4 * Hp), lambda i: (0, 0)),     # W_ih^T (resident)
            pl.BlockSpec((Hp, 4 * Hp), lambda i: (0, 0)),     # W_hh^T (resident)
            pl.BlockSpec((1, 4 * Hp), lambda i: (0, 0)),      # b_ih + b_hh
            pl.BlockSpec((Bp, Hp), lambda i: (0, 0)),         # h0
            pl.BlockSpec((Bp, Hp), lambda i: (0, 0)),         # c0
        ],
        out_specs=[
            pl.BlockSpec((Tc * Bp, Hp), lambda i: (i, 0)),    # y chunk
            pl.BlockSpec((Bp, Hp), lambda i: (0, 0)),         # final c
        ],
        scratch_shapes=[
            pltpu.VMEM((Tc * Bp, 4 * Hp), jnp.float32),       # gates_x chunk
            pltpu.VMEM((Bp, Hp), jnp.float32),                # h carry
            pltpu.VMEM((Bp, Hp), jnp.float32),                # c carry
        ],
    )

    kernel = functools.partial(_lstm_chunk_kernel, seq_len=S, mask_tail=mask_tail)

    y2d, cN = pl.pallas_call(
        kernel,
        out_shape=(
            jax.ShapeDtypeStruct((Sp * Bp, Hp), jnp.float32),
            jax.ShapeDtypeStruct((Bp, Hp), jnp.float32),
        ),
        grid_spec=grid_spec,
        compiler_params=pltpu.CompilerParams(
            dimension_semantics=("arbitrary",),   # time axis is a sequential carry
            vmem_limit_bytes=vmem_limit),
    )(x2d, w_ih_t, w_hh_t, bias, h0, c0)

    return y2d.reshape(Sp, Bp, Hp)[:S], cN


class BaseRNNPallas:
    """Mirror of BaseRNN(cell=nn.LSTMCell(input_size, hidden_size), ...)."""

    def __init__(self, input_size, hidden_size, *, batch_first=False,
                 return_sequences=True, return_state=False, reverse=False, key=None):
        self.input_size = input_size
        self.hidden_size = hidden_size
        self.batch_first = batch_first
        self.return_sequences = return_sequences
        self.return_state = return_state
        self.reverse = reverse

        # Deterministic parameter init, same shapes/distribution as nn.LSTMCell:
        # weight_ih (4H, I), weight_hh (4H, H), bias_ih (4H,), bias_hh (4H,),
        # sampled U(-1/sqrt(H), 1/sqrt(H)).
        if key is None:
            key = jax.random.PRNGKey(0)
        k1, k2, k3, k4 = jax.random.split(key, 4)
        bound = 1.0 / np.sqrt(hidden_size)
        H, I = hidden_size, input_size
        w_ih = jax.random.uniform(k1, (4 * H, I), jnp.float32, -bound, bound)
        w_hh = jax.random.uniform(k2, (4 * H, H), jnp.float32, -bound, bound)
        b_ih = jax.random.uniform(k3, (4 * H,), jnp.float32, -bound, bound)
        b_hh = jax.random.uniform(k4, (4 * H,), jnp.float32, -bound, bound)
        self.w_ih, self.w_hh, self.b_ih, self.b_hh = w_ih, w_hh, b_ih, b_hh

        # Pad hidden to a multiple of 128 (lane-dense gate slices / y stores) and
        # the input dim to a multiple of 128 (unmasked x loads, full-K MXU tile).
        # Zero padding keeps padded hidden lanes exactly zero through the
        # recurrence (i=f=o=0.5, g=0 => c=h=0 on padded lanes).
        Hp = _round_up(H, 128)
        Ip = _round_up(I, 128)
        self.hidden_pad = Hp
        self.input_pad = Ip

        def pad_gates(w, in_dim, pad_in_to):
            w4 = w.reshape(4, H, in_dim)
            w4 = jnp.pad(w4, ((0, 0), (0, Hp - H), (0, pad_in_to - in_dim)))
            return w4.reshape(4 * Hp, pad_in_to)

        w_ih_p = pad_gates(w_ih, I, Ip)          # (4Hp, Ip)
        w_hh_p = pad_gates(w_hh, H, Hp)          # (4Hp, Hp)
        b_p = jnp.pad((b_ih + b_hh).reshape(4, H),
                      ((0, 0), (0, Hp - H))).reshape(1, 4 * Hp)

        self.w_ih_t = jnp.asarray(w_ih_p.T, jnp.bfloat16)    # (Ip, 4Hp)
        self.w_hh_t = jnp.asarray(w_hh_p.T, jnp.bfloat16)    # (Hp, 4Hp)
        self.bias = jnp.asarray(b_p, jnp.float32)            # (1, 4Hp)

    def __call__(self, inputs, hidden=None):
        x = inputs
        if self.batch_first:                        # (B, S, I) -> (S, B, I)
            x = jnp.transpose(x, (1, 0, 2))
        if self.reverse:
            # BaseRNN flips the inputs only; outputs stay in processed order.
            x = jnp.flip(x, axis=0)
        S, B, I = x.shape
        H, Hp, Ip = self.hidden_size, self.hidden_pad, self.input_pad

        if hidden is None:
            h0 = jnp.zeros((B, H), jnp.float32)
            c0 = jnp.zeros((B, H), jnp.float32)
        else:
            h0, c0 = hidden[0], hidden[1]

        # Pad batch to a sublane-tile multiple of 16 (bf16 x blocks), input to Ip
        # and hidden to Hp; padded rows/lanes never influence the real ones and
        # are sliced away below.  x is cast to bf16 here (halves its HBM DMA).
        Bp = _round_up(B, 16)
        xp = jnp.pad(x.astype(jnp.bfloat16),
                     ((0, 0), (0, Bp - B), (0, Ip - I)))
        h0p = jnp.pad(h0.astype(jnp.float32), ((0, Bp - B), (0, Hp - H)))
        c0p = jnp.pad(c0.astype(jnp.float32), ((0, Bp - B), (0, Hp - H)))

        y_p, cN_p = _lstm_sequence(xp, self.w_ih_t, self.w_hh_t, self.bias,
                                   h0p, c0p)
        y = y_p[:, :B, :H].astype(inputs.dtype)      # (S, B, H)
        hN = y[-1]                                   # final hidden == last output
        cN = cN_p[:B, :H].astype(inputs.dtype)

        if self.return_sequences:
            out = jnp.transpose(y, (1, 0, 2)) if self.batch_first else y
        else:
            out = y[-1]
            if self.batch_first:
                out = out[:, None, :]

        if not self.return_state:
            return out
        if not self.return_sequences:
            return out, (hN, cN)
        # return_sequences and return_state: BaseRNN returns (sequence, hx)
        return out, hN


def _lstm_reference(x, w_ih, w_hh, b_ih, b_hh, h0, c0):
    """Pure-JAX f32 reference of the same time-major LSTM for a correctness check."""
    def step(carry, x_t):
        h, c = carry
        gates = x_t @ w_ih.T + b_ih + h @ w_hh.T + b_hh
        Hh = h.shape[1]
        i = jax.nn.sigmoid(gates[:, 0 * Hh:1 * Hh])
        f = jax.nn.sigmoid(gates[:, 1 * Hh:2 * Hh])
        g = jnp.tanh(gates[:, 2 * Hh:3 * Hh])
        o = jax.nn.sigmoid(gates[:, 3 * Hh:4 * Hh])
        c = f * c + i * g
        h = o * jnp.tanh(c)
        return (h, c), h
    (_, _), ys = jax.lax.scan(step, (h0, c0), x)
    return ys


if __name__ == "__main__":
    # --- config 1: S divides the time chunk exactly ---------------------------
    SEQ, BATCH, INPUT, HIDDEN = 16, 8, 16, 32

    rnn = BaseRNNPallas(INPUT, HIDDEN,
                        batch_first=False, return_sequences=True,
                        return_state=False, reverse=False,
                        key=jax.random.PRNGKey(42))

    x = jax.random.normal(jax.random.PRNGKey(0), (SEQ, BATCH, INPUT), jnp.float32)
    out = jax.block_until_ready(rnn(x))            # (SEQ, BATCH, HIDDEN)

    h0 = jnp.zeros((BATCH, HIDDEN), jnp.float32)
    c0 = jnp.zeros((BATCH, HIDDEN), jnp.float32)
    ref = _lstm_reference(x, rnn.w_ih, rnn.w_hh, rnn.b_ih, rnn.b_hh, h0, c0)
    np.testing.assert_allclose(np.asarray(out), np.asarray(ref),
                               rtol=2e-2, atol=2e-2)

    # --- config 2: awkward S (masked tail chunk) + non-aligned batch ----------
    SEQ2, BATCH2 = 17, 3
    rnn2 = BaseRNNPallas(INPUT, HIDDEN, key=jax.random.PRNGKey(7))
    x2 = jax.random.normal(jax.random.PRNGKey(1), (SEQ2, BATCH2, INPUT), jnp.float32)
    out2 = jax.block_until_ready(rnn2(x2))

    h02 = jnp.zeros((BATCH2, HIDDEN), jnp.float32)
    c02 = jnp.zeros((BATCH2, HIDDEN), jnp.float32)
    ref2 = _lstm_reference(x2, rnn2.w_ih, rnn2.w_hh, rnn2.b_ih, rnn2.b_hh, h02, c02)
    np.testing.assert_allclose(np.asarray(out2), np.asarray(ref2),
                               rtol=2e-2, atol=2e-2)

    print("KERNEL_OK")
</pallas_src>

<mosaic_0001>
module attributes {stable_mosaic.version = 11 : i64} {
  func.func @_lstm_chunk_kernel(%arg0: i32, %arg1: memref<256x128xbf16, #tpu.memory_space<vmem>>, %arg2: memref<128x512xbf16, #tpu.memory_space<vmem>>, %arg3: memref<128x512xbf16, #tpu.memory_space<vmem>>, %arg4: memref<1x512xf32, #tpu.memory_space<vmem>>, %arg5: memref<16x128xf32, #tpu.memory_space<vmem>>, %arg6: memref<16x128xf32, #tpu.memory_space<vmem>>, %arg7: memref<256x128xf32, #tpu.memory_space<vmem>>, %arg8: memref<16x128xf32, #tpu.memory_space<vmem>>, %arg9: memref<256x512xf32, #tpu.memory_space<vmem>>, %arg10: memref<16x128xf32, #tpu.memory_space<vmem>>, %arg11: memref<16x128xf32, #tpu.memory_space<vmem>>) attributes {dimension_semantics = [#tpu.dimension_semantics<arbitrary>], iteration_bounds = array<i64: 1>, scalar_prefetch = 0 : i64, scratch_operands = 3 : i64, tpu.core_type = #tpu.core_type<tc>, window_params = [{transform_indices = @transform_0, window_bounds = array<i64: 256, 128>}, {pipeline_mode = #tpu.pipeline_mode<synchronous>, transform_indices = @transform_1, window_bounds = array<i64: 128, 512>}, {pipeline_mode = #tpu.pipeline_mode<synchronous>, transform_indices = @transform_2, window_bounds = array<i64: 128, 512>}, {pipeline_mode = #tpu.pipeline_mode<synchronous>, transform_indices = @transform_3, window_bounds = array<i64: 1, 512>}, {pipeline_mode = #tpu.pipeline_mode<synchronous>, transform_indices = @transform_4, window_bounds = array<i64: 16, 128>}, {pipeline_mode = #tpu.pipeline_mode<synchronous>, transform_indices = @transform_5, window_bounds = array<i64: 16, 128>}, {transform_indices = @transform_6, window_bounds = array<i64: 256, 128>}, {pipeline_mode = #tpu.pipeline_mode<synchronous>, transform_indices = @transform_7, window_bounds = array<i64: 16, 128>}]} {
    %c0_i32 = arith.constant 0 : i32
    %0 = arith.cmpi eq, %arg0, %c0_i32 : i32
    %1 = arith.extui %0 : i1 to i32
    %c0_i32_0 = arith.constant 0 : i32
    %2 = arith.cmpi ne, %1, %c0_i32_0 : i32
    scf.if %2 {
      %c0_229 = arith.constant 0 : index
      %c0_230 = arith.constant 0 : index
      %658 = vector.load %arg5[%c0_229, %c0_230] : memref<16x128xf32, #tpu.memory_space<vmem>>, vector<16x128xf32>
      %c0_231 = arith.constant 0 : index
      %c0_232 = arith.constant 0 : index
      %659 = vector.load %arg10[%c0_231, %c0_232] : memref<16x128xf32, #tpu.memory_space<vmem>>, vector<16x128xf32>
      tpu.vector_store %arg10[%c0_231, %c0_232], %658 {strides = array<i32>} : memref<16x128xf32, #tpu.memory_space<vmem>>, vector<16x128xf32>,
      %c0_233 = arith.constant 0 : index
      %c0_234 = arith.constant 0 : index
      %660 = vector.load %arg6[%c0_233, %c0_234] : memref<16x128xf32, #tpu.memory_space<vmem>>, vector<16x128xf32>
      %c0_235 = arith.constant 0 : index
      %c0_236 = arith.constant 0 : index
      %661 = vector.load %arg11[%c0_235, %c0_236] : memref<16x128xf32, #tpu.memory_space<vmem>>, vector<16x128xf32>
      tpu.vector_store %arg11[%c0_235, %c0_236], %660 {strides = array<i32>} : memref<16x128xf32, #tpu.memory_space<vmem>>, vector<16x128xf32>,
    } else {
    }
    %c0 = arith.constant 0 : index
    %c0_1 = arith.constant 0 : index
    %3 = vector.load %arg1[%c0, %c0_1] : memref<256x128xbf16, #tpu.memory_space<vmem>>, vector<256x128xbf16>
    %c0_2 = arith.constant 0 : index
    %c0_3 = arith.constant 0 : index
    %4 = vector.load %arg2[%c0_2, %c0_3] : memref<128x512xbf16, #tpu.memory_space<vmem>>, vector<128x512xbf16>
    %cst = arith.constant dense<0.000000e+00> : vector<256x512xf32>
    %5 = tpu.matmul %3, %4, %cst {dimension_numbers = #tpu.dot_dimension_numbers<[1], [0], [0], [1], [0, 0, 1, 1], [], []>} : vector<256x128xbf16>, vector<128x512xbf16>, vector<256x512xf32> -> vector<256x512xf32>
    %c0_4 = arith.constant 0 : index
    %c0_5 = arith.constant 0 : index
    %6 = vector.load %arg4[%c0_4, %c0_5] : memref<1x512xf32, #tpu.memory_space<vmem>>, vector<1x512xf32>
    %7 = vector.broadcast %6 : vector<1x512xf32> to vector<256x512xf32>
    %8 = arith.addf %5, %7 : vector<256x512xf32>
    %c0_6 = arith.constant 0 : index
    %c0_7 = arith.constant 0 : index
    %9 = vector.load %arg9[%c0_6, %c0_7] : memref<256x512xf32, #tpu.memory_space<vmem>>, vector<256x512xf32>
    tpu.vector_store %arg9[%c0_6, %c0_7], %8 {strides = array<i32>} : memref<256x512xf32, #tpu.memory_space<vmem>>, vector<256x512xf32>,
    %c0_8 = arith.constant 0 : index
    %c0_9 = arith.constant 0 : index
    %10 = vector.load %arg3[%c0_8, %c0_9] : memref<128x512xbf16, #tpu.memory_space<vmem>>, vector<128x512xbf16>
    %c0_10 = arith.constant 0 : index
    %c0_11 = arith.constant 0 : index
    %11 = vector.load %arg10[%c0_10, %c0_11] : memref<16x128xf32, #tpu.memory_space<vmem>>, vector<16x128xf32>
    %c0_12 = arith.constant 0 : index
    %c0_13 = arith.constant 0 : index
    %12 = vector.load %arg11[%c0_12, %c0_13] : memref<16x128xf32, #tpu.memory_space<vmem>>, vector<16x128xf32>
    %c0_i32_14 = arith.constant 0 : i32
    %c16_i32 = arith.constant 16 : i32
    %13 = arith.muli %c0_i32_14, %c16_i32 : i32
    %14 = tpu.assume_multiple %13, 16 : i32
    %15 = arith.index_cast %14 : i32 to index
    %c0_15 = arith.constant 0 : index
    %16 = vector.load %arg9[%15, %c0_15] : memref<256x512xf32, #tpu.memory_space<vmem>>, vector<16x512xf32>
    %17 = arith.truncf %11 : vector<16x128xf32> to vector<16x128xbf16>
    %cst_16 = arith.constant dense<0.000000e+00> : vector<16x512xf32>
    %18 = tpu.matmul %17, %10, %cst_16 {dimension_numbers = #tpu.dot_dimension_numbers<[1], [0], [0], [1], [0, 0, 1, 1], [], []>} : vector<16x128xbf16>, vector<128x512xbf16>, vector<16x512xf32> -> vector<16x512xf32>
    %19 = arith.addf %16, %18 : vector<16x512xf32>
    %20 = vector.extract_strided_slice %19 {offsets = [0, 0], sizes = [16, 128], strides = [1, 1]} : vector<16x512xf32> to vector<16x128xf32>
    %cst_17 = arith.constant 5.000000e-01 : f32
    %21 = vector.broadcast %cst_17 : f32 to vector<16x128xf32>
    %22 = arith.mulf %21, %20 : vector<16x128xf32>
    %23 = math.tanh %22 : vector<16x128xf32>
    %cst_18 = arith.constant 5.000000e-01 : f32
    %24 = vector.broadcast %cst_18 : f32 to vector<16x128xf32>
    %25 = arith.mulf %24, %23 : vector<16x128xf32>
    %cst_19 = arith.constant 5.000000e-01 : f32
    %26 = vector.broadcast %cst_19 : f32 to vector<16x128xf32>
    %27 = arith.addf %25, %26 : vector<16x128xf32>
    %28 = vector.extract_strided_slice %19 {offsets = [0, 128], sizes = [16, 128], strides = [1, 1]} : vector<16x512xf32> to vector<16x128xf32>
    %cst_20 = arith.constant 5.000000e-01 : f32
    %29 = vector.broadcast %cst_20 : f32 to vector<16x128xf32>
    %30 = arith.mulf %29, %28 : vector<16x128xf32>
    %31 = math.tanh %30 : vector<16x128xf32>
    %cst_21 = arith.constant 5.000000e-01 : f32
    %32 = vector.broadcast %cst_21 : f32 to vector<16x128xf32>
    %33 = arith.mulf %32, %31 : vector<16x128xf32>
    %cst_22 = arith.constant 5.000000e-01 : f32
    %34 = vector.broadcast %cst_22 : f32 to vector<16x128xf32>
    %35 = arith.addf %33, %34 : vector<16x128xf32>
    %36 = vector.extract_strided_slice %19 {offsets = [0, 256], sizes = [16, 128], strides = [1, 1]} : vector<16x512xf32> to vector<16x128xf32>
    %37 = math.tanh %36 : vector<16x128xf32>
    %38 = vector.extract_strided_slice %19 {offsets = [0, 384], sizes = [16, 128], strides = [1, 1]} : vector<16x512xf32> to vector<16x128xf32>
    %cst_23 = arith.constant 5.000000e-01 : f32
    %39 = vector.broadcast %cst_23 : f32 to vector<16x128xf32>
    %40 = arith.mulf %39, %38 : vector<16x128xf32>
    %41 = math.tanh %40 : vector<16x128xf32>
    %cst_24 = arith.constant 5.000000e-01 : f32
    %42 = vector.broadcast %cst_24 : f32 to vector<16x128xf32>
    %43 = arith.mulf %42, %41 : vector<16x128xf32>
    %cst_25 = arith.constant 5.000000e-01 : f32
    %44 = vector.broadcast %cst_25 : f32 to vector<16x128xf32>
    %45 = arith.addf %43, %44 : vector<16x128xf32>
    %46 = arith.mulf %35, %12 : vector<16x128xf32>
    %47 = arith.mulf %27, %37 : vector<16x128xf32>
    %48 = arith.addf %46, %47 : vector<16x128xf32>
    %49 = math.tanh %48 : vector<16x128xf32>
    %50 = arith.mulf %45, %49 : vector<16x128xf32>
    %51 = arith.index_cast %14 : i32 to index
    %c0_26 = arith.constant 0 : index
    %52 = vector.load %arg7[%51, %c0_26] : memref<256x128xf32, #tpu.memory_space<vmem>>, vector<16x128xf32>
    tpu.vector_store %arg7[%51, %c0_26], %50 {strides = array<i32>} : memref<256x128xf32, #tpu.memory_space<vmem>>, vector<16x128xf32>,
    %c1_i32 = arith.constant 1 : i32
    %c16_i32_27 = arith.constant 16 : i32
    %53 = arith.muli %c1_i32, %c16_i32_27 : i32
    %54 = tpu.assume_multiple %53, 16 : i32
    %55 = arith.index_cast %54 : i32 to index
    %c0_28 = arith.constant 0 : index
    %56 = vector.load %arg9[%55, %c0_28] : memref<256x512xf32, #tpu.memory_space<vmem>>, vector<16x512xf32>
    %57 = arith.truncf %50 : vector<16x128xf32> to vector<16x128xbf16>
    %cst_29 = arith.constant dense<0.000000e+00> : vector<16x512xf32>
    %58 = tpu.matmul %57, %10, %cst_29 {dimension_numbers = #tpu.dot_dimension_numbers<[1], [0], [0], [1], [0, 0, 1, 1], [], []>} : vector<16x128xbf16>, vector<128x512xbf16>, vector<16x512xf32> -> vector<16x512xf32>
    %59 = arith.addf %56, %58 : vector<16x512xf32>
    %60 = vector.extract_strided_slice %59 {offsets = [0, 0], sizes = [16, 128], strides = [1, 1]} : vector<16x512xf32> to vector<16x128xf32>
    %cst_30 = arith.constant 5.000000e-01 : f32
    %61 = vector.broadcast %cst_30 : f32 to vector<16x128xf32>
    %62 = arith.mulf %61, %60 : vector<16x128xf32>
    %63 = math.tanh %62 : vector<16x128xf32>
    %cst_31 = arith.constant 5.000000e-01 : f32
    %64 = vector.broadcast %cst_31 : f32 to vector<16x128xf32>
    %65 = arith.mulf %64, %63 : vector<16x128xf32>
    %cst_32 = arith.constant 5.000000e-01 : f32
    %66 = vector.broadcast %cst_32 : f32 to vector<16x128xf32>
    %67 = arith.addf %65, %66 : vector<16x128xf32>
    %68 = vector.extract_strided_slice %59 {offsets = [0, 128], sizes = [16, 128], strides = [1, 1]} : vector<16x512xf32> to vector<16x128xf32>
    %cst_33 = arith.constant 5.000000e-01 : f32
    %69 = vector.broadcast %cst_33 : f32 to vector<16x128xf32>
    %70 = arith.mulf %69, %68 : vector<16x128xf32>
    %71 = math.tanh %70 : vector<16x128xf32>
    %cst_34 = arith.constant 5.000000e-01 : f32
    %72 = vector.broadcast %cst_34 : f32 to vector<16x128xf32>
    %73 = arith.mulf %72, %71 : vector<16x128xf32>
    %cst_35 = arith.constant 5.000000e-01 : f32
    %74 = vector.broadcast %cst_35 : f32 to vector<16x128xf32>
    %75 = arith.addf %73, %74 : vector<16x128xf32>
    %76 = vector.extract_strided_slice %59 {offsets = [0, 256], sizes = [16, 128], strides = [1, 1]} : vector<16x512xf32> to vector<16x128xf32>
    %77 = math.tanh %76 : vector<16x128xf32>
    %78 = vector.extract_strided_slice %59 {offsets = [0, 384], sizes = [16, 128], strides = [1, 1]} : vector<16x512xf32> to vector<16x128xf32>
    %cst_36 = arith.constant 5.000000e-01 : f32
    %79 = vector.broadcast %cst_36 : f32 to vector<16x128xf32>
    %80 = arith.mulf %79, %78 : vector<16x128xf32>
    %81 = math.tanh %80 : vector<16x128xf32>
    %cst_37 = arith.constant 5.000000e-01 : f32
    %82 = vector.broadcast %cst_37 : f32 to vector<16x128xf32>
    %83 = arith.mulf %82, %81 : vector<16x128xf32>
    %cst_38 = arith.constant 5.000000e-01 : f32
    %84 = vector.broadcast %cst_38 : f32 to vector<16x128xf32>
    %85 = arith.addf %83, %84 : vector<16x128xf32>
    %86 = arith.mulf %75, %48 : vector<16x128xf32>
    %87 = arith.mulf %67, %77 : vector<16x128xf32>
    %88 = arith.addf %86, %87 : vector<16x128xf32>
    %89 = math.tanh %88 : vector<16x128xf32>
    %90 = arith.mulf %85, %89 : vector<16x128xf32>
    %91 = arith.index_cast %54 : i32 to index
    %c0_39 = arith.constant 0 : index
    %92 = vector.load %arg7[%91, %c0_39] : memref<256x128xf32, #tpu.memory_space<vmem>>, vector<16x128xf32>
    tpu.vector_store %arg7[%91, %c0_39], %90 {strides = array<i32>} : memref<256x128xf32, #tpu.memory_space<vmem>>, vector<16x128xf32>,
    %c2_i32 = arith.constant 2 : i32
    %c16_i32_40 = arith.constant 16 : i32
    %93 = arith.muli %c2_i32, %c16_i32_40 : i32
    %94 = tpu.assume_multiple %93, 16 : i32
    %95 = arith.index_cast %94 : i32 to index
    %c0_41 = arith.constant 0 : index
    %96 = vector.load %arg9[%95, %c0_41] : memref<256x512xf32, #tpu.memory_space<vmem>>, vector<16x512xf32>
    %97 = arith.truncf %90 : vector<16x128xf32> to vector<16x128xbf16>
    %cst_42 = arith.constant dense<0.000000e+00> : vector<16x512xf32>
    %98 = tpu.matmul %97, %10, %cst_42 {dimension_numbers = #tpu.dot_dimension_numbers<[1], [0], [0], [1], [0, 0, 1, 1], [], []>} : vector<16x128xbf16>, vector<128x512xbf16>, vector<16x512xf32> -> vector<16x512xf32>
    %99 = arith.addf %96, %98 : vector<16x512xf32>
    %100 = vector.extract_strided_slice %99 {offsets = [0, 0], sizes = [16, 128], strides = [1, 1]} : vector<16x512xf32> to vector<16x128xf32>
    %cst_43 = arith.constant 5.000000e-01 : f32
    %101 = vector.broadcast %cst_43 : f32 to vector<16x128xf32>
    %102 = arith.mulf %101, %100 : vector<16x128xf32>
    %103 = math.tanh %102 : vector<16x128xf32>
    %cst_44 = arith.constant 5.000000e-01 : f32
    %104 = vector.broadcast %cst_44 : f32 to vector<16x128xf32>
    %105 = arith.mulf %104, %103 : vector<16x128xf32>
    %cst_45 = arith.constant 5.000000e-01 : f32
    %106 = vector.broadcast %cst_45 : f32 to vector<16x128xf32>
    %107 = arith.addf %105, %106 : vector<16x128xf32>
    %108 = vector.extract_strided_slice %99 {offsets = [0, 128], sizes = [16, 128], strides = [1, 1]} : vector<16x512xf32> to vector<16x128xf32>
    %cst_46 = arith.constant 5.000000e-01 : f32
    %109 = vector.broadcast %cst_46 : f32 to vector<16x128xf32>
    %110 = arith.mulf %109, %108 : vector<16x128xf32>
    %111 = math.tanh %110 : vector<16x128xf32>
    %cst_47 = arith.constant 5.000000e-01 : f32
    %112 = vector.broadcast %cst_47 : f32 to vector<16x128xf32>
    %113 = arith.mulf %112, %111 : vector<16x128xf32>
    %cst_48 = arith.constant 5.000000e-01 : f32
    %114 = vector.broadcast %cst_48 : f32 to vector<16x128xf32>
    %115 = arith.addf %113, %114 : vector<16x128xf32>
    %116 = vector.extract_strided_slice %99 {offsets = [0, 256], sizes = [16, 128], strides = [1, 1]} : vector<16x512xf32> to vector<16x128xf32>
    %117 = math.tanh %116 : vector<16x128xf32>
    %118 = vector.extract_strided_slice %99 {offsets = [0, 384], sizes = [16, 128], strides = [1, 1]} : vector<16x512xf32> to vector<16x128xf32>
    %cst_49 = arith.constant 5.000000e-01 : f32
    %119 = vector.broadcast %cst_49 : f32 to vector<16x128xf32>
    %120 = arith.mulf %119, %118 : vector<16x128xf32>
    %121 = math.tanh %120 : vector<16x128xf32>
    %cst_50 = arith.constant 5.000000e-01 : f32
    %122 = vector.broadcast %cst_50 : f32 to vector<16x128xf32>
    %123 = arith.mulf %122, %121 : vector<16x128xf32>
    %cst_51 = arith.constant 5.000000e-01 : f32
    %124 = vector.broadcast %cst_51 : f32 to vector<16x128xf32>
    %125 = arith.addf %123, %124 : vector<16x128xf32>
    %126 = arith.mulf %115, %88 : vector<16x128xf32>
    %127 = arith.mulf %107, %117 : vector<16x128xf32>
    %128 = arith.addf %126, %127 : vector<16x128xf32>
    %129 = math.tanh %128 : vector<16x128xf32>
    %130 = arith.mulf %125, %129 : vector<16x128xf32>
    %131 = arith.index_cast %94 : i32 to index
    %c0_52 = arith.constant 0 : index
    %132 = vector.load %arg7[%131, %c0_52] : memref<256x128xf32, #tpu.memory_space<vmem>>, vector<16x128xf32>
    tpu.vector_store %arg7[%131, %c0_52], %130 {strides = array<i32>} : memref<256x128xf32, #tpu.memory_space<vmem>>, vector<16x128xf32>,
    %c3_i32 = arith.constant 3 : i32
    %c16_i32_53 = arith.constant 16 : i32
    %133 = arith.muli %c3_i32, %c16_i32_53 : i32
    %134 = tpu.assume_multiple %133, 16 : i32
    %135 = arith.index_cast %134 : i32 to index
    %c0_54 = arith.constant 0 : index
    %136 = vector.load %arg9[%135, %c0_54] : memref<256x512xf32, #tpu.memory_space<vmem>>, vector<16x512xf32>
    %137 = arith.truncf %130 : vector<16x128xf32> to vector<16x128xbf16>
    %cst_55 = arith.constant dense<0.000000e+00> : vector<16x512xf32>
    %138 = tpu.matmul %137, %10, %cst_55 {dimension_numbers = #tpu.dot_dimension_numbers<[1], [0], [0], [1], [0, 0, 1, 1], [], []>} : vector<16x128xbf16>, vector<128x512xbf16>, vector<16x512xf32> -> vector<16x512xf32>
    %139 = arith.addf %136, %138 : vector<16x512xf32>
    %140 = vector.extract_strided_slice %139 {offsets = [0, 0], sizes = [16, 128], strides = [1, 1]} : vector<16x512xf32> to vector<16x128xf32>
    %cst_56 = arith.constant 5.000000e-01 : f32
    %141 = vector.broadcast %cst_56 : f32 to vector<16x128xf32>
    %142 = arith.mulf %141, %140 : vector<16x128xf32>
    %143 = math.tanh %142 : vector<16x128xf32>
    %cst_57 = arith.constant 5.000000e-01 : f32
    %144 = vector.broadcast %cst_57 : f32 to vector<16x128xf32>
    %145 = arith.mulf %144, %143 : vector<16x128xf32>
    %cst_58 = arith.constant 5.000000e-01 : f32
    %146 = vector.broadcast %cst_58 : f32 to vector<16x128xf32>
    %147 = arith.addf %145, %146 : vector<16x128xf32>
    %148 = vector.extract_strided_slice %139 {offsets = [0, 128], sizes = [16, 128], strides = [1, 1]} : vector<16x512xf32> to vector<16x128xf32>
    %cst_59 = arith.constant 5.000000e-01 : f32
    %149 = vector.broadcast %cst_59 : f32 to vector<16x128xf32>
    %150 = arith.mulf %149, %148 : vector<16x128xf32>
    %151 = math.tanh %150 : vector<16x128xf32>
    %cst_60 = arith.constant 5.000000e-01 : f32
    %152 = vector.broadcast %cst_60 : f32 to vector<16x128xf32>
    %153 = arith.mulf %152, %151 : vector<16x128xf32>
    %cst_61 = arith.constant 5.000000e-01 : f32
    %154 = vector.broadcast %cst_61 : f32 to vector<16x128xf32>
    %155 = arith.addf %153, %154 : vector<16x128xf32>
    %156 = vector.extract_strided_slice %139 {offsets = [0, 256], sizes = [16, 128], strides = [1, 1]} : vector<16x512xf32> to vector<16x128xf32>
    %157 = math.tanh %156 : vector<16x128xf32>
    %158 = vector.extract_strided_slice %139 {offsets = [0, 384], sizes = [16, 128], strides = [1, 1]} : vector<16x512xf32> to vector<16x128xf32>
    %cst_62 = arith.constant 5.000000e-01 : f32
    %159 = vector.broadcast %cst_62 : f32 to vector<16x128xf32>
    %160 = arith.mulf %159, %158 : vector<16x128xf32>
    %161 = math.tanh %160 : vector<16x128xf32>
    %cst_63 = arith.constant 5.000000e-01 : f32
    %162 = vector.broadcast %cst_63 : f32 to vector<16x128xf32>
    %163 = arith.mulf %162, %161 : vector<16x128xf32>
    %cst_64 = arith.constant 5.000000e-01 : f32
    %164 = vector.broadcast %cst_64 : f32 to vector<16x128xf32>
    %165 = arith.addf %163, %164 : vector<16x128xf32>
    %166 = arith.mulf %155, %128 : vector<16x128xf32>
    %167 = arith.mulf %147, %157 : vector<16x128xf32>
    %168 = arith.addf %166, %167 : vector<16x128xf32>
    %169 = math.tanh %168 : vector<16x128xf32>
    %170 = arith.mulf %165, %169 : vector<16x128xf32>
    %171 = arith.index_cast %134 : i32 to index
    %c0_65 = arith.constant 0 : index
    %172 = vector.load %arg7[%171, %c0_65] : memref<256x128xf32, #tpu.memory_space<vmem>>, vector<16x128xf32>
    tpu.vector_store %arg7[%171, %c0_65], %170 {strides = array<i32>} : memref<256x128xf32, #tpu.memory_space<vmem>>, vector<16x128xf32>,
    %c4_i32 = arith.constant 4 : i32
    %c16_i32_66 = arith.constant 16 : i32
    %173 = arith.muli %c4_i32, %c16_i32_66 : i32
    %174 = tpu.assume_multiple %173, 16 : i32
    %175 = arith.index_cast %174 : i32 to index
    %c0_67 = arith.constant 0 : index
    %176 = vector.load %arg9[%175, %c0_67] : memref<256x512xf32, #tpu.memory_space<vmem>>, vector<16x512xf32>
    %177 = arith.truncf %170 : vector<16x128xf32> to vector<16x128xbf16>
    %cst_68 = arith.constant dense<0.000000e+00> : vector<16x512xf32>
    %178 = tpu.matmul %177, %10, %cst_68 {dimension_numbers = #tpu.dot_dimension_numbers<[1], [0], [0], [1], [0, 0, 1, 1], [], []>} : vector<16x128xbf16>, vector<128x512xbf16>, vector<16x512xf32> -> vector<16x512xf32>
    %179 = arith.addf %176, %178 : vector<16x512xf32>
    %180 = vector.extract_strided_slice %179 {offsets = [0, 0], sizes = [16, 128], strides = [1, 1]} : vector<16x512xf32> to vector<16x128xf32>
    %cst_69 = arith.constant 5.000000e-01 : f32
    %181 = vector.broadcast %cst_69 : f32 to vector<16x128xf32>
    %182 = arith.mulf %181, %180 : vector<16x128xf32>
    %183 = math.tanh %182 : vector<16x128xf32>
    %cst_70 = arith.constant 5.000000e-01 : f32
    %184 = vector.broadcast %cst_70 : f32 to vector<16x128xf32>
    %185 = arith.mulf %184, %183 : vector<16x128xf32>
    %cst_71 = arith.constant 5.000000e-01 : f32
    %186 = vector.broadcast %cst_71 : f32 to vector<16x128xf32>
    %187 = arith.addf %185, %186 : vector<16x128xf32>
    %188 = vector.extract_strided_slice %179 {offsets = [0, 128], sizes = [16, 128], strides = [1, 1]} : vector<16x512xf32> to vector<16x128xf32>
    %cst_72 = arith.constant 5.000000e-01 : f32
    %189 = vector.broadcast %cst_72 : f32 to vector<16x128xf32>
    %190 = arith.mulf %189, %188 : vector<16x128xf32>
    %191 = math.tanh %190 : vector<16x128xf32>
    %cst_73 = arith.constant 5.000000e-01 : f32
    %192 = vector.broadcast %cst_73 : f32 to vector<16x128xf32>
    %193 = arith.mulf %192, %191 : vector<16x128xf32>
    %cst_74 = arith.constant 5.000000e-01 : f32
    %194 = vector.broadcast %cst_74 : f32 to vector<16x128xf32>
    %195 = arith.addf %193, %194 : vector<16x128xf32>
    %196 = vector.extract_strided_slice %179 {offsets = [0, 256], sizes = [16, 128], strides = [1, 1]} : vector<16x512xf32> to vector<16x128xf32>
    %197 = math.tanh %196 : vector<16x128xf32>
    %198 = vector.extract_strided_slice %179 {offsets = [0, 384], sizes = [16, 128], strides = [1, 1]} : vector<16x512xf32> to vector<16x128xf32>
    %cst_75 = arith.constant 5.000000e-01 : f32
    %199 = vector.broadcast %cst_75 : f32 to vector<16x128xf32>
    %200 = arith.mulf %199, %198 : vector<16x128xf32>
    %201 = math.tanh %200 : vector<16x128xf32>
    %cst_76 = arith.constant 5.000000e-01 : f32
    %202 = vector.broadcast %cst_76 : f32 to vector<16x128xf32>
    %203 = arith.mulf %202, %201 : vector<16x128xf32>
    %cst_77 = arith.constant 5.000000e-01 : f32
    %204 = vector.broadcast %cst_77 : f32 to vector<16x128xf32>
    %205 = arith.addf %203, %204 : vector<16x128xf32>
    %206 = arith.mulf %195, %168 : vector<16x128xf32>
    %207 = arith.mulf %187, %197 : vector<16x128xf32>
    %208 = arith.addf %206, %207 : vector<16x128xf32>
    %209 = math.tanh %208 : vector<16x128xf32>
    %210 = arith.mulf %205, %209 : vector<16x128xf32>
    %211 = arith.index_cast %174 : i32 to index
    %c0_78 = arith.constant 0 : index
    %212 = vector.load %arg7[%211, %c0_78] : memref<256x128xf32, #tpu.memory_space<vmem>>, vector<16x128xf32>
    tpu.vector_store %arg7[%211, %c0_78], %210 {strides = array<i32>} : memref<256x128xf32, #tpu.memory_space<vmem>>, vector<16x128xf32>,
    %c5_i32 = arith.constant 5 : i32
    %c16_i32_79 = arith.constant 16 : i32
    %213 = arith.muli %c5_i32, %c16_i32_79 : i32
    %214 = tpu.assume_multiple %213, 16 : i32
    %215 = arith.index_cast %214 : i32 to index
    %c0_80 = arith.constant 0 : index
    %216 = vector.load %arg9[%215, %c0_80] : memref<256x512xf32, #tpu.memory_space<vmem>>, vector<16x512xf32>
    %217 = arith.truncf %210 : vector<16x128xf32> to vector<16x128xbf16>
    %cst_81 = arith.constant dense<0.000000e+00> : vector<16x512xf32>
    %218 = tpu.matmul %217, %10, %cst_81 {dimension_numbers = #tpu.dot_dimension_numbers<[1], [0], [0], [1], [0, 0, 1, 1], [], []>} : vector<16x128xbf16>, vector<128x512xbf16>, vector<16x512xf32> -> vector<16x512xf32>
    %219 = arith.addf %216, %218 : vector<16x512xf32>
    %220 = vector.extract_strided_slice %219 {offsets = [0, 0], sizes = [16, 128], strides = [1, 1]} : vector<16x512xf32> to vector<16x128xf32>
    %cst_82 = arith.constant 5.000000e-01 : f32
    %221 = vector.broadcast %cst_82 : f32 to vector<16x128xf32>
    %222 = arith.mulf %221, %220 : vector<16x128xf32>
    %223 = math.tanh %222 : vector<16x128xf32>
    %cst_83 = arith.constant 5.000000e-01 : f32
    %224 = vector.broadcast %cst_83 : f32 to vector<16x128xf32>
    %225 = arith.mulf %224, %223 : vector<16x128xf32>
    %cst_84 = arith.constant 5.000000e-01 : f32
    %226 = vector.broadcast %cst_84 : f32 to vector<16x128xf32>
    %227 = arith.addf %225, %226 : vector<16x128xf32>
    %228 = vector.extract_strided_slice %219 {offsets = [0, 128], sizes = [16, 128], strides = [1, 1]} : vector<16x512xf32> to vector<16x128xf32>
    %cst_85 = arith.constant 5.000000e-01 : f32
    %229 = vector.broadcast %cst_85 : f32 to vector<16x128xf32>
    %230 = arith.mulf %229, %228 : vector<16x128xf32>
    %231 = math.tanh %230 : vector<16x128xf32>
    %cst_86 = arith.constant 5.000000e-01 : f32
    %232 = vector.broadcast %cst_86 : f32 to vector<16x128xf32>
    %233 = arith.mulf %232, %231 : vector<16x128xf32>
    %cst_87 = arith.constant 5.000000e-01 : f32
    %234 = vector.broadcast %cst_87 : f32 to vector<16x128xf32>
    %235 = arith.addf %233, %234 : vector<16x128xf32>
    %236 = vector.extract_strided_slice %219 {offsets = [0, 256], sizes = [16, 128], strides = [1, 1]} : vector<16x512xf32> to vector<16x128xf32>
    %237 = math.tanh %236 : vector<16x128xf32>
    %238 = vector.extract_strided_slice %219 {offsets = [0, 384], sizes = [16, 128], strides = [1, 1]} : vector<16x512xf32> to vector<16x128xf32>
    %cst_88 = arith.constant 5.000000e-01 : f32
    %239 = vector.broadcast %cst_88 : f32 to vector<16x128xf32>
    %240 = arith.mulf %239, %238 : vector<16x128xf32>
    %241 = math.tanh %240 : vector<16x128xf32>
    %cst_89 = arith.constant 5.000000e-01 : f32
    %242 = vector.broadcast %cst_89 : f32 to vector<16x128xf32>
    %243 = arith.mulf %242, %241 : vector<16x128xf32>
    %cst_90 = arith.constant 5.000000e-01 : f32
    %244 = vector.broadcast %cst_90 : f32 to vector<16x128xf32>
    %245 = arith.addf %243, %244 : vector<16x128xf32>
    %246 = arith.mulf %235, %208 : vector<16x128xf32>
    %247 = arith.mulf %227, %237 : vector<16x128xf32>
    %248 = arith.addf %246, %247 : vector<16x128xf32>
    %249 = math.tanh %248 : vector<16x128xf32>
    %250 = arith.mulf %245, %249 : vector<16x128xf32>
    %251 = arith.index_cast %214 : i32 to index
    %c0_91 = arith.constant 0 : index
    %252 = vector.load %arg7[%251, %c0_91] : memref<256x128xf32, #tpu.memory_space<vmem>>, vector<16x128xf32>
    tpu.vector_store %arg7[%251, %c0_91], %250 {strides = array<i32>} : memref<256x128xf32, #tpu.memory_space<vmem>>, vector<16x128xf32>,
    %c6_i32 = arith.constant 6 : i32
    %c16_i32_92 = arith.constant 16 : i32
    %253 = arith.muli %c6_i32, %c16_i32_92 : i32
    %254 = tpu.assume_multiple %253, 16 : i32
    %255 = arith.index_cast %254 : i32 to index
    %c0_93 = arith.constant 0 : index
    %256 = vector.load %arg9[%255, %c0_93] : memref<256x512xf32, #tpu.memory_space<vmem>>, vector<16x512xf32>
    %257 = arith.truncf %250 : vector<16x128xf32> to vector<16x128xbf16>
    %cst_94 = arith.constant dense<0.000000e+00> : vector<16x512xf32>
    %258 = tpu.matmul %257, %10, %cst_94 {dimension_numbers = #tpu.dot_dimension_numbers<[1], [0], [0], [1], [0, 0, 1, 1], [], []>} : vector<16x128xbf16>, vector<128x512xbf16>, vector<16x512xf32> -> vector<16x512xf32>
    %259 = arith.addf %256, %258 : vector<16x512xf32>
    %260 = vector.extract_strided_slice %259 {offsets = [0, 0], sizes = [16, 128], strides = [1, 1]} : vector<16x512xf32> to vector<16x128xf32>
    %cst_95 = arith.constant 5.000000e-01 : f32
    %261 = vector.broadcast %cst_95 : f32 to vector<16x128xf32>
    %262 = arith.mulf %261, %260 : vector<16x128xf32>
    %263 = math.tanh %262 : vector<16x128xf32>
    %cst_96 = arith.constant 5.000000e-01 : f32
    %264 = vector.broadcast %cst_96 : f32 to vector<16x128xf32>
    %265 = arith.mulf %264, %263 : vector<16x128xf32>
    %cst_97 = arith.constant 5.000000e-01 : f32
    %266 = vector.broadcast %cst_97 : f32 to vector<16x128xf32>
    %267 = arith.addf %265, %266 : vector<16x128xf32>
    %268 = vector.extract_strided_slice %259 {offsets = [0, 128], sizes = [16, 128], strides = [1, 1]} : vector<16x512xf32> to vector<16x128xf32>
    %cst_98 = arith.constant 5.000000e-01 : f32
    %269 = vector.broadcast %cst_98 : f32 to vector<16x128xf32>
    %270 = arith.mulf %269, %268 : vector<16x128xf32>
    %271 = math.tanh %270 : vector<16x128xf32>
    %cst_99 = arith.constant 5.000000e-01 : f32
    %272 = vector.broadcast %cst_99 : f32 to vector<16x128xf32>
    %273 = arith.mulf %272, %271 : vector<16x128xf32>
    %cst_100 = arith.constant 5.000000e-01 : f32
    %274 = vector.broadcast %cst_100 : f32 to vector<16x128xf32>
    %275 = arith.addf %273, %274 : vector<16x128xf32>
    %276 = vector.extract_strided_slice %259 {offsets = [0, 256], sizes = [16, 128], strides = [1, 1]} : vector<16x512xf32> to vector<16x128xf32>
    %277 = math.tanh %276 : vector<16x128xf32>
    %278 = vector.extract_strided_slice %259 {offsets = [0, 384], sizes = [16, 128], strides = [1, 1]} : vector<16x512xf32> to vector<16x128xf32>
    %cst_101 = arith.constant 5.000000e-01 : f32
    %279 = vector.broadcast %cst_101 : f32 to vector<16x128xf32>
    %280 = arith.mulf %279, %278 : vector<16x128xf32>
    %281 = math.tanh %280 : vector<16x128xf32>
    %cst_102 = arith.constant 5.000000e-01 : f32
    %282 = vector.broadcast %cst_102 : f32 to vector<16x128xf32>
    %283 = arith.mulf %282, %281 : vector<16x128xf32>
    %cst_103 = arith.constant 5.000000e-01 : f32
    %284 = vector.broadcast %cst_103 : f32 to vector<16x128xf32>
    %285 = arith.addf %283, %284 : vector<16x128xf32>
    %286 = arith.mulf %275, %248 : vector<16x128xf32>
    %287 = arith.mulf %267, %277 : vector<16x128xf32>
    %288 = arith.addf %286, %287 : vector<16x128xf32>
    %289 = math.tanh %288 : vector<16x128xf32>
    %290 = arith.mulf %285, %289 : vector<16x128xf32>
    %291 = arith.index_cast %254 : i32 to index
    %c0_104 = arith.constant 0 : index
    %292 = vector.load %arg7[%291, %c0_104] : memref<256x128xf32, #tpu.memory_space<vmem>>, vector<16x128xf32>
    tpu.vector_store %arg7[%291, %c0_104], %290 {strides = array<i32>} : memref<256x128xf32, #tpu.memory_space<vmem>>, vector<16x128xf32>,
    %c7_i32 = arith.constant 7 : i32
    %c16_i32_105 = arith.constant 16 : i32
    %293 = arith.muli %c7_i32, %c16_i32_105 : i32
    %294 = tpu.assume_multiple %293, 16 : i32
    %295 = arith.index_cast %294 : i32 to index
    %c0_106 = arith.constant 0 : index
    %296 = vector.load %arg9[%295, %c0_106] : memref<256x512xf32, #tpu.memory_space<vmem>>, vector<16x512xf32>
    %297 = arith.truncf %290 : vector<16x128xf32> to vector<16x128xbf16>
    %cst_107 = arith.constant dense<0.000000e+00> : vector<16x512xf32>
    %298 = tpu.matmul %297, %10, %cst_107 {dimension_numbers = #tpu.dot_dimension_numbers<[1], [0], [0], [1], [0, 0, 1, 1], [], []>} : vector<16x128xbf16>, vector<128x512xbf16>, vector<16x512xf32> -> vector<16x512xf32>
    %299 = arith.addf %296, %298 : vector<16x512xf32>
    %300 = vector.extract_strided_slice %299 {offsets = [0, 0], sizes = [16, 128], strides = [1, 1]} : vector<16x512xf32> to vector<16x128xf32>
    %cst_108 = arith.constant 5.000000e-01 : f32
    %301 = vector.broadcast %cst_108 : f32 to vector<16x128xf32>
    %302 = arith.mulf %301, %300 : vector<16x128xf32>
    %303 = math.tanh %302 : vector<16x128xf32>
    %cst_109 = arith.constant 5.000000e-01 : f32
    %304 = vector.broadcast %cst_109 : f32 to vector<16x128xf32>
    %305 = arith.mulf %304, %303 : vector<16x128xf32>
    %cst_110 = arith.constant 5.000000e-01 : f32
    %306 = vector.broadcast %cst_110 : f32 to vector<16x128xf32>
    %307 = arith.addf %305, %306 : vector<16x128xf32>
    %308 = vector.extract_strided_slice %299 {offsets = [0, 128], sizes = [16, 128], strides = [1, 1]} : vector<16x512xf32> to vector<16x128xf32>
    %cst_111 = arith.constant 5.000000e-01 : f32
    %309 = vector.broadcast %cst_111 : f32 to vector<16x128xf32>
    %310 = arith.mulf %309, %308 : vector<16x128xf32>
    %311 = math.tanh %310 : vector<16x128xf32>
    %cst_112 = arith.constant 5.000000e-01 : f32
    %312 = vector.broadcast %cst_112 : f32 to vector<16x128xf32>
    %313 = arith.mulf %312, %311 : vector<16x128xf32>
    %cst_113 = arith.constant 5.000000e-01 : f32
    %314 = vector.broadcast %cst_113 : f32 to vector<16x128xf32>
    %315 = arith.addf %313, %314 : vector<16x128xf32>
    %316 = vector.extract_strided_slice %299 {offsets = [0, 256], sizes = [16, 128], strides = [1, 1]} : vector<16x512xf32> to vector<16x128xf32>
    %317 = math.tanh %316 : vector<16x128xf32>
    %318 = vector.extract_strided_slice %299 {offsets = [0, 384], sizes = [16, 128], strides = [1, 1]} : vector<16x512xf32> to vector<16x128xf32>
    %cst_114 = arith.constant 5.000000e-01 : f32
    %319 = vector.broadcast %cst_114 : f32 to vector<16x128xf32>
    %320 = arith.mulf %319, %318 : vector<16x128xf32>
    %321 = math.tanh %320 : vector<16x128xf32>
    %cst_115 = arith.constant 5.000000e-01 : f32
    %322 = vector.broadcast %cst_115 : f32 to vector<16x128xf32>
    %323 = arith.mulf %322, %321 : vector<16x128xf32>
    %cst_116 = arith.constant 5.000000e-01 : f32
    %324 = vector.broadcast %cst_116 : f32 to vector<16x128xf32>
    %325 = arith.addf %323, %324 : vector<16x128xf32>
    %326 = arith.mulf %315, %288 : vector<16x128xf32>
    %327 = arith.mulf %307, %317 : vector<16x128xf32>
    %328 = arith.addf %326, %327 : vector<16x128xf32>
    %329 = math.tanh %328 : vector<16x128xf32>
    %330 = arith.mulf %325, %329 : vector<16x128xf32>
    %331 = arith.index_cast %294 : i32 to index
    %c0_117 = arith.constant 0 : index
    %332 = vector.load %arg7[%331, %c0_117] : memref<256x128xf32, #tpu.memory_space<vmem>>, vector<16x128xf32>
    tpu.vector_store %arg7[%331, %c0_117], %330 {strides = array<i32>} : memref<256x128xf32, #tpu.memory_space<vmem>>, vector<16x128xf32>,
    %c8_i32 = arith.constant 8 : i32
    %c16_i32_118 = arith.constant 16 : i32
    %333 = arith.muli %c8_i32, %c16_i32_118 : i32
    %334 = tpu.assume_multiple %333, 16 : i32
    %335 = arith.index_cast %334 : i32 to index
    %c0_119 = arith.constant 0 : index
    %336 = vector.load %arg9[%335, %c0_119] : memref<256x512xf32, #tpu.memory_space<vmem>>, vector<16x512xf32>
    %337 = arith.truncf %330 : vector<16x128xf32> to vector<16x128xbf16>
    %cst_120 = arith.constant dense<0.000000e+00> : vector<16x512xf32>
    %338 = tpu.matmul %337, %10, %cst_120 {dimension_numbers = #tpu.dot_dimension_numbers<[1], [0], [0], [1], [0, 0, 1, 1], [], []>} : vector<16x128xbf16>, vector<128x512xbf16>, vector<16x512xf32> -> vector<16x512xf32>
    %339 = arith.addf %336, %338 : vector<16x512xf32>
    %340 = vector.extract_strided_slice %339 {offsets = [0, 0], sizes = [16, 128], strides = [1, 1]} : vector<16x512xf32> to vector<16x128xf32>
    %cst_121 = arith.constant 5.000000e-01 : f32
    %341 = vector.broadcast %cst_121 : f32 to vector<16x128xf32>
    %342 = arith.mulf %341, %340 : vector<16x128xf32>
    %343 = math.tanh %342 : vector<16x128xf32>
    %cst_122 = arith.constant 5.000000e-01 : f32
    %344 = vector.broadcast %cst_122 : f32 to vector<16x128xf32>
    %345 = arith.mulf %344, %343 : vector<16x128xf32>
    %cst_123 = arith.constant 5.000000e-01 : f32
    %346 = vector.broadcast %cst_123 : f32 to vector<16x128xf32>
    %347 = arith.addf %345, %346 : vector<16x128xf32>
    %348 = vector.extract_strided_slice %339 {offsets = [0, 128], sizes = [16, 128], strides = [1, 1]} : vector<16x512xf32> to vector<16x128xf32>
    %cst_124 = arith.constant 5.000000e-01 : f32
    %349 = vector.broadcast %cst_124 : f32 to vector<16x128xf32>
    %350 = arith.mulf %349, %348 : vector<16x128xf32>
    %351 = math.tanh %350 : vector<16x128xf32>
    %cst_125 = arith.constant 5.000000e-01 : f32
    %352 = vector.broadcast %cst_125 : f32 to vector<16x128xf32>
    %353 = arith.mulf %352, %351 : vector<16x128xf32>
    %cst_126 = arith.constant 5.000000e-01 : f32
    %354 = vector.broadcast %cst_126 : f32 to vector<16x128xf32>
    %355 = arith.addf %353, %354 : vector<16x128xf32>
    %356 = vector.extract_strided_slice %339 {offsets = [0, 256], sizes = [16, 128], strides = [1, 1]} : vector<16x512xf32> to vector<16x128xf32>
    %357 = math.tanh %356 : vector<16x128xf32>
    %358 = vector.extract_strided_slice %339 {offsets = [0, 384], sizes = [16, 128], strides = [1, 1]} : vector<16x512xf32> to vector<16x128xf32>
    %cst_127 = arith.constant 5.000000e-01 : f32
    %359 = vector.broadcast %cst_127 : f32 to vector<16x128xf32>
    %360 = arith.mulf %359, %358 : vector<16x128xf32>
    %361 = math.tanh %360 : vector<16x128xf32>
    %cst_128 = arith.constant 5.000000e-01 : f32
    %362 = vector.broadcast %cst_128 : f32 to vector<16x128xf32>
    %363 = arith.mulf %362, %361 : vector<16x128xf32>
    %cst_129 = arith.constant 5.000000e-01 : f32
    %364 = vector.broadcast %cst_129 : f32 to vector<16x128xf32>
    %365 = arith.addf %363, %364 : vector<16x128xf32>
    %366 = arith.mulf %355, %328 : vector<16x128xf32>
    %367 = arith.mulf %347, %357 : vector<16x128xf32>
    %368 = arith.addf %366, %367 : vector<16x128xf32>
    %369 = math.tanh %368 : vector<16x128xf32>
    %370 = arith.mulf %365, %369 : vector<16x128xf32>
    %371 = arith.index_cast %334 : i32 to index
    %c0_130 = arith.constant 0 : index
    %372 = vector.load %arg7[%371, %c0_130] : memref<256x128xf32, #tpu.memory_space<vmem>>, vector<16x128xf32>
    tpu.vector_store %arg7[%371, %c0_130], %370 {strides = array<i32>} : memref<256x128xf32, #tpu.memory_space<vmem>>, vector<16x128xf32>,
    %c9_i32 = arith.constant 9 : i32
    %c16_i32_131 = arith.constant 16 : i32
    %373 = arith.muli %c9_i32, %c16_i32_131 : i32
    %374 = tpu.assume_multiple %373, 16 : i32
    %375 = arith.index_cast %374 : i32 to index
    %c0_132 = arith.constant 0 : index
    %376 = vector.load %arg9[%375, %c0_132] : memref<256x512xf32, #tpu.memory_space<vmem>>, vector<16x512xf32>
    %377 = arith.truncf %370 : vector<16x128xf32> to vector<16x128xbf16>
    %cst_133 = arith.constant dense<0.000000e+00> : vector<16x512xf32>
    %378 = tpu.matmul %377, %10, %cst_133 {dimension_numbers = #tpu.dot_dimension_numbers<[1], [0], [0], [1], [0, 0, 1, 1], [], []>} : vector<16x128xbf16>, vector<128x512xbf16>, vector<16x512xf32> -> vector<16x512xf32>
    %379 = arith.addf %376, %378 : vector<16x512xf32>
    %380 = vector.extract_strided_slice %379 {offsets = [0, 0], sizes = [16, 128], strides = [1, 1]} : vector<16x512xf32> to vector<16x128xf32>
    %cst_134 = arith.constant 5.000000e-01 : f32
    %381 = vector.broadcast %cst_134 : f32 to vector<16x128xf32>
    %382 = arith.mulf %381, %380 : vector<16x128xf32>
    %383 = math.tanh %382 : vector<16x128xf32>
    %cst_135 = arith.constant 5.000000e-01 : f32
    %384 = vector.broadcast %cst_135 : f32 to vector<16x128xf32>
    %385 = arith.mulf %384, %383 : vector<16x128xf32>
    %cst_136 = arith.constant 5.000000e-01 : f32
    %386 = vector.broadcast %cst_136 : f32 to vector<16x128xf32>
    %387 = arith.addf %385, %386 : vector<16x128xf32>
    %388 = vector.extract_strided_slice %379 {offsets = [0, 128], sizes = [16, 128], strides = [1, 1]} : vector<16x512xf32> to vector<16x128xf32>
    %cst_137 = arith.constant 5.000000e-01 : f32
    %389 = vector.broadcast %cst_137 : f32 to vector<16x128xf32>
    %390 = arith.mulf %389, %388 : vector<16x128xf32>
    %391 = math.tanh %390 : vector<16x128xf32>
    %cst_138 = arith.constant 5.000000e-01 : f32
    %392 = vector.broadcast %cst_138 : f32 to vector<16x128xf32>
    %393 = arith.mulf %392, %391 : vector<16x128xf32>
    %cst_139 = arith.constant 5.000000e-01 : f32
    %394 = vector.broadcast %cst_139 : f32 to vector<16x128xf32>
    %395 = arith.addf %393, %394 : vector<16x128xf32>
    %396 = vector.extract_strided_slice %379 {offsets = [0, 256], sizes = [16, 128], strides = [1, 1]} : vector<16x512xf32> to vector<16x128xf32>
    %397 = math.tanh %396 : vector<16x128xf32>
    %398 = vector.extract_strided_slice %379 {offsets = [0, 384], sizes = [16, 128], strides = [1, 1]} : vector<16x512xf32> to vector<16x128xf32>
    %cst_140 = arith.constant 5.000000e-01 : f32
    %399 = vector.broadcast %cst_140 : f32 to vector<16x128xf32>
    %400 = arith.mulf %399, %398 : vector<16x128xf32>
    %401 = math.tanh %400 : vector<16x128xf32>
    %cst_141 = arith.constant 5.000000e-01 : f32
    %402 = vector.broadcast %cst_141 : f32 to vector<16x128xf32>
    %403 = arith.mulf %402, %401 : vector<16x128xf32>
    %cst_142 = arith.constant 5.000000e-01 : f32
    %404 = vector.broadcast %cst_142 : f32 to vector<16x128xf32>
    %405 = arith.addf %403, %404 : vector<16x128xf32>
    %406 = arith.mulf %395, %368 : vector<16x128xf32>
    %407 = arith.mulf %387, %397 : vector<16x128xf32>
    %408 = arith.addf %406, %407 : vector<16x128xf32>
    %409 = math.tanh %408 : vector<16x128xf32>
    %410 = arith.mulf %405, %409 : vector<16x128xf32>
    %411 = arith.index_cast %374 : i32 to index
    %c0_143 = arith.constant 0 : index
    %412 = vector.load %arg7[%411, %c0_143] : memref<256x128xf32, #tpu.memory_space<vmem>>, vector<16x128xf32>
    tpu.vector_store %arg7[%411, %c0_143], %410 {strides = array<i32>} : memref<256x128xf32, #tpu.memory_space<vmem>>, vector<16x128xf32>,
    %c10_i32 = arith.constant 10 : i32
    %c16_i32_144 = arith.constant 16 : i32
    %413 = arith.muli %c10_i32, %c16_i32_144 : i32
    %414 = tpu.assume_multiple %413, 16 : i32
    %415 = arith.index_cast %414 : i32 to index
    %c0_145 = arith.constant 0 : index
    %416 = vector.load %arg9[%415, %c0_145] : memref<256x512xf32, #tpu.memory_space<vmem>>, vector<16x512xf32>
    %417 = arith.truncf %410 : vector<16x128xf32> to vector<16x128xbf16>
    %cst_146 = arith.constant dense<0.000000e+00> : vector<16x512xf32>
    %418 = tpu.matmul %417, %10, %cst_146 {dimension_numbers = #tpu.dot_dimension_numbers<[1], [0], [0], [1], [0, 0, 1, 1], [], []>} : vector<16x128xbf16>, vector<128x512xbf16>, vector<16x512xf32> -> vector<16x512xf32>
    %419 = arith.addf %416, %418 : vector<16x512xf32>
    %420 = vector.extract_strided_slice %419 {offsets = [0, 0], sizes = [16, 128], strides = [1, 1]} : vector<16x512xf32> to vector<16x128xf32>
    %cst_147 = arith.constant 5.000000e-01 : f32
    %421 = vector.broadcast %cst_147 : f32 to vector<16x128xf32>
    %422 = arith.mulf %421, %420 : vector<16x128xf32>
    %423 = math.tanh %422 : vector<16x128xf32>
    %cst_148 = arith.constant 5.000000e-01 : f32
    %424 = vector.broadcast %cst_148 : f32 to vector<16x128xf32>
    %425 = arith.mulf %424, %423 : vector<16x128xf32>
    %cst_149 = arith.constant 5.000000e-01 : f32
    %426 = vector.broadcast %cst_149 : f32 to vector<16x128xf32>
    %427 = arith.addf %425, %426 : vector<16x128xf32>
    %428 = vector.extract_strided_slice %419 {offsets = [0, 128], sizes = [16, 128], strides = [1, 1]} : vector<16x512xf32> to vector<16x128xf32>
    %cst_150 = arith.constant 5.000000e-01 : f32
    %429 = vector.broadcast %cst_150 : f32 to vector<16x128xf32>
    %430 = arith.mulf %429, %428 : vector<16x128xf32>
    %431 = math.tanh %430 : vector<16x128xf32>
    %cst_151 = arith.constant 5.000000e-01 : f32
    %432 = vector.broadcast %cst_151 : f32 to vector<16x128xf32>
    %433 = arith.mulf %432, %431 : vector<16x128xf32>
    %cst_152 = arith.constant 5.000000e-01 : f32
    %434 = vector.broadcast %cst_152 : f32 to vector<16x128xf32>
    %435 = arith.addf %433, %434 : vector<16x128xf32>
    %436 = vector.extract_strided_slice %419 {offsets = [0, 256], sizes = [16, 128], strides = [1, 1]} : vector<16x512xf32> to vector<16x128xf32>
    %437 = math.tanh %436 : vector<16x128xf32>
    %438 = vector.extract_strided_slice %419 {offsets = [0, 384], sizes = [16, 128], strides = [1, 1]} : vector<16x512xf32> to vector<16x128xf32>
    %cst_153 = arith.constant 5.000000e-01 : f32
    %439 = vector.broadcast %cst_153 : f32 to vector<16x128xf32>
    %440 = arith.mulf %439, %438 : vector<16x128xf32>
    %441 = math.tanh %440 : vector<16x128xf32>
    %cst_154 = arith.constant 5.000000e-01 : f32
    %442 = vector.broadcast %cst_154 : f32 to vector<16x128xf32>
    %443 = arith.mulf %442, %441 : vector<16x128xf32>
    %cst_155 = arith.constant 5.000000e-01 : f32
    %444 = vector.broadcast %cst_155 : f32 to vector<16x128xf32>
    %445 = arith.addf %443, %444 : vector<16x128xf32>
    %446 = arith.mulf %435, %408 : vector<16x128xf32>
    %447 = arith.mulf %427, %437 : vector<16x128xf32>
    %448 = arith.addf %446, %447 : vector<16x128xf32>
    %449 = math.tanh %448 : vector<16x128xf32>
    %450 = arith.mulf %445, %449 : vector<16x128xf32>
    %451 = arith.index_cast %414 : i32 to index
    %c0_156 = arith.constant 0 : index
    %452 = vector.load %arg7[%451, %c0_156] : memref<256x128xf32, #tpu.memory_space<vmem>>, vector<16x128xf32>
    tpu.vector_store %arg7[%451, %c0_156], %450 {strides = array<i32>} : memref<256x128xf32, #tpu.memory_space<vmem>>, vector<16x128xf32>,
    %c11_i32 = arith.constant 11 : i32
    %c16_i32_157 = arith.constant 16 : i32
    %453 = arith.muli %c11_i32, %c16_i32_157 : i32
    %454 = tpu.assume_multiple %453, 16 : i32
    %455 = arith.index_cast %454 : i32 to index
    %c0_158 = arith.constant 0 : index
    %456 = vector.load %arg9[%455, %c0_158] : memref<256x512xf32, #tpu.memory_space<vmem>>, vector<16x512xf32>
    %457 = arith.truncf %450 : vector<16x128xf32> to vector<16x128xbf16>
    %cst_159 = arith.constant dense<0.000000e+00> : vector<16x512xf32>
    %458 = tpu.matmul %457, %10, %cst_159 {dimension_numbers = #tpu.dot_dimension_numbers<[1], [0], [0], [1], [0, 0, 1, 1], [], []>} : vector<16x128xbf16>, vector<128x512xbf16>, vector<16x512xf32> -> vector<16x512xf32>
    %459 = arith.addf %456, %458 : vector<16x512xf32>
    %460 = vector.extract_strided_slice %459 {offsets = [0, 0], sizes = [16, 128], strides = [1, 1]} : vector<16x512xf32> to vector<16x128xf32>
    %cst_160 = arith.constant 5.000000e-01 : f32
    %461 = vector.broadcast %cst_160 : f32 to vector<16x128xf32>
    %462 = arith.mulf %461, %460 : vector<16x128xf32>
    %463 = math.tanh %462 : vector<16x128xf32>
    %cst_161 = arith.constant 5.000000e-01 : f32
    %464 = vector.broadcast %cst_161 : f32 to vector<16x128xf32>
    %465 = arith.mulf %464, %463 : vector<16x128xf32>
    %cst_162 = arith.constant 5.000000e-01 : f32
    %466 = vector.broadcast %cst_162 : f32 to vector<16x128xf32>
    %467 = arith.addf %465, %466 : vector<16x128xf32>
    %468 = vector.extract_strided_slice %459 {offsets = [0, 128], sizes = [16, 128], strides = [1, 1]} : vector<16x512xf32> to vector<16x128xf32>
    %cst_163 = arith.constant 5.000000e-01 : f32
    %469 = vector.broadcast %cst_163 : f32 to vector<16x128xf32>
    %470 = arith.mulf %469, %468 : vector<16x128xf32>
    %471 = math.tanh %470 : vector<16x128xf32>
    %cst_164 = arith.constant 5.000000e-01 : f32
    %472 = vector.broadcast %cst_164 : f32 to vector<16x128xf32>
    %473 = arith.mulf %472, %471 : vector<16x128xf32>
    %cst_165 = arith.constant 5.000000e-01 : f32
    %474 = vector.broadcast %cst_165 : f32 to vector<16x128xf32>
    %475 = arith.addf %473, %474 : vector<16x128xf32>
    %476 = vector.extract_strided_slice %459 {offsets = [0, 256], sizes = [16, 128], strides = [1, 1]} : vector<16x512xf32> to vector<16x128xf32>
    %477 = math.tanh %476 : vector<16x128xf32>
    %478 = vector.extract_strided_slice %459 {offsets = [0, 384], sizes = [16, 128], strides = [1, 1]} : vector<16x512xf32> to vector<16x128xf32>
    %cst_166 = arith.constant 5.000000e-01 : f32
    %479 = vector.broadcast %cst_166 : f32 to vector<16x128xf32>
    %480 = arith.mulf %479, %478 : vector<16x128xf32>
    %481 = math.tanh %480 : vector<16x128xf32>
    %cst_167 = arith.constant 5.000000e-01 : f32
    %482 = vector.broadcast %cst_167 : f32 to vector<16x128xf32>
    %483 = arith.mulf %482, %481 : vector<16x128xf32>
    %cst_168 = arith.constant 5.000000e-01 : f32
    %484 = vector.broadcast %cst_168 : f32 to vector<16x128xf32>
    %485 = arith.addf %483, %484 : vector<16x128xf32>
    %486 = arith.mulf %475, %448 : vector<16x128xf32>
    %487 = arith.mulf %467, %477 : vector<16x128xf32>
    %488 = arith.addf %486, %487 : vector<16x128xf32>
    %489 = math.tanh %488 : vector<16x128xf32>
    %490 = arith.mulf %485, %489 : vector<16x128xf32>
    %491 = arith.index_cast %454 : i32 to index
    %c0_169 = arith.constant 0 : index
    %492 = vector.load %arg7[%491, %c0_169] : memref<256x128xf32, #tpu.memory_space<vmem>>, vector<16x128xf32>
    tpu.vector_store %arg7[%491, %c0_169], %490 {strides = array<i32>} : memref<256x128xf32, #tpu.memory_space<vmem>>, vector<16x128xf32>,
    %c12_i32 = arith.constant 12 : i32
    %c16_i32_170 = arith.constant 16 : i32
    %493 = arith.muli %c12_i32, %c16_i32_170 : i32
    %494 = tpu.assume_multiple %493, 16 : i32
    %495 = arith.index_cast %494 : i32 to index
    %c0_171 = arith.constant 0 : index
    %496 = vector.load %arg9[%495, %c0_171] : memref<256x512xf32, #tpu.memory_space<vmem>>, vector<16x512xf32>
    %497 = arith.truncf %490 : vector<16x128xf32> to vector<16x128xbf16>
    %cst_172 = arith.constant dense<0.000000e+00> : vector<16x512xf32>
    %498 = tpu.matmul %497, %10, %cst_172 {dimension_numbers = #tpu.dot_dimension_numbers<[1], [0], [0], [1], [0, 0, 1, 1], [], []>} : vector<16x128xbf16>, vector<128x512xbf16>, vector<16x512xf32> -> vector<16x512xf32>
    %499 = arith.addf %496, %498 : vector<16x512xf32>
    %500 = vector.extract_strided_slice %499 {offsets = [0, 0], sizes = [16, 128], strides = [1, 1]} : vector<16x512xf32> to vector<16x128xf32>
    %cst_173 = arith.constant 5.000000e-01 : f32
    %501 = vector.broadcast %cst_173 : f32 to vector<16x128xf32>
    %502 = arith.mulf %501, %500 : vector<16x128xf32>
    %503 = math.tanh %502 : vector<16x128xf32>
    %cst_174 = arith.constant 5.000000e-01 : f32
    %504 = vector.broadcast %cst_174 : f32 to vector<16x128xf32>
    %505 = arith.mulf %504, %503 : vector<16x128xf32>
    %cst_175 = arith.constant 5.000000e-01 : f32
    %506 = vector.broadcast %cst_175 : f32 to vector<16x128xf32>
    %507 = arith.addf %505, %506 : vector<16x128xf32>
    %508 = vector.extract_strided_slice %499 {offsets = [0, 128], sizes = [16, 128], strides = [1, 1]} : vector<16x512xf32> to vector<16x128xf32>
    %cst_176 = arith.constant 5.000000e-01 : f32
    %509 = vector.broadcast %cst_176 : f32 to vector<16x128xf32>
    %510 = arith.mulf %509, %508 : vector<16x128xf32>
    %511 = math.tanh %510 : vector<16x128xf32>
    %cst_177 = arith.constant 5.000000e-01 : f32
    %512 = vector.broadcast %cst_177 : f32 to vector<16x128xf32>
    %513 = arith.mulf %512, %511 : vector<16x128xf32>
    %cst_178 = arith.constant 5.000000e-01 : f32
    %514 = vector.broadcast %cst_178 : f32 to vector<16x128xf32>
    %515 = arith.addf %513, %514 : vector<16x128xf32>
    %516 = vector.extract_strided_slice %499 {offsets = [0, 256], sizes = [16, 128], strides = [1, 1]} : vector<16x512xf32> to vector<16x128xf32>
    %517 = math.tanh %516 : vector<16x128xf32>
    %518 = vector.extract_strided_slice %499 {offsets = [0, 384], sizes = [16, 128], strides = [1, 1]} : vector<16x512xf32> to vector<16x128xf32>
    %cst_179 = arith.constant 5.000000e-01 : f32
    %519 = vector.broadcast %cst_179 : f32 to vector<16x128xf32>
    %520 = arith.mulf %519, %518 : vector<16x128xf32>
    %521 = math.tanh %520 : vector<16x128xf32>
    %cst_180 = arith.constant 5.000000e-01 : f32
    %522 = vector.broadcast %cst_180 : f32 to vector<16x128xf32>
    %523 = arith.mulf %522, %521 : vector<16x128xf32>
    %cst_181 = arith.constant 5.000000e-01 : f32
    %524 = vector.broadcast %cst_181 : f32 to vector<16x128xf32>
    %525 = arith.addf %523, %524 : vector<16x128xf32>
    %526 = arith.mulf %515, %488 : vector<16x128xf32>
    %527 = arith.mulf %507, %517 : vector<16x128xf32>
    %528 = arith.addf %526, %527 : vector<16x128xf32>
    %529 = math.tanh %528 : vector<16x128xf32>
    %530 = arith.mulf %525, %529 : vector<16x128xf32>
    %531 = arith.index_cast %494 : i32 to index
    %c0_182 = arith.constant 0 : index
    %532 = vector.load %arg7[%531, %c0_182] : memref<256x128xf32, #tpu.memory_space<vmem>>, vector<16x128xf32>
    tpu.vector_store %arg7[%531, %c0_182], %530 {strides = array<i32>} : memref<256x128xf32, #tpu.memory_space<vmem>>, vector<16x128xf32>,
    %c13_i32 = arith.constant 13 : i32
    %c16_i32_183 = arith.constant 16 : i32
    %533 = arith.muli %c13_i32, %c16_i32_183 : i32
    %534 = tpu.assume_multiple %533, 16 : i32
    %535 = arith.index_cast %534 : i32 to index
    %c0_184 = arith.constant 0 : index
    %536 = vector.load %arg9[%535, %c0_184] : memref<256x512xf32, #tpu.memory_space<vmem>>, vector<16x512xf32>
    %537 = arith.truncf %530 : vector<16x128xf32> to vector<16x128xbf16>
    %cst_185 = arith.constant dense<0.000000e+00> : vector<16x512xf32>
    %538 = tpu.matmul %537, %10, %cst_185 {dimension_numbers = #tpu.dot_dimension_numbers<[1], [0], [0], [1], [0, 0, 1, 1], [], []>} : vector<16x128xbf16>, vector<128x512xbf16>, vector<16x512xf32> -> vector<16x512xf32>
    %539 = arith.addf %536, %538 : vector<16x512xf32>
    %540 = vector.extract_strided_slice %539 {offsets = [0, 0], sizes = [16, 128], strides = [1, 1]} : vector<16x512xf32> to vector<16x128xf32>
    %cst_186 = arith.constant 5.000000e-01 : f32
    %541 = vector.broadcast %cst_186 : f32 to vector<16x128xf32>
    %542 = arith.mulf %541, %540 : vector<16x128xf32>
    %543 = math.tanh %542 : vector<16x128xf32>
    %cst_187 = arith.constant 5.000000e-01 : f32
    %544 = vector.broadcast %cst_187 : f32 to vector<16x128xf32>
    %545 = arith.mulf %544, %543 : vector<16x128xf32>
    %cst_188 = arith.constant 5.000000e-01 : f32
    %546 = vector.broadcast %cst_188 : f32 to vector<16x128xf32>
    %547 = arith.addf %545, %546 : vector<16x128xf32>
    %548 = vector.extract_strided_slice %539 {offsets = [0, 128], sizes = [16, 128], strides = [1, 1]} : vector<16x512xf32> to vector<16x128xf32>
    %cst_189 = arith.constant 5.000000e-01 : f32
    %549 = vector.broadcast %cst_189 : f32 to vector<16x128xf32>
    %550 = arith.mulf %549, %548 : vector<16x128xf32>
    %551 = math.tanh %550 : vector<16x128xf32>
    %cst_190 = arith.constant 5.000000e-01 : f32
    %552 = vector.broadcast %cst_190 : f32 to vector<16x128xf32>
    %553 = arith.mulf %552, %551 : vector<16x128xf32>
    %cst_191 = arith.constant 5.000000e-01 : f32
    %554 = vector.broadcast %cst_191 : f32 to vector<16x128xf32>
    %555 = arith.addf %553, %554 : vector<16x128xf32>
    %556 = vector.extract_strided_slice %539 {offsets = [0, 256], sizes = [16, 128], strides = [1, 1]} : vector<16x512xf32> to vector<16x128xf32>
    %557 = math.tanh %556 : vector<16x128xf32>
    %558 = vector.extract_strided_slice %539 {offsets = [0, 384], sizes = [16, 128], strides = [1, 1]} : vector<16x512xf32> to vector<16x128xf32>
    %cst_192 = arith.constant 5.000000e-01 : f32
    %559 = vector.broadcast %cst_192 : f32 to vector<16x128xf32>
    %560 = arith.mulf %559, %558 : vector<16x128xf32>
    %561 = math.tanh %560 : vector<16x128xf32>
    %cst_193 = arith.constant 5.000000e-01 : f32
    %562 = vector.broadcast %cst_193 : f32 to vector<16x128xf32>
    %563 = arith.mulf %562, %561 : vector<16x128xf32>
    %cst_194 = arith.constant 5.000000e-01 : f32
    %564 = vector.broadcast %cst_194 : f32 to vector<16x128xf32>
    %565 = arith.addf %563, %564 : vector<16x128xf32>
    %566 = arith.mulf %555, %528 : vector<16x128xf32>
    %567 = arith.mulf %547, %557 : vector<16x128xf32>
    %568 = arith.addf %566, %567 : vector<16x128xf32>
    %569 = math.tanh %568 : vector<16x128xf32>
    %570 = arith.mulf %565, %569 : vector<16x128xf32>
    %571 = arith.index_cast %534 : i32 to index
    %c0_195 = arith.constant 0 : index
    %572 = vector.load %arg7[%571, %c0_195] : memref<256x128xf32, #tpu.memory_space<vmem>>, vector<16x128xf32>
    tpu.vector_store %arg7[%571, %c0_195], %570 {strides = array<i32>} : memref<256x128xf32, #tpu.memory_space<vmem>>, vector<16x128xf32>,
    %c14_i32 = arith.constant 14 : i32
    %c16_i32_196 = arith.constant 16 : i32
    %573 = arith.muli %c14_i32, %c16_i32_196 : i32
    %574 = tpu.assume_multiple %573, 16 : i32
    %575 = arith.index_cast %574 : i32 to index
    %c0_197 = arith.constant 0 : index
    %576 = vector.load %arg9[%575, %c0_197] : memref<256x512xf32, #tpu.memory_space<vmem>>, vector<16x512xf32>
    %577 = arith.truncf %570 : vector<16x128xf32> to vector<16x128xbf16>
    %cst_198 = arith.constant dense<0.000000e+00> : vector<16x512xf32>
    %578 = tpu.matmul %577, %10, %cst_198 {dimension_numbers = #tpu.dot_dimension_numbers<[1], [0], [0], [1], [0, 0, 1, 1], [], []>} : vector<16x128xbf16>, vector<128x512xbf16>, vector<16x512xf32> -> vector<16x512xf32>
    %579 = arith.addf %576, %578 : vector<16x512xf32>
    %580 = vector.extract_strided_slice %579 {offsets = [0, 0], sizes = [16, 128], strides = [1, 1]} : vector<16x512xf32> to vector<16x128xf32>
    %cst_199 = arith.constant 5.000000e-01 : f32
    %581 = vector.broadcast %cst_199 : f32 to vector<16x128xf32>
    %582 = arith.mulf %581, %580 : vector<16x128xf32>
    %583 = math.tanh %582 : vector<16x128xf32>
    %cst_200 = arith.constant 5.000000e-01 : f32
    %584 = vector.broadcast %cst_200 : f32 to vector<16x128xf32>
    %585 = arith.mulf %584, %583 : vector<16x128xf32>
    %cst_201 = arith.constant 5.000000e-01 : f32
    %586 = vector.broadcast %cst_201 : f32 to vector<16x128xf32>
    %587 = arith.addf %585, %586 : vector<16x128xf32>
    %588 = vector.extract_strided_slice %579 {offsets = [0, 128], sizes = [16, 128], strides = [1, 1]} : vector<16x512xf32> to vector<16x128xf32>
    %cst_202 = arith.constant 5.000000e-01 : f32
    %589 = vector.broadcast %cst_202 : f32 to vector<16x128xf32>
    %590 = arith.mulf %589, %588 : vector<16x128xf32>
    %591 = math.tanh %590 : vector<16x128xf32>
    %cst_203 = arith.constant 5.000000e-01 : f32
    %592 = vector.broadcast %cst_203 : f32 to vector<16x128xf32>
    %593 = arith.mulf %592, %591 : vector<16x128xf32>
    %cst_204 = arith.constant 5.000000e-01 : f32
    %594 = vector.broadcast %cst_204 : f32 to vector<16x128xf32>
    %595 = arith.addf %593, %594 : vector<16x128xf32>
    %596 = vector.extract_strided_slice %579 {offsets = [0, 256], sizes = [16, 128], strides = [1, 1]} : vector<16x512xf32> to vector<16x128xf32>
    %597 = math.tanh %596 : vector<16x128xf32>
    %598 = vector.extract_strided_slice %579 {offsets = [0, 384], sizes = [16, 128], strides = [1, 1]} : vector<16x512xf32> to vector<16x128xf32>
    %cst_205 = arith.constant 5.000000e-01 : f32
    %599 = vector.broadcast %cst_205 : f32 to vector<16x128xf32>
    %600 = arith.mulf %599, %598 : vector<16x128xf32>
    %601 = math.tanh %600 : vector<16x128xf32>
    %cst_206 = arith.constant 5.000000e-01 : f32
    %602 = vector.broadcast %cst_206 : f32 to vector<16x128xf32>
    %603 = arith.mulf %602, %601 : vector<16x128xf32>
    %cst_207 = arith.constant 5.000000e-01 : f32
    %604 = vector.broadcast %cst_207 : f32 to vector<16x128xf32>
    %605 = arith.addf %603, %604 : vector<16x128xf32>
    %606 = arith.mulf %595, %568 : vector<16x128xf32>
    %607 = arith.mulf %587, %597 : vector<16x128xf32>
    %608 = arith.addf %606, %607 : vector<16x128xf32>
    %609 = math.tanh %608 : vector<16x128xf32>
    %610 = arith.mulf %605, %609 : vector<16x128xf32>
    %611 = arith.index_cast %574 : i32 to index
    %c0_208 = arith.constant 0 : index
    %612 = vector.load %arg7[%611, %c0_208] : memref<256x128xf32, #tpu.memory_space<vmem>>, vector<16x128xf32>
    tpu.vector_store %arg7[%611, %c0_208], %610 {strides = array<i32>} : memref<256x128xf32, #tpu.memory_space<vmem>>, vector<16x128xf32>,
    %c15_i32 = arith.constant 15 : i32
    %c16_i32_209 = arith.constant 16 : i32
    %613 = arith.muli %c15_i32, %c16_i32_209 : i32
    %614 = tpu.assume_multiple %613, 16 : i32
    %615 = arith.index_cast %614 : i32 to index
    %c0_210 = arith.constant 0 : index
    %616 = vector.load %arg9[%615, %c0_210] : memref<256x512xf32, #tpu.memory_space<vmem>>, vector<16x512xf32>
    %617 = arith.truncf %610 : vector<16x128xf32> to vector<16x128xbf16>
    %cst_211 = arith.constant dense<0.000000e+00> : vector<16x512xf32>
    %618 = tpu.matmul %617, %10, %cst_211 {dimension_numbers = #tpu.dot_dimension_numbers<[1], [0], [0], [1], [0, 0, 1, 1], [], []>} : vector<16x128xbf16>, vector<128x512xbf16>, vector<16x512xf32> -> vector<16x512xf32>
    %619 = arith.addf %616, %618 : vector<16x512xf32>
    %620 = vector.extract_strided_slice %619 {offsets = [0, 0], sizes = [16, 128], strides = [1, 1]} : vector<16x512xf32> to vector<16x128xf32>
    %cst_212 = arith.constant 5.000000e-01 : f32
    %621 = vector.broadcast %cst_212 : f32 to vector<16x128xf32>
    %622 = arith.mulf %621, %620 : vector<16x128xf32>
    %623 = math.tanh %622 : vector<16x128xf32>
    %cst_213 = arith.constant 5.000000e-01 : f32
    %624 = vector.broadcast %cst_213 : f32 to vector<16x128xf32>
    %625 = arith.mulf %624, %623 : vector<16x128xf32>
    %cst_214 = arith.constant 5.000000e-01 : f32
    %626 = vector.broadcast %cst_214 : f32 to vector<16x128xf32>
    %627 = arith.addf %625, %626 : vector<16x128xf32>
    %628 = vector.extract_strided_slice %619 {offsets = [0, 128], sizes = [16, 128], strides = [1, 1]} : vector<16x512xf32> to vector<16x128xf32>
    %cst_215 = arith.constant 5.000000e-01 : f32
    %629 = vector.broadcast %cst_215 : f32 to vector<16x128xf32>
    %630 = arith.mulf %629, %628 : vector<16x128xf32>
    %631 = math.tanh %630 : vector<16x128xf32>
    %cst_216 = arith.constant 5.000000e-01 : f32
    %632 = vector.broadcast %cst_216 : f32 to vector<16x128xf32>
    %633 = arith.mulf %632, %631 : vector<16x128xf32>
    %cst_217 = arith.constant 5.000000e-01 : f32
    %634 = vector.broadcast %cst_217 : f32 to vector<16x128xf32>
    %635 = arith.addf %633, %634 : vector<16x128xf32>
    %636 = vector.extract_strided_slice %619 {offsets = [0, 256], sizes = [16, 128], strides = [1, 1]} : vector<16x512xf32> to vector<16x128xf32>
    %637 = math.tanh %636 : vector<16x128xf32>
    %638 = vector.extract_strided_slice %619 {offsets = [0, 384], sizes = [16, 128], strides = [1, 1]} : vector<16x512xf32> to vector<16x128xf32>
    %cst_218 = arith.constant 5.000000e-01 : f32
    %639 = vector.broadcast %cst_218 : f32 to vector<16x128xf32>
    %640 = arith.mulf %639, %638 : vector<16x128xf32>
    %641 = math.tanh %640 : vector<16x128xf32>
    %cst_219 = arith.constant 5.000000e-01 : f32
    %642 = vector.broadcast %cst_219 : f32 to vector<16x128xf32>
    %643 = arith.mulf %642, %641 : vector<16x128xf32>
    %cst_220 = arith.constant 5.000000e-01 : f32
    %644 = vector.broadcast %cst_220 : f32 to vector<16x128xf32>
    %645 = arith.addf %643, %644 : vector<16x128xf32>
    %646 = arith.mulf %635, %608 : vector<16x128xf32>
    %647 = arith.mulf %627, %637 : vector<16x128xf32>
    %648 = arith.addf %646, %647 : vector<16x128xf32>
    %649 = math.tanh %648 : vector<16x128xf32>
    %650 = arith.mulf %645, %649 : vector<16x128xf32>
    %651 = arith.index_cast %614 : i32 to index
    %c0_221 = arith.constant 0 : index
    %652 = vector.load %arg7[%651, %c0_221] : memref<256x128xf32, #tpu.memory_space<vmem>>, vector<16x128xf32>
    tpu.vector_store %arg7[%651, %c0_221], %650 {strides = array<i32>} : memref<256x128xf32, #tpu.memory_space<vmem>>, vector<16x128xf32>,
    %c16_i32_222 = arith.constant 16 : i32
    %c0_223 = arith.constant 0 : index
    %c0_224 = arith.constant 0 : index
    %653 = vector.load %arg10[%c0_223, %c0_224] : memref<16x128xf32, #tpu.memory_space<vmem>>, vector<16x128xf32>
    tpu.vector_store %arg10[%c0_223, %c0_224], %650 {strides = array<i32>} : memref<16x128xf32, #tpu.memory_space<vmem>>, vector<16x128xf32>,
    %c0_225 = arith.constant 0 : index
    %c0_226 = arith.constant 0 : index
    %654 = vector.load %arg11[%c0_225, %c0_226] : memref<16x128xf32, #tpu.memory_space<vmem>>, vector<16x128xf32>
    tpu.vector_store %arg11[%c0_225, %c0_226], %648 {strides = array<i32>} : memref<16x128xf32, #tpu.memory_space<vmem>>, vector<16x128xf32>,
    %c0_i32_227 = arith.constant 0 : i32
    %655 = arith.cmpi eq, %arg0, %c0_i32_227 : i32
    %656 = arith.extui %655 : i1 to i32
    %c0_i32_228 = arith.constant 0 : i32
    %657 = arith.cmpi ne, %656, %c0_i32_228 : i32
    scf.if %657 {
      %c0_229 = arith.constant 0 : index
      %c0_230 = arith.constant 0 : index
      %658 = vector.load %arg8[%c0_229, %c0_230] : memref<16x128xf32, #tpu.memory_space<vmem>>, vector<16x128xf32>
      tpu.vector_store %arg8[%c0_229, %c0_230], %648 {strides = array<i32>} : memref<16x128xf32, #tpu.memory_space<vmem>>, vector<16x128xf32>,
    } else {
    }
    return
  }
  func.func @transform_0(%arg0: i32) -> (i32, i32) {
    %c0_i32 = arith.constant 0 : i32
    %c0_i32_0 = arith.constant 0 : i32
    return %arg0, %c0_i32 : i32, i32
  }
  func.func @transform_1(%arg0: i32) -> (i32, i32) {
    %c0_i32 = arith.constant 0 : i32
    %c0_i32_0 = arith.constant 0 : i32
    %c0_i32_1 = arith.constant 0 : i32
    return %c0_i32, %c0_i32_0 : i32, i32
  }
  func.func @transform_2(%arg0: i32) -> (i32, i32) {
    %c0_i32 = arith.constant 0 : i32
    %c0_i32_0 = arith.constant 0 : i32
    %c0_i32_1 = arith.constant 0 : i32
    return %c0_i32, %c0_i32_0 : i32, i32
  }
  func.func @transform_3(%arg0: i32) -> (i32, i32) {
    %c0_i32 = arith.constant 0 : i32
    %c0_i32_0 = arith.constant 0 : i32
    %c0_i32_1 = arith.constant 0 : i32
    return %c0_i32, %c0_i32_0 : i32, i32
  }
  func.func @transform_4(%arg0: i32) -> (i32, i32) {
    %c0_i32 = arith.constant 0 : i32
    %c0_i32_0 = arith.constant 0 : i32
    %c0_i32_1 = arith.constant 0 : i32
    return %c0_i32, %c0_i32_0 : i32, i32
  }
  func.func @transform_5(%arg0: i32) -> (i32, i32) {
    %c0_i32 = arith.constant 0 : i32
    %c0_i32_0 = arith.constant 0 : i32
    %c0_i32_1 = arith.constant 0 : i32
    return %c0_i32, %c0_i32_0 : i32, i32
  }
  func.func @transform_6(%arg0: i32) -> (i32, i32) {
    %c0_i32 = arith.constant 0 : i32
    %c0_i32_0 = arith.constant 0 : i32
    return %arg0, %c0_i32 : i32, i32
  }
  func.func @transform_7(%arg0: i32) -> (i32, i32) {
    %c0_i32 = arith.constant 0 : i32
    %c0_i32_0 = arith.constant 0 : i32
    %c0_i32_1 = arith.constant 0 : i32
    return %c0_i32, %c0_i32_0 : i32, i32
  }
}

</mosaic_0001>

<bundles_post_ra>
// kernel: tpu_custom_call.1
= control target key start
LH: loop header
LB: loop body
LE: loop exit
PB: predicated region body
PF: predicated region fallthrough
CT: control target
= control target key end

     0   :  { %13 = vsyncpa [#allocation6], 0  ;;  %s5878_s0 = inlined_call_operand.hbm [shape: bf16[256,128], index: 0, kind: input, shape index: {}]   ;;  %s5879_s1 = inlined_call_operand.hbm [shape: bf16[128,512], index: 1, kind: input, shape index: {}]   ;;  %s5880_s2 = inlined_call_operand.hbm [shape: bf16[128,512], index: 2, kind: input, shape index: {}]   ;;  %s5881_s3 = inlined_call_operand.vmem [shape: f32[1,512], index: 3, kind: input, shape index: {}]   ;;  %s5882_s4 = inlined_call_operand.hbm [shape: f32[16,128], index: 4, kind: input, shape index: {}]   ;;  %s5883_s5 = inlined_call_operand.hbm [shape: f32[16,128], index: 5, kind: input, shape index: {}]   ;;  %s5884_s6 = inlined_call_operand.hbm [shape: f32[256,128], index: 6, kind: output, shape index: {0}]   ;;  %s5885_s7 = inlined_call_operand.hbm [shape: f32[16,128], index: 7, kind: output, shape index: {1}]  }
   0x1   :  { %14 = vsyncpa [#allocation9], 0 }
   0x2   :  { %15 = vsyncpa [#allocation12], 0 }
   0x3   :  { %16 = vsyncpa [#allocation7], 0 }
   0x4   :  { %17 = vsyncpa [#allocation16], 0  ;;  %s4310_s24 = smov [#allocation8]  }
   0x5   :  { %s35_s25 = sshll.u32 %s4310_s24, 4  ;;  %s36_s25 = int_to_ptr.vmem [resolvable:$true] %s35_s25 }
   0x6   :  { %s4168_s26 = scalar_lea.vmem %s36_s25, 4096  ;;  %p4173_p1 = scmp.lt.s32.totalorder %s36_s25, %s36_s25 }
   0x7   :  { %p4169_p0 = scmp.ne.s32.totalorder %s36_s25, %s4168_s26  ;;  %p4174_p2 = scmp.lt.s32.totalorder %s4168_s26, %s4168_s26 }
   0x9   :  { %p4175_p3 = por %p4174_p2, %p4173_p1 }
   0xb   :  { %p4176_p4 = pnand %p4175_p3, %p4169_p0 }
   0xd   :  { %4179 = shalt.err (!%p4176_p4)
}
   0xe   :  { %s4311_s27 = smov 256   ;;  %s4312_s28 = smov 16  }
   0xf   :  { %41 = dma.hbm_to_vmem [thread:$0]  %s5879_s1, 4096, %s36_s25, [#allocation9], %s4311_s27, %s4311_s27, %s4312_s28  }
  0x10   :  { %s4313_s8 = smov [#allocation11]  }
  0x11   :  { %s61_s9 = sshll.u32 %s4313_s8, 4  ;;  %s62_s9 = int_to_ptr.vmem [resolvable:$true] %s61_s9 }
  0x12   :  { %s4188_s10 = scalar_lea.vmem %s62_s9, 256  ;;  %p4193_p6 = scmp.lt.s32.totalorder %s62_s9, %s62_s9 }
  0x13   :  { %p4189_p5 = scmp.ne.s32.totalorder %s62_s9, %s4188_s10  ;;  %p4194_p7 = scmp.lt.s32.totalorder %s4188_s10, %s4188_s10 }
  0x15   :  { %p4195_p8 = por %p4194_p7, %p4193_p6 }
  0x17   :  { %p4196_p9 = pnand %p4195_p8, %p4189_p5 }
  0x19   :  { %4199 = shalt.err (!%p4196_p9)
}
  0x1a   :  { %s4314_s11 = smov 128   ;;  %s4315_s12 = smov 8  }
  0x1b   :  { %67 = dma.hbm_to_vmem [thread:$0]  %s5882_s4, 256, %s62_s9, [#allocation12], %s4314_s11, %s4314_s11, %s4315_s12  }
  0x1c   :  { %s4316_s1 = smov [#allocation5]  }
  0x1d   :  { %s23_s15 = sshll.u32 %s4316_s1, 4  ;;  %s24_s15 = int_to_ptr.vmem [resolvable:$true] %s23_s15 }
  0x1e   :  { %s4208_s16 = scalar_lea.vmem %s24_s15, 2048  ;;  %p4213_p11 = scmp.lt.s32.totalorder %s24_s15, %s24_s15 }
  0x1f   :  { %p4209_p10 = scmp.ne.s32.totalorder %s24_s15, %s4208_s16  ;;  %p4214_p12 = scmp.lt.s32.totalorder %s4208_s16, %s4208_s16 }
  0x21   :  { %p4215_p13 = por %p4214_p12, %p4213_p11 }
  0x23   :  { %p4216_p0 = pnand %p4215_p13, %p4209_p10 }
  0x25   :  { %4219 = shalt.err (!%p4216_p0)
}
  0x26   :  { %s4317_s17 = smov 64   ;;  %s4318_s18 = smov 4  }
  0x27   :  { %29 = dma.hbm_to_vmem [thread:$0]  %s5878_s0, 2048, %s24_s15, [#allocation6], %s4317_s17, %s4317_s17, %s4318_s18  }
  0x28   :  { %s4319_s21 = smov [#allocation10]   ;;  %s4320_s4 = smov [#allocation13]  }
  0x29   :  { %s47_s22 = sshll.u32 %s4319_s21, 4  ;;  %s73_s23 = sshll.u32 %s4320_s4, 4  ;;  %s48_s22 = int_to_ptr.vmem [resolvable:$true] %s47_s22  ;;  %s74_s23 = int_to_ptr.vmem [resolvable:$true] %s73_s23 }
  0x2a   :  { %s4228_s24 = scalar_lea.vmem %s48_s22, 4096  ;;  %p4233_p2 = scmp.lt.s32.totalorder %s48_s22, %s48_s22 }
  0x2b   :  { %p4229_p1 = scmp.ne.s32.totalorder %s48_s22, %s4228_s24  ;;  %p4234_p3 = scmp.lt.s32.totalorder %s4228_s24, %s4228_s24 }
  0x2d   :  { %p4235_p4 = por %p4234_p3, %p4233_p2 }
  0x2f   :  { %p4236_p5 = pnand %p4235_p4, %p4229_p1 }
  0x31   :  { %4239 = shalt.err (!%p4236_p5)
}
  0x32   :  { %53 = dma.hbm_to_vmem [thread:$0]  %s5880_s2, 4096, %s48_s22, [#allocation9], %s4311_s27, %s4311_s27, %s4312_s28  }
  0x33   :  { %s4248_s0 = scalar_lea.vmem %s74_s23, 256  ;;  %p4253_p7 = scmp.lt.s32.totalorder %s74_s23, %s74_s23 }
  0x34   :  { %p4249_p6 = scmp.ne.s32.totalorder %s74_s23, %s4248_s0  ;;  %p4254_p8 = scmp.lt.s32.totalorder %s4248_s0, %s4248_s0 }
  0x36   :  { %p4255_p9 = por %p4254_p8, %p4253_p7 }
  0x38   :  { %p4256_p10 = pnand %p4255_p9, %p4249_p6 }
  0x3a   :  { %4259 = shalt.err (!%p4256_p10)
}
  0x3b   :  { %79 = dma.hbm_to_vmem [thread:$0]  %s5883_s5, 256, %s74_s23, [#allocation12], %s4314_s11, %s4314_s11, %s4315_s12  }
  0x3c   :  { %4300 = dma.done.wait [#allocation6], 2048  }
  0x3d   :  { %4301 = vsyncadd [#allocation6], 4294965248 }
  0x3e   :  { %4302 = dma.done.wait [#allocation9], 8192  }
  0x3f   :  { %4303 = vsyncadd [#allocation9], 4294959104 }
  0x40   :  { %4304 = dma.done.wait [#allocation12], 512  }
  0x41   :  { %4305 = vsyncadd [#allocation12], 4294966784  ;;  %v5886_v0 = vmov 0   ;;  %v3632_v1 = vld [vmem:[#allocation8 + $0xe4] ss:$16 sps:$4 sm:$0xff]   ;;  %v3684_v44 = vld [vmem:[#allocation5 + $0x8] sm:$0xff]  }
  0x42   :  { %482 = vmatprep.mubr.bf16.mxu0 %v5886_v0  ;;  %675 = vmatprep.mubr.bf16.mxu1 %v5886_v0  ;;  %v3634_v2 = vld [vmem:[#allocation8 + $0xec] ss:$16 sps:$4 sm:$0xff]   ;;  %v3636_v3 = vld [vmem:[#allocation8 + $0xe0] ss:$16 sps:$4 sm:$0xff]   ;;  %v3637_v4 = vld [vmem:[#allocation8 + $0xe8] ss:$16 sps:$4 sm:$0xff]  }
  0x43   :  { %450 = vmatprep.subr.bf16.mxu0 %v3632_v1  ;;  %643 = vmatprep.subr.bf16.mxu1 %v3634_v2  ;;  %v3638_v5 = vld [vmem:[#allocation8 + $0xc4] ss:$16 sps:$4 sm:$0xff]   ;;  %v3640_v6 = vld [vmem:[#allocation8 + $0xcc] ss:$16 sps:$4 sm:$0xff]   ;;  %v3642_v7 = vld [vmem:[#allocation8 + $0xc0] ss:$16 sps:$4 sm:$0xff]  }
  0x44   :  { %451 = vmatpush1.bf16.msra.mxu0 %v3636_v3  ;;  %644 = vmatpush1.bf16.msra.mxu1 %v3637_v4  ;;  %v3643_v8 = vld [vmem:[#allocation8 + $0xc8] ss:$16 sps:$4 sm:$0xff]   ;;  %v3644_v9 = vld [vmem:[#allocation8 + $0xa4] ss:$16 sps:$4 sm:$0xff]   ;;  %v3646_v10 = vld [vmem:[#allocation8 + $0xac] ss:$16 sps:$4 sm:$0xff]  }
  0x45   :  { %452 = vmatprep.subr.bf16.mxu0 %v3638_v5  ;;  %645 = vmatprep.subr.bf16.mxu1 %v3640_v6  ;;  %v3648_v11 = vld [vmem:[#allocation8 + $0xa0] ss:$16 sps:$4 sm:$0xff]   ;;  %v3649_v12 = vld [vmem:[#allocation8 + $0xa8] ss:$16 sps:$4 sm:$0xff]   ;;  %v3650_v13 = vld [vmem:[#allocation8 + $0x84] ss:$16 sps:$4 sm:$0xff]  }
  0x46   :  { %v3652_v14 = vld [vmem:[#allocation8 + $0x8c] ss:$16 sps:$4 sm:$0xff]   ;;  %v3654_v15 = vld [vmem:[#allocation8 + $0x80] ss:$16 sps:$4 sm:$0xff]   ;;  %v3655_v16 = vld [vmem:[#allocation8 + $0x88] ss:$16 sps:$4 sm:$0xff]  }
  0x47   :  { %v3656_v17 = vld [vmem:[#allocation8 + $0x64] ss:$16 sps:$4 sm:$0xff]   ;;  %v3658_v18 = vld [vmem:[#allocation8 + $0x6c] ss:$16 sps:$4 sm:$0xff]   ;;  %v3660_v19 = vld [vmem:[#allocation8 + $0x60] ss:$16 sps:$4 sm:$0xff]  }
  0x48   :  { %453 = vmatpush1.bf16.msra.mxu0 %v3642_v7  ;;  %646 = vmatpush1.bf16.msra.mxu1 %v3643_v8  ;;  %v3661_v20 = vld [vmem:[#allocation8 + $0x68] ss:$16 sps:$4 sm:$0xff]   ;;  %v3662_v21 = vld [vmem:[#allocation8 + $0x44] ss:$16 sps:$4 sm:$0xff]   ;;  %v3664_v22 = vld [vmem:[#allocation8 + $0x4c] ss:$16 sps:$4 sm:$0xff]  }
  0x49   :  { %454 = vmatprep.subr.bf16.mxu0 %v3644_v9  ;;  %647 = vmatprep.subr.bf16.mxu1 %v3646_v10  ;;  %v3666_v23 = vld [vmem:[#allocation8 + $0x40] ss:$16 sps:$4 sm:$0xff]   ;;  %v3667_v24 = vld [vmem:[#allocation8 + $0x48] ss:$16 sps:$4 sm:$0xff]   ;;  %v3668_v25 = vld [vmem:[#allocation8 + $0x24] ss:$16 sps:$4 sm:$0xff]  }
  0x4a   :  { %v3670_v26 = vld [vmem:[#allocation8 + $0x2c] ss:$16 sps:$4 sm:$0xff]   ;;  %v3672_v27 = vld [vmem:[#allocation8 + $0x20] ss:$16 sps:$4 sm:$0xff]   ;;  %v3673_v28 = vld [vmem:[#allocation8 + $0x28] ss:$16 sps:$4 sm:$0xff]  }
  0x4b   :  { %v3674_v29 = vld [vmem:[#allocation8 + $0x4] ss:$16 sps:$4 sm:$0xff]   ;;  %v3676_v30 = vld [vmem:[#allocation8 + $0xc] ss:$16 sps:$4 sm:$0xff]   ;;  %v3678_v31 = vld [vmem:[#allocation8] ss:$16 sps:$4 sm:$0xff]  }
  0x4c   :  { %455 = vmatpush1.bf16.msra.mxu0 %v3648_v11  ;;  %648 = vmatpush1.bf16.msra.mxu1 %v3649_v12  ;;  %v3679_v32 = vld [vmem:[#allocation8 + $0x8] ss:$16 sps:$4 sm:$0xff]   ;;  %v4393_v33 = vld [vmem:[#allocation10 + $0xe4] ss:$16 sps:$4 sm:$0xff]   ;;  %v4395_v34 = vld [vmem:[#allocation10 + $0xec] ss:$16 sps:$4 sm:$0xff]  }
  0x4d   :  { %456 = vmatprep.subr.bf16.mxu0 %v3650_v13  ;;  %649 = vmatprep.subr.bf16.mxu1 %v3652_v14  ;;  %v3680_v35 = vld [vmem:[#allocation5] sm:$0xff]   ;;  %v4399_v37 = vld [vmem:[#allocation10 + $0xe8] ss:$16 sps:$4 sm:$0xff]   ;;  %v4405_v39 = vld [vmem:[#allocation10 + $0xcc] ss:$16 sps:$4 sm:$0xff]  }
  0x4e   :  { %v4397_v36 = vld [vmem:[#allocation10 + $0xe0] ss:$16 sps:$4 sm:$0xff]   ;;  %v4403_v38 = vld [vmem:[#allocation10 + $0xc4] ss:$16 sps:$4 sm:$0xff]   ;;  %v4413_v41 = vld [vmem:[#allocation10 + $0xc8] ss:$16 sps:$4 sm:$0xff]  }
  0x4f   :  { %v4409_v40 = vld [vmem:[#allocation10 + $0xc0] ss:$16 sps:$4 sm:$0xff]   ;;  %v4415_v42 = vld [vmem:[#allocation10 + $0xa4] ss:$16 sps:$4 sm:$0xff]   ;;  %v4419_v43 = vld [vmem:[#allocation10 + $0xac] ss:$16 sps:$4 sm:$0xff]  }
  0x50   :  { %457 = vmatpush1.bf16.msra.mxu0 %v3654_v15  ;;  %650 = vmatpush1.bf16.msra.mxu1 %v3655_v16  ;;  %v4421_v45 = vld [vmem:[#allocation10 + $0xa0] ss:$16 sps:$4 sm:$0xff]   ;;  %v4424_v46 = vld [vmem:[#allocation10 + $0xa8] ss:$16 sps:$4 sm:$0xff]   ;;  %v4428_v47 = vld [vmem:[#allocation10 + $0x84] ss:$16 sps:$4 sm:$0xff]  }
  0x51   :  { %458 = vmatprep.subr.bf16.mxu0 %v3656_v17  ;;  %651 = vmatprep.subr.bf16.mxu1 %v3658_v18  ;;  %v4431_v48 = vld [vmem:[#allocation10 + $0x8c] ss:$16 sps:$4 sm:$0xff]   ;;  %v4435_v49 = vld [vmem:[#allocation10 + $0x80] ss:$16 sps:$4 sm:$0xff]   ;;  %v4439_v51 = vld [vmem:[#allocation10 + $0x88] ss:$16 sps:$4 sm:$0xff]  }
  0x52   :  { %v3688_v50 = vld [vmem:[#allocation5 + $0x10] sm:$0xff]   ;;  %v4445_v53 = vld [vmem:[#allocation10 + $0x6c] ss:$16 sps:$4 sm:$0xff]   ;;  %v4449_v55 = vld [vmem:[#allocation10 + $0x68] ss:$16 sps:$4 sm:$0xff]  }
  0x53   :  { %v4443_v52 = vld [vmem:[#allocation10 + $0x64] ss:$16 sps:$4 sm:$0xff]   ;;  %v4447_v54 = vld [vmem:[#allocation10 + $0x60] ss:$16 sps:$4 sm:$0xff]   ;;  %v4457_v57 = vld [vmem:[#allocation10 + $0x4c] ss:$16 sps:$4 sm:$0xff]  }
  0x54   :  { %459 = vmatpush1.bf16.msra.mxu0 %v3660_v19  ;;  %652 = vmatpush1.bf16.msra.mxu1 %v3661_v20  ;;  %v4453_v56 = vld [vmem:[#allocation10 + $0x44] ss:$16 sps:$4 sm:$0xff]   ;;  %v4461_v58 = vld [vmem:[#allocation10 + $0x40] ss:$16 sps:$4 sm:$0xff]   ;;  %v4465_v59 = vld [vmem:[#allocation10 + $0x48] ss:$16 sps:$4 sm:$0xff]  }
  0x55   :  { %460 = vmatprep.subr.bf16.mxu0 %v3662_v21  ;;  %653 = vmatprep.subr.bf16.mxu1 %v3664_v22  ;;  %v4467_v60 = vld [vmem:[#allocation10 + $0x24] ss:$16 sps:$4 sm:$0xff]   ;;  %v4471_v61 = vld [vmem:[#allocation10 + $0x2c] ss:$16 sps:$4 sm:$0xff]   ;;  %v4473_v63 = vld [vmem:[#allocation10 + $0x20] ss:$16 sps:$4 sm:$0xff]  }
  0x56   :  { %v3692_v62 = vld [vmem:[#allocation5 + $0x18] sm:$0xff]   ;;  %v4481_v2 = vld [vmem:[#allocation10 + $0x4] ss:$16 sps:$4 sm:$0xff]   ;;  %v4489_v4 = vld [vmem:[#allocation10] ss:$16 sps:$4 sm:$0xff]  }
  0x57   :  { %v4477_v1 = vld [vmem:[#allocation10 + $0x28] ss:$16 sps:$4 sm:$0xff]   ;;  %v4483_v3 = vld [vmem:[#allocation10 + $0xc] ss:$16 sps:$4 sm:$0xff]   ;;  %v3696_v6 = vld [vmem:[#allocation5 + $0x20] sm:$0xff]  }
  0x58   :  { %461 = vmatpush1.bf16.msra.mxu0 %v3666_v23  ;;  %654 = vmatpush1.bf16.msra.mxu1 %v3667_v24  ;;  %v4491_v5 = vld [vmem:[#allocation10 + $0x8] ss:$16 sps:$4 sm:$0xff]   ;;  %v3704_v8 = vld [vmem:[#allocation5 + $0x30] sm:$0xff]   ;;  %v3712_v10 = vld [vmem:[#allocation5 + $0x40] sm:$0xff]  }
  0x59   :  { %462 = vmatprep.subr.bf16.mxu0 %v3668_v25  ;;  %655 = vmatprep.subr.bf16.mxu1 %v3670_v26  ;;  %v3700_v7 = vld [vmem:[#allocation5 + $0x28] sm:$0xff]   ;;  %v3708_v9 = vld [vmem:[#allocation5 + $0x38] sm:$0xff]   ;;  %v3720_v12 = vld [vmem:[#allocation5 + $0x50] sm:$0xff]  }
  0x5a   :  { %v3716_v11 = vld [vmem:[#allocation5 + $0x48] sm:$0xff]   ;;  %v3724_v13 = vld [vmem:[#allocation5 + $0x58] sm:$0xff]   ;;  %v3728_v14 = vld [vmem:[#allocation5 + $0x60] sm:$0xff]  }
  0x5b   :  { %v3732_v15 = vld [vmem:[#allocation5 + $0x68] sm:$0xff]   ;;  %v3736_v16 = vld [vmem:[#allocation5 + $0x70] sm:$0xff]   ;;  %v3740_v17 = vld [vmem:[#allocation5 + $0x78] sm:$0xff]  }
  0x5c   :  { %463 = vmatpush1.bf16.msra.mxu0 %v3672_v27  ;;  %656 = vmatpush1.bf16.msra.mxu1 %v3673_v28  ;;  %v100_v18 = vld [vmem:[#allocation11] sm:$0xff]  ;;  %v101_v19 = vld [vmem:[#allocation11 + $0x8] sm:$0xff] }
  0x5d   :  { %464 = vmatprep.subr.bf16.mxu0 %v3674_v29  ;;  %657 = vmatprep.subr.bf16.mxu1 %v3676_v30  ;;  %v1011_v20 = vpack.c.bf16 %v101_v19, %v100_v18 }
  0x60   :  { %465 = vmatpush1.bf16.msra.mxu0 %v3678_v31  ;;  %658 = vmatpush1.bf16.msra.mxu1 %v3679_v32 }
  0x61   :  { %1172 = vmatprep.subr.bf16.mxu0 %v4393_v33  ;;  %1215 = vmatprep.subr.bf16.mxu1 %v4395_v34 }
  0x63   :  { %483 = vmatmul.mubr.bf16.vlgmr.msra.gmra.mxu0 %v3680_v35  ;;  %676 = vmatmul.mubr.bf16.vlgmr.msra.gmra.mxu1 %v3680_v35 }
  0x64   :  { %1173 = vmatpush1.bf16.msra.mxu0 %v4397_v36  ;;  %492 = vmatprep.mubr.bf16.mxu0 %v5886_v0 }
  0x65   :  { %685 = vmatprep.mubr.bf16.mxu1 %v5886_v0  ;;  %1216 = vmatpush1.bf16.msra.mxu1 %v4399_v37 }
  0x66   :  { %1174 = vmatprep.subr.bf16.mxu0 %v4403_v38  ;;  %1217 = vmatprep.subr.bf16.mxu1 %v4405_v39 }
  0x68   :  { %1175 = vmatpush1.bf16.msra.mxu0 %v4409_v40 }
  0x69   :  { %1218 = vmatpush1.bf16.msra.mxu1 %v4413_v41  ;;  %1176 = vmatprep.subr.bf16.mxu0 %v4415_v42 }
  0x6a   :  { %1219 = vmatprep.subr.bf16.mxu1 %v4419_v43 }
  0x6b   :  { %493 = vmatmul.mubr.bf16.gmra.mxu0 %v3684_v44  ;;  %686 = vmatmul.mubr.bf16.gmra.mxu1 %v3684_v44 }
  0x6c   :  { %502 = vmatprep.mubr.bf16.mxu0 %v5886_v0  ;;  %695 = vmatprep.mubr.bf16.mxu1 %v5886_v0 }
  0x6d   :  { %1177 = vmatpush1.bf16.msra.mxu0 %v4421_v45  ;;  %1220 = vmatpush1.bf16.msra.mxu1 %v4424_v46 }
  0x6e   :  { %1178 = vmatprep.subr.bf16.mxu0 %v4428_v47  ;;  %1221 = vmatprep.subr.bf16.mxu1 %v4431_v48 }
  0x71   :  { %1179 = vmatpush1.bf16.msra.mxu0 %v4435_v49  ;;  %1222 = vmatpush1.bf16.msra.mxu1 %v4439_v51 }
  0x72   :  { %1180 = vmatprep.subr.bf16.mxu0 %v4443_v52  ;;  %1223 = vmatprep.subr.bf16.mxu1 %v4445_v53 }
  0x73   :  { %503 = vmatmul.mubr.bf16.gmra.mxu0 %v3688_v50  ;;  %696 = vmatmul.mubr.bf16.gmra.mxu1 %v3688_v50 }
  0x74   :  { %512 = vmatprep.mubr.bf16.mxu0 %v5886_v0  ;;  %705 = vmatprep.mubr.bf16.mxu1 %v5886_v0 }
  0x75   :  { %1181 = vmatpush1.bf16.msra.mxu0 %v4447_v54  ;;  %1224 = vmatpush1.bf16.msra.mxu1 %v4449_v55 }
  0x76   :  { %1182 = vmatprep.subr.bf16.mxu0 %v4453_v56  ;;  %1225 = vmatprep.subr.bf16.mxu1 %v4457_v57 }
  0x79   :  { %1183 = vmatpush1.bf16.msra.mxu0 %v4461_v58  ;;  %1226 = vmatpush1.bf16.msra.mxu1 %v4465_v59 }
  0x7a   :  { %1184 = vmatprep.subr.bf16.mxu0 %v4467_v60  ;;  %1227 = vmatprep.subr.bf16.mxu1 %v4471_v61 }
  0x7b   :  { %513 = vmatmul.mubr.bf16.gmra.mxu0 %v3692_v62  ;;  %706 = vmatmul.mubr.bf16.gmra.mxu1 %v3692_v62 }
  0x7c   :  { %522 = vmatprep.mubr.bf16.mxu0 %v5886_v0  ;;  %715 = vmatprep.mubr.bf16.mxu1 %v5886_v0 }
  0x7d   :  { %1185 = vmatpush1.bf16.msra.mxu0 %v4473_v63  ;;  %1228 = vmatpush1.bf16.msra.mxu1 %v4477_v1 }
  0x7e   :  { %1186 = vmatprep.subr.bf16.mxu0 %v4481_v2  ;;  %1229 = vmatprep.subr.bf16.mxu1 %v4483_v3 }
  0x81   :  { %1187 = vmatpush1.bf16.msra.mxu0 %v4489_v4  ;;  %1230 = vmatpush1.bf16.msra.mxu1 %v4491_v5 }
  0x82   :  { %1316 = vmatprep.subr.bf16.mxu0 %v4393_v33  ;;  %1359 = vmatprep.subr.bf16.mxu1 %v4395_v34 }
  0x83   :  { %523 = vmatmul.mubr.bf16.gmra.mxu0 %v3696_v6  ;;  %716 = vmatmul.mubr.bf16.gmra.mxu1 %v3696_v6 }
  0x84   :  { %532 = vmatprep.mubr.bf16.mxu0 %v5886_v0  ;;  %725 = vmatprep.mubr.bf16.mxu1 %v5886_v0 }
  0x8b   :  { %533 = vmatmul.mubr.bf16.gmra.mxu0 %v3700_v7  ;;  %726 = vmatmul.mubr.bf16.gmra.mxu1 %v3700_v7 }
  0x8c   :  { %542 = vmatprep.mubr.bf16.mxu0 %v5886_v0  ;;  %735 = vmatprep.mubr.bf16.mxu1 %v5886_v0 }
  0x93   :  { %543 = vmatmul.mubr.bf16.gmra.mxu0 %v3704_v8  ;;  %736 = vmatmul.mubr.bf16.gmra.mxu1 %v3704_v8 }
  0x94   :  { %552 = vmatprep.mubr.bf16.mxu0 %v5886_v0  ;;  %745 = vmatprep.mubr.bf16.mxu1 %v5886_v0 }
  0x9b   :  { %553 = vmatmul.mubr.bf16.gmra.mxu0 %v3708_v9  ;;  %746 = vmatmul.mubr.bf16.gmra.mxu1 %v3708_v9 }
  0x9c   :  { %562 = vmatprep.mubr.bf16.mxu0 %v5886_v0  ;;  %755 = vmatprep.mubr.bf16.mxu1 %v5886_v0 }
  0xa3   :  { %563 = vmatmul.mubr.bf16.gmra.mxu0 %v3712_v10  ;;  %756 = vmatmul.mubr.bf16.gmra.mxu1 %v3712_v10 }
  0xa4   :  { %572 = vmatprep.mubr.bf16.mxu0 %v5886_v0  ;;  %765 = vmatprep.mubr.bf16.mxu1 %v5886_v0 }
  0xab   :  { %573 = vmatmul.mubr.bf16.gmra.mxu0 %v3716_v11  ;;  %766 = vmatmul.mubr.bf16.gmra.mxu1 %v3716_v11 }
  0xac   :  { %582 = vmatprep.mubr.bf16.mxu0 %v5886_v0  ;;  %775 = vmatprep.mubr.bf16.mxu1 %v5886_v0 }
  0xb3   :  { %583 = vmatmul.mubr.bf16.gmra.mxu0 %v3720_v12  ;;  %776 = vmatmul.mubr.bf16.gmra.mxu1 %v3720_v12 }
  0xb4   :  { %592 = vmatprep.mubr.bf16.mxu0 %v5886_v0  ;;  %785 = vmatprep.mubr.bf16.mxu1 %v5886_v0 }
  0xbb   :  { %593 = vmatmul.mubr.bf16.gmra.mxu0 %v3724_v13  ;;  %786 = vmatmul.mubr.bf16.gmra.mxu1 %v3724_v13 }
  0xbc   :  { %602 = vmatprep.mubr.bf16.mxu0 %v5886_v0  ;;  %795 = vmatprep.mubr.bf16.mxu1 %v5886_v0 }
  0xc3   :  { %603 = vmatmul.mubr.bf16.gmra.mxu0 %v3728_v14  ;;  %796 = vmatmul.mubr.bf16.gmra.mxu1 %v3728_v14 }
  0xc4   :  { %612 = vmatprep.mubr.bf16.mxu0 %v5886_v0  ;;  %805 = vmatprep.mubr.bf16.mxu1 %v5886_v0 }
  0xcb   :  { %613 = vmatmul.mubr.bf16.gmra.mxu0 %v3732_v15  ;;  %806 = vmatmul.mubr.bf16.gmra.mxu1 %v3732_v15 }
  0xcc   :  { %622 = vmatprep.mubr.bf16.mxu0 %v5886_v0  ;;  %815 = vmatprep.mubr.bf16.mxu1 %v5886_v0 }
  0xd3   :  { %623 = vmatmul.mubr.bf16.gmra.mxu0 %v3736_v16  ;;  %816 = vmatmul.mubr.bf16.gmra.mxu1 %v3736_v16 }
  0xd4   :  { %632 = vmatprep.mubr.bf16.mxu0 %v5886_v0  ;;  %825 = vmatprep.mubr.bf16.mxu1 %v5886_v0 }
  0xdb   :  { %633 = vmatmul.mubr.bf16.gmra.mxu0 %v3740_v17  ;;  %826 = vmatmul.mubr.bf16.gmra.mxu1 %v3740_v17 }
  0xdc   :  { %1204 = vmatprep.mubr.bf16.mxu0 %v5886_v0  ;;  %1247 = vmatprep.mubr.bf16.mxu1 %v5886_v0 }
  0xe3   :  { %1205 = vmatmul.mubr.bf16.vlgmr.msra.gmra.mxu0 %v1011_v20  ;;  %1248 = vmatmul.mubr.bf16.vlgmr.msra.gmra.mxu1 %v1011_v20 }
  0xe4   :  { %1317 = vmatpush1.bf16.msra.mxu0 %v4397_v36  ;;  %1360 = vmatpush1.bf16.msra.mxu1 %v4399_v37 }
  0xe5   :  { %1318 = vmatprep.subr.bf16.mxu0 %v4403_v38  ;;  %1361 = vmatprep.subr.bf16.mxu1 %v4405_v39 }
  0xe6   :  { %1348 = vmatprep.mubr.bf16.mxu0 %v5886_v0  ;;  %1391 = vmatprep.mubr.bf16.mxu1 %v5886_v0 }
  0xe8   :  { %1319 = vmatpush1.bf16.msra.mxu0 %v4409_v40  ;;  %1362 = vmatpush1.bf16.msra.mxu1 %v4413_v41 }
  0xe9   :  { %1320 = vmatprep.subr.bf16.mxu0 %v4415_v42  ;;  %1363 = vmatprep.subr.bf16.mxu1 %v4419_v43 }
  0xec   :  { %1321 = vmatpush1.bf16.msra.mxu0 %v4421_v45  ;;  %1364 = vmatpush1.bf16.msra.mxu1 %v4424_v46 }
  0xed   :  { %1322 = vmatprep.subr.bf16.mxu0 %v4428_v47  ;;  %1365 = vmatprep.subr.bf16.mxu1 %v4431_v48 }
  0xf0   :  { %1323 = vmatpush1.bf16.msra.mxu0 %v4435_v49  ;;  %1366 = vmatpush1.bf16.msra.mxu1 %v4439_v51 }
  0xf1   :  { %1324 = vmatprep.subr.bf16.mxu0 %v4443_v52  ;;  %1367 = vmatprep.subr.bf16.mxu1 %v4445_v53 }
  0xf4   :  { %1325 = vmatpush1.bf16.msra.mxu0 %v4447_v54  ;;  %1368 = vmatpush1.bf16.msra.mxu1 %v4449_v55 }
  0xf5   :  { %1326 = vmatprep.subr.bf16.mxu0 %v4453_v56  ;;  %1369 = vmatprep.subr.bf16.mxu1 %v4457_v57 }
  0xf8   :  { %1327 = vmatpush1.bf16.msra.mxu0 %v4461_v58  ;;  %1370 = vmatpush1.bf16.msra.mxu1 %v4465_v59 }
  0xf9   :  { %1328 = vmatprep.subr.bf16.mxu0 %v4467_v60  ;;  %1371 = vmatprep.subr.bf16.mxu1 %v4471_v61 }
  0xfc   :  { %1329 = vmatpush1.bf16.msra.mxu0 %v4473_v63  ;;  %1372 = vmatpush1.bf16.msra.mxu1 %v4477_v1 }
  0xfd   :  { %1330 = vmatprep.subr.bf16.mxu0 %v4481_v2  ;;  %1373 = vmatprep.subr.bf16.mxu1 %v4483_v3 }
 0x100   :  { %1331 = vmatpush1.bf16.msra.mxu0 %v4489_v4  ;;  %1374 = vmatpush1.bf16.msra.mxu1 %v4491_v5 }
 0x101   :  { %1461 = vmatprep.subr.bf16.mxu0 %v4393_v33  ;;  %1504 = vmatprep.subr.bf16.mxu1 %v4395_v34 }
 0x123   :  { %v4557_v21 = vpop.f32.mrf.mxu0  ;;  %v4559_v22 = vpop.f32.mrf.mxu1 }
 0x125   :  { %v4561_v23 = vpop.f32.mrf.mxu0  ;;  %v4563_v24 = vpop.f32.mrf.mxu1 }
 0x127   :  { %v4565_v25 = vpop.f32.mrf.mxu0  ;;  %v4567_v26 = vpop.f32.mrf.mxu1 }
 0x129   :  { %v4569_v27 = vpop.f32.mrf.mxu0  ;;  %v4571_v28 = vpop.f32.mrf.mxu1 }
 0x12b   :  { %v4573_v29 = vpop.f32.mrf.mxu0  ;;  %v4575_v30 = vpop.f32.mrf.mxu1 }
 0x12d   :  { %v4577_v31 = vpop.f32.mrf.mxu0  ;;  %v4579_v32 = vpop.f32.mrf.mxu1 }
 0x12e   :  { %5888 = vst [vmem:[#allocation22_spill] sm:$0xff] %v4579_v32 }
 0x12f   :  { %v4581_v35 = vpop.f32.mrf.mxu0  ;;  %v4583_v44 = vpop.f32.mrf.mxu1 }
 0x130   :  { %5889 = vst [vmem:[#allocation23_spill] sm:$0xff] %v4581_v35  ;;  %5890 = vst [vmem:[#allocation24_spill] sm:$0xff] %v4583_v44 }
 0x131   :  { %v4585_v50 = vpop.f32.mrf.mxu0  ;;  %v4587_v62 = vpop.f32.mrf.mxu1 }
 0x132   :  { %5891 = vst [vmem:[#allocation25_spill] sm:$0xff] %v4585_v50  ;;  %5892 = vst [vmem:[#allocation26_spill] sm:$0xff] %v4587_v62 }
 0x133   :  { %v4589_v6 = vpop.f32.mrf.mxu0  ;;  %v4591_v7 = vpop.f32.mrf.mxu1 }
 0x134   :  { %5893 = vst [vmem:[#allocation27_spill] sm:$0xff] %v4589_v6  ;;  %5894 = vst [vmem:[#allocation28_spill] sm:$0xff] %v4591_v7 }
 0x135   :  { %v4593_v8 = vpop.f32.mrf.mxu0  ;;  %v4595_v9 = vpop.f32.mrf.mxu1 }
 0x136   :  { %5895 = vst [vmem:[#allocation29_spill] sm:$0xff] %v4593_v8  ;;  %5896 = vst [vmem:[#allocation30_spill] sm:$0xff] %v4595_v9 }
 0x137   :  { %v4597_v10 = vpop.f32.mrf.mxu0  ;;  %v4599_v11 = vpop.f32.mrf.mxu1 }
 0x138   :  { %5897 = vst [vmem:[#allocation31_spill] sm:$0xff] %v4597_v10  ;;  %5898 = vst [vmem:[#allocation32_spill] sm:$0xff] %v4599_v11 }
 0x139   :  { %v4601_v12 = vpop.f32.mrf.mxu0  ;;  %v4603_v13 = vpop.f32.mrf.mxu1 }
 0x13a   :  { %5899 = vst [vmem:[#allocation33_spill] sm:$0xff] %v4601_v12  ;;  %5900 = vst [vmem:[#allocation34_spill] sm:$0xff] %v4603_v13 }
 0x13b   :  { %v4605_v14 = vpop.f32.mrf.mxu0  ;;  %v4607_v15 = vpop.f32.mrf.mxu1 }
 0x13c   :  { %5901 = vst [vmem:[#allocation35_spill] sm:$0xff] %v4605_v14  ;;  %5902 = vst [vmem:[#allocation36_spill] sm:$0xff] %v4607_v15 }
 0x13d   :  { %v4609_v16 = vpop.f32.mrf.mxu0  ;;  %v4611_v17 = vpop.f32.mrf.mxu1 }
 0x13e   :  { %5903 = vst [vmem:[#allocation37_spill] sm:$0xff] %v4609_v16  ;;  %5904 = vst [vmem:[#allocation38_spill] sm:$0xff] %v4611_v17 }
 0x13f   :  { %v4613_v18 = vpop.f32.mrf.mxu0  ;;  %v4615_v19 = vpop.f32.mrf.mxu1 }
 0x140   :  { %5905 = vst [vmem:[#allocation39_spill] sm:$0xff] %v4613_v18  ;;  %5906 = vst [vmem:[#allocation40_spill] sm:$0xff] %v4615_v19 }
 0x141   :  { %v4617_v20 = vpop.f32.mrf.mxu0  ;;  %v4619_v0 = vpop.f32.mrf.mxu1 }
 0x142   :  { %5907 = vst [vmem:[#allocation41_spill] sm:$0xff] %v4617_v20  ;;  %5908 = vst [vmem:[#allocation42_spill] sm:$0xff] %v4619_v0 }
 0x143   :  { %v4621_v9 = vpop.f32.mrf.mxu0  ;;  %v4623_v11 = vpop.f32.mrf.mxu1 }
 0x144   :  { %5909 = vst [vmem:[#allocation43_spill] sm:$0xff] %v4621_v9  ;;  %5910 = vst [vmem:[#allocation44_spill] sm:$0xff] %v4623_v11 }
 0x145   :  { %v4625_v13 = vpop.f32.mrf.mxu0  ;;  %v4627_v14 = vpop.f32.mrf.mxu1 }
 0x146   :  { %5911 = vst [vmem:[#allocation45_spill] sm:$0xff] %v4625_v13  ;;  %5912 = vst [vmem:[#allocation46_spill] sm:$0xff] %v4627_v14 }
 0x147   :  { %v4629_v15 = vpop.f32.mrf.mxu0  ;;  %v4631_v16 = vpop.f32.mrf.mxu1 }
 0x148   :  { %5913 = vst [vmem:[#allocation47_spill] sm:$0xff] %v4629_v15  ;;  %5914 = vst [vmem:[#allocation48_spill] sm:$0xff] %v4631_v16 }
 0x149   :  { %v4633_v17 = vpop.f32.mrf.mxu0  ;;  %v4635_v18 = vpop.f32.mrf.mxu1 }
 0x14a   :  { %5915 = vst [vmem:[#allocation49_spill] sm:$0xff] %v4633_v17  ;;  %5916 = vst [vmem:[#allocation50_spill] sm:$0xff] %v4635_v18 }
 0x14b   :  { %v4637_v19 = vpop.f32.mrf.mxu0  ;;  %v4639_v20 = vpop.f32.mrf.mxu1 }
 0x14c   :  { %5917 = vst [vmem:[#allocation51_spill] sm:$0xff] %v4637_v19  ;;  %5918 = vst [vmem:[#allocation52_spill] sm:$0xff] %v4639_v20 }
 0x14d   :  { %v4641_v0 = vpop.f32.mrf.mxu0  ;;  %v4643_v9 = vpop.f32.mrf.mxu1 }
 0x14e   :  { %5919 = vst [vmem:[#allocation53_spill] sm:$0xff] %v4641_v0  ;;  %5920 = vst [vmem:[#allocation54_spill] sm:$0xff] %v4643_v9 }
 0x14f   :  { %v4645_v11 = vpop.f32.mrf.mxu0  ;;  %v4647_v13 = vpop.f32.mrf.mxu1 }
 0x150   :  { %5921 = vst [vmem:[#allocation55_spill] sm:$0xff] %v4645_v11  ;;  %5922 = vst [vmem:[#allocation56_spill] sm:$0xff] %v4647_v13 }
 0x151   :  { %v4649_v14 = vpop.f32.mrf.mxu0  ;;  %v4651_v15 = vpop.f32.mrf.mxu1 }
 0x152   :  { %5923 = vst [vmem:[#allocation57_spill] sm:$0xff] %v4649_v14  ;;  %5924 = vst [vmem:[#allocation58_spill] sm:$0xff] %v4651_v15 }
 0x153   :  { %v4653_v16 = vpop.f32.mrf.mxu0  ;;  %v4655_v17 = vpop.f32.mrf.mxu1 }
 0x154   :  { %5925 = vst [vmem:[#allocation59_spill] sm:$0xff] %v4653_v16  ;;  %5926 = vst [vmem:[#allocation60_spill] sm:$0xff] %v4655_v17 }
 0x155   :  { %v4657_v18 = vpop.f32.mrf.mxu0  ;;  %v4659_v19 = vpop.f32.mrf.mxu1 }
 0x156   :  { %5927 = vst [vmem:[#allocation61_spill] sm:$0xff] %v4657_v18  ;;  %5928 = vst [vmem:[#allocation62_spill] sm:$0xff] %v4659_v19 }
 0x157   :  { %v4661_v20 = vpop.f32.mrf.mxu0  ;;  %v4663_v0 = vpop.f32.mrf.mxu1 }
 0x158   :  { %5929 = vst [vmem:[#allocation63_spill] sm:$0xff] %v4661_v20  ;;  %5930 = vst [vmem:[#allocation64_spill] sm:$0xff] %v4663_v0 }
 0x159   :  { %v4665_v9 = vpop.f32.mrf.mxu0  ;;  %v4667_v11 = vpop.f32.mrf.mxu1 }
 0x15a   :  { %5931 = vst [vmem:[#allocation65_spill] sm:$0xff] %v4665_v9  ;;  %5932 = vst [vmem:[#allocation66_spill] sm:$0xff] %v4667_v11 }
 0x15b   :  { %v4669_v13 = vpop.f32.mrf.mxu0  ;;  %v4671_v14 = vpop.f32.mrf.mxu1 }
 0x15c   :  { %5933 = vst [vmem:[#allocation67_spill] sm:$0xff] %v4669_v13  ;;  %5934 = vst [vmem:[#allocation68_spill] sm:$0xff] %v4671_v14 }
 0x15d   :  { %v4673_v15 = vpop.f32.mrf.mxu0  ;;  %v4675_v16 = vpop.f32.mrf.mxu1 }
 0x15e   :  { %5935 = vst [vmem:[#allocation69_spill] sm:$0xff] %v4673_v15  ;;  %5936 = vst [vmem:[#allocation70_spill] sm:$0xff] %v4675_v16 }
 0x15f   :  { %v4677_v17 = vpop.f32.mrf.mxu0  ;;  %v4679_v18 = vpop.f32.mrf.mxu1 }
 0x160   :  { %5937 = vst [vmem:[#allocation71_spill] sm:$0xff] %v4677_v17  ;;  %5938 = vst [vmem:[#allocation72_spill] sm:$0xff] %v4679_v18 }
 0x161   :  { %v4681_v19 = vpop.f32.mrf.mxu0  ;;  %v4683_v20 = vpop.f32.mrf.mxu1 }
 0x162   :  { %5939 = vst [vmem:[#allocation73_spill] sm:$0xff] %v4681_v19  ;;  %5940 = vst [vmem:[#allocation74_spill] sm:$0xff] %v4683_v20 }
 0x163   :  { %v4685_v0 = vpop.f32.mrf.mxu0  ;;  %v4687_v9 = vpop.f32.mrf.mxu1 }
 0x164   :  { %5941 = vst [vmem:[#allocation75_spill] sm:$0xff] %v4685_v0  ;;  %5942 = vst [vmem:[#allocation76_spill] sm:$0xff] %v4687_v9 }
 0x165   :  { %v4689_v11 = vpop.f32.mrf.mxu0  ;;  %v4691_v13 = vpop.f32.mrf.mxu1 }
 0x166   :  { %5943 = vst [vmem:[#allocation77_spill] sm:$0xff] %v4689_v11  ;;  %5944 = vst [vmem:[#allocation78_spill] sm:$0xff] %v4691_v13 }
 0x167   :  { %v4693_v14 = vpop.f32.mrf.mxu0  ;;  %v4695_v15 = vpop.f32.mrf.mxu1 }
 0x168   :  { %5945 = vst [vmem:[#allocation79_spill] sm:$0xff] %v4693_v14  ;;  %5946 = vst [vmem:[#allocation80_spill] sm:$0xff] %v4695_v15 }
 0x169   :  { %v4697_v16 = vpop.f32.mrf.mxu0  ;;  %v4699_v17 = vpop.f32.mrf.mxu1 }
 0x16a   :  { %5947 = vst [vmem:[#allocation81_spill] sm:$0xff] %v4697_v16  ;;  %5948 = vst [vmem:[#allocation82_spill] sm:$0xff] %v4699_v17 }
 0x16b   :  { %v4701_v18 = vpop.f32.mrf.mxu0  ;;  %v4703_v19 = vpop.f32.mrf.mxu1 }
 0x16c   :  { %5949 = vst [vmem:[#allocation83_spill] sm:$0xff] %v4701_v18  ;;  %5950 = vst [vmem:[#allocation84_spill] sm:$0xff] %v4703_v19 }
 0x16d   :  { %v4705_v20 = vpop.f32.mrf.mxu0  ;;  %v4707_v0 = vpop.f32.mrf.mxu1 }
 0x16e   :  { %5951 = vst [vmem:[#allocation85_spill] sm:$0xff] %v4705_v20  ;;  %5952 = vst [vmem:[#allocation86_spill] sm:$0xff] %v4707_v0 }
 0x16f   :  { %v4709_v9 = vpop.f32.mrf.mxu0  ;;  %v4711_v11 = vpop.f32.mrf.mxu1 }
 0x170   :  { %5953 = vst [vmem:[#allocation87_spill] sm:$0xff] %v4709_v9  ;;  %5954 = vst [vmem:[#allocation88_spill] sm:$0xff] %v4711_v11 }
 0x171   :  { %v4713_v13 = vpop.f32.mrf.mxu0  ;;  %v4715_v14 = vpop.f32.mrf.mxu1 }
 0x172   :  { %5955 = vst [vmem:[#allocation89_spill] sm:$0xff] %v4713_v13  ;;  %5956 = vst [vmem:[#allocation90_spill] sm:$0xff] %v4715_v14 }
 0x173   :  { %v4717_v15 = vpop.f32.mrf.mxu0  ;;  %v4719_v16 = vpop.f32.mrf.mxu1 }
 0x174   :  { %5957 = vst [vmem:[#allocation91_spill] sm:$0xff] %v4717_v15  ;;  %5958 = vst [vmem:[#allocation92_spill] sm:$0xff] %v4719_v16 }
 0x175   :  { %v4721_v17 = vpop.f32.mrf.mxu0  ;;  %v4723_v18 = vpop.f32.mrf.mxu1 }
 0x176   :  { %5959 = vst [vmem:[#allocation93_spill] sm:$0xff] %v4721_v17  ;;  %5960 = vst [vmem:[#allocation94_spill] sm:$0xff] %v4723_v18 }
 0x177   :  { %v4725_v19 = vpop.f32.mrf.mxu0  ;;  %v4727_v20 = vpop.f32.mrf.mxu1 }
 0x178   :  { %5961 = vst [vmem:[#allocation95_spill] sm:$0xff] %v4725_v19  ;;  %5962 = vst [vmem:[#allocation96_spill] sm:$0xff] %v4727_v20 }
 0x179   :  { %v4729_v0 = vpop.f32.mrf.mxu0  ;;  %v4731_v9 = vpop.f32.mrf.mxu1 }
 0x17a   :  { %5963 = vst [vmem:[#allocation97_spill] sm:$0xff] %v4729_v0  ;;  %5964 = vst [vmem:[#allocation98_spill] sm:$0xff] %v4731_v9 }
 0x17b   :  { %v4733_v11 = vpop.f32.mrf.mxu0  ;;  %v4735_v13 = vpop.f32.mrf.mxu1 }
 0x17c   :  { %5965 = vst [vmem:[#allocation99_spill] sm:$0xff] %v4733_v11  ;;  %5966 = vst [vmem:[#allocation100_spill] sm:$0xff] %v4735_v13 }
 0x17d   :  { %v4737_v14 = vpop.f32.mrf.mxu0  ;;  %v4739_v15 = vpop.f32.mrf.mxu1 }
 0x17e   :  { %5967 = vst [vmem:[#allocation101_spill] sm:$0xff] %v4737_v14  ;;  %5968 = vst [vmem:[#allocation102_spill] sm:$0xff] %v4739_v15 }
 0x17f   :  { %v4741_v16 = vpop.f32.mrf.mxu0  ;;  %v4743_v17 = vpop.f32.mrf.mxu1 }
 0x180   :  { %5969 = vst [vmem:[#allocation103_spill] sm:$0xff] %v4741_v16  ;;  %5970 = vst [vmem:[#allocation104_spill] sm:$0xff] %v4743_v17 }
 0x181   :  { %v4745_v18 = vpop.f32.mrf.mxu0  ;;  %v4747_v19 = vpop.f32.mrf.mxu1 }
 0x182   :  { %5971 = vst [vmem:[#allocation105_spill] sm:$0xff] %v4745_v18  ;;  %5972 = vst [vmem:[#allocation106_spill] sm:$0xff] %v4747_v19 }
 0x183   :  { %v4749_v20 = vpop.f32.mrf.mxu0  ;;  %v4751_v0 = vpop.f32.mrf.mxu1 }
 0x184   :  { %5973 = vst [vmem:[#allocation107_spill] sm:$0xff] %v4749_v20  ;;  %5974 = vst [vmem:[#allocation108_spill] sm:$0xff] %v4751_v0 }
 0x185   :  { %v4753_v9 = vpop.f32.mrf.mxu0  ;;  %v4755_v11 = vpop.f32.mrf.mxu1 }
 0x186   :  { %5975 = vst [vmem:[#allocation109_spill] sm:$0xff] %v4753_v9  ;;  %5976 = vst [vmem:[#allocation110_spill] sm:$0xff] %v4755_v11 }
 0x187   :  { %v4757_v13 = vpop.f32.mrf.mxu0  ;;  %v4759_v14 = vpop.f32.mrf.mxu1 }
 0x188   :  { %5977 = vst [vmem:[#allocation111_spill] sm:$0xff] %v4757_v13  ;;  %5978 = vst [vmem:[#allocation112_spill] sm:$0xff] %v4759_v14  ;;  %v174_v14 = vlaneseq }
 0x189   :  { %v4761_v15 = vpop.f32.mrf.mxu0  ;;  %v4763_v16 = vpop.f32.mrf.mxu1 }
 0x18a   :  { %5979 = vst [vmem:[#allocation113_spill] sm:$0xff] %v4761_v15  ;;  %5980 = vst [vmem:[#allocation114_spill] sm:$0xff] %v4763_v16 }
 0x18b   :  { %v4765_v17 = vpop.f32.mrf.mxu0  ;;  %v4767_v18 = vpop.f32.mrf.mxu1 }
 0x18c   :  { %5981 = vst [vmem:[#allocation115_spill] sm:$0xff] %v4765_v17  ;;  %5982 = vst [vmem:[#allocation116_spill] sm:$0xff] %v4767_v18 }
 0x18d   :  { %v4769_v19 = vpop.f32.mrf.mxu0  ;;  %v4771_v20 = vpop.f32.mrf.mxu1 }
 0x18e   :  { %5983 = vst [vmem:[#allocation117_spill] sm:$0xff] %v4769_v19  ;;  %5984 = vst [vmem:[#allocation118_spill] sm:$0xff] %v4771_v20  ;;  %v175_v19 = vshrl.u32 %v174_v14, 7 }
 0x18f   :  { %v4773_v0 = vpop.f32.mrf.mxu0  ;;  %v4775_v9 = vpop.f32.mrf.mxu1 }
 0x190   :  { %5985 = vst [vmem:[#allocation119_spill] sm:$0xff] %v4773_v0  ;;  %5986 = vst [vmem:[#allocation120_spill] sm:$0xff] %v4775_v9 }
 0x191   :  { %v4777_v11 = vpop.f32.mrf.mxu0  ;;  %v4779_v13 = vpop.f32.mrf.mxu1 }
 0x192   :  { %5987 = vst [vmem:[#allocation121_spill] sm:$0xff] %v4777_v11  ;;  %5988 = vst [vmem:[#allocation122_spill] sm:$0xff] %v4779_v13  ;;  %v176_v11 = vsub.s32 0, %v175_v19 }
 0x193   :  { %v4781_v15 = vpop.f32.mrf.mxu0  ;;  %v4783_v16 = vpop.f32.mrf.mxu1 }
 0x194   :  { %5989 = vst [vmem:[#allocation123_spill] sm:$0xff] %v4781_v15  ;;  %5990 = vst [vmem:[#allocation124_spill] sm:$0xff] %v4783_v16  ;;  %v172_v15 = vld [vmem:[%s5881_s3] sm:$0xf]  ;;  %s4322_s3 = smov [#allocation15]  }
 0x195   :  { %v4785_v17 = vpop.f32.mrf.mxu0  ;;  %v4787_v18 = vpop.f32.mrf.mxu1  ;;  %s3505_s27 = sshll.u32 %s4322_s3, 4  ;;  %s3506_s27 = int_to_ptr.vmem [resolvable:$true] %s3505_s27 }
 0x196   :  { %5991 = vst [vmem:[#allocation125_spill] sm:$0xff] %v4785_v17  ;;  %5992 = vst [vmem:[#allocation126_spill] sm:$0xff] %v4787_v18  ;;  %v180_v17 = vsub.s32 1, %v175_v19  ;;  %v184_v18 = vsub.s32 2, %v175_v19  ;;  %s4260_s28 = scalar_lea.vmem %s3506_s27, 256  ;;  %p4265_p12 = scmp.lt.s32.totalorder %s3506_s27, %s3506_s27 }
 0x197   :  { %v4789_v12 = vpop.f32.mrf.mxu0  ;;  %v4791_v20 = vpop.f32.mrf.mxu1  ;;  %p4261_p11 = scmp.ne.s32.totalorder %s3506_s27, %s4260_s28  ;;  %p4266_p13 = scmp.lt.s32.totalorder %s4260_s28, %s4260_s28 }
 0x198   :  { %5993 = vst [vmem:[#allocation127_spill] sm:$0xff] %v4789_v12  ;;  %5994 = vst [vmem:[#allocation128_spill] sm:$0xff] %v4791_v20  ;;  %v4808_v20 = vrot.slane %v172_v15, %v176_v11  ;;  %v4814_v10 = vrot.slane %v172_v15, %v180_v17  ;;  %v4816_v7 = vrot.slane %v172_v15, %v184_v18  ;;  %v188_v17 = vsub.s32 3, %v175_v19 }
 0x199   :  { %v4793_v0 = vpop.f32.mrf.mxu0  ;;  %v4795_v9 = vpop.f32.mrf.mxu1  ;;  %p4267_p0 = por %p4266_p13, %p4265_p12 }
 0x19a   :  { %5995 = vst [vmem:[#allocation129_spill] sm:$0xff] %v4793_v0  ;;  %5996 = vst [vmem:[#allocation130_spill] sm:$0xff] %v4795_v9  ;;  %v487_v11 = vadd.f32 %v4561_v23, %v4814_v10  ;;  %v682_v19 = vadd.f32 %v4567_v26, %v4816_v7 }
 0x19b   :  { %v4800_v13 = vpop.f32.mrf.mxu0  ;;  %v4802_v16 = vpop.f32.mrf.mxu1  ;;  %p4268_p1 = pnand %p4267_p0, %p4261_p11 }
 0x19c   :  { %5997 = vst [vmem:[#allocation131_spill] sm:$0xff] %v4800_v13  ;;  %5998 = vst [vmem:[#allocation132_spill] sm:$0xff] %v4802_v16  ;;  %v485_v16 = vadd.f32 %v4557_v21, %v4808_v20  ;;  %v491_v21 = vadd.f32 %v4569_v27, %v4814_v10 }
 0x19d   :  { %v4804_v14 = vpop.f32.mrf.mxu0  ;;  %v4806_v12 = vpop.f32.mrf.mxu1 }
 0x19e   :  { %5999 = vst [vmem:[#allocation133_spill] sm:$0xff] %v4804_v14  ;;  %6000 = vst [vmem:[#allocation134_spill] sm:$0xff] %v4806_v12 }
 0x19f   :  { %v4810_v0 = vpop.f32.mrf.mxu0  ;;  %v4812_v9 = vpop.f32.mrf.mxu1 }
 0x1a0   :  { %6001 = vst [vmem:[#allocation135_spill] sm:$0xff] %v4810_v0  ;;  %6002 = vst [vmem:[#allocation136_spill] sm:$0xff] %v4812_v9  ;;  %v678_v9 = vadd.f32 %v4559_v22, %v4816_v7 }
 0x1a1   :  { %v4818_v8 = vpop.f32.mrf.mxu0  ;;  %v4820_v13 = vpop.f32.mrf.mxu1 }
 0x1a2   :  { %6003 = vst [vmem:[#allocation137_spill] sm:$0xff] %v4818_v8  ;;  %6004 = vst [vmem:[#allocation138_spill] sm:$0xff] %v4820_v13  ;;  %v489_v8 = vadd.f32 %v4565_v25, %v4808_v20 }
 0x1a3   :  { %v1206_v14 = vpop.f32.mrf.mxu0  ;;  %v1249_v6 = vpop.f32.mrf.mxu1 }
 0x1a4   :  { %v1258_v12 = vadd.f32 %v1206_v14, %v485_v16  ;;  %v1260_v32 = vadd.f32 %v1249_v6, %v678_v9  ;;  %v4832_v16 = vrot.slane %v172_v15, %v188_v17 }
 0x1a5   :  { %v1208_v0 = vpop.f32.mrf.mxu0  ;;  %v1251_v18 = vpop.f32.mrf.mxu1 }
 0x1a6   :  { %v1266_v62 = vmul.f32 0.5, %v1258_v12  ;;  %v1259_v13 = vadd.f32 %v1208_v0, %v487_v11  ;;  %v680_v27 = vadd.f32 %v4563_v24, %v4832_v16 }
 0x1a7   :  { %v1210_v44 = vpop.f32.mrf.mxu0  ;;  %v1253_v14 = vpop.f32.mrf.mxu1 }
 0x1a8   :  { %3744 = vtanh.f32 %v1266_v62  ;;  %v1274_v50 = vmul.f32 0.5, %v1259_v13  ;;  %v1262_v23 = vadd.f32 %v1210_v44, %v489_v8  ;;  %v1264_v0 = vadd.f32 %v1253_v14, %v682_v19 }
 0x1a9   :  { %v1212_v22 = vpop.f32.mrf.mxu0  ;;  %v1261_v62 = vadd.f32 %v1251_v18, %v680_v27  ;;  %v1255_v44 = vpop.f32.mrf.mxu1  ;;  %v684_v8 = vadd.f32 %v4571_v28, %v4832_v16 }
 0x1aa   :  { %3746 = vtanh.f32 %v1274_v50  ;;  %v1267_v35 = vmul.f32 0.5, %v1262_v23  ;;  %v1263_v25 = vadd.f32 %v1212_v22, %v491_v21  ;;  %v104_v21 = vld [vmem:[#allocation13] sm:$0xff] }
 0x1ab   :  { %3748 = vtanh.f32 %v1260_v32  ;;  %v1284_v9 = vmul.f32 0.5, %v1261_v62  ;;  %v1265_v12 = vadd.f32 %v1255_v44, %v684_v8 }
 0x1ac   :  { %3750 = vtanh.f32 %v1267_v35  ;;  %v1275_v6 = vmul.f32 0.5, %v1263_v25 }
 0x1ad   :  { %v1285_v11 = vmul.f32 0.5, %v1265_v12 }
 0x1ae   :  { %3752 = vtanh.f32 %v1275_v6 }
 0x1af   :  { %3754 = vtanh.f32 %v1264_v0  ;;  %v105_v0 = vld [vmem:[#allocation13 + $0x8] sm:$0xff] }
 0x1b0   :  { %3756 = vtanh.f32 %v1284_v9 }
 0x1b1   :  { %3758 = vtanh.f32 %v1285_v11 }
 0x1b5   :  { %v3745_v26 = vpop.eup %3744 }
 0x1b6   :  { %v1270_v50 = vmul.f32 0.5, %v3745_v26 }
 0x1b7   :  { %v3747_v13 = vpop.eup %3746 }
 0x1b8   :  { %v3749_v15 = vpop.eup %3748  ;;  %v1272_v32 = vadd.f32 0.5, %v1270_v50  ;;  %v1278_v35 = vmul.f32 0.5, %v3747_v13 }
 0x1b9   :  { %v3751_v17 = vpop.eup %3750 }
 0x1ba   :  { %v1280_v24 = vadd.f32 0.5, %v1278_v35  ;;  %v1294_v23 = vmul.f32 %v3749_v15, %v1272_v32  ;;  %v1271_v18 = vmul.f32 0.5, %v3751_v17 }
 0x1bb   :  { %v3753_v14 = vpop.eup %3752 }
 0x1bc   :  { %v1292_v22 = vmul.f32 %v1280_v24, %v104_v21  ;;  %v1273_v19 = vadd.f32 0.5, %v1271_v18  ;;  %v1279_v25 = vmul.f32 0.5, %v3753_v14  ;;  %v3755_v28 = vpop.eup %3754  ;;  %v6005_v24 = vmov 0  }
 0x1bd   :  { %v3757_v9 = vpop.eup %3756 }
 0x1be   :  { %v4840_v6 = vadd.f32 %v1294_v23, %v1292_v22  ;;  %v1281_v27 = vadd.f32 0.5, %v1279_v25  ;;  %v1295_v62 = vmul.f32 %v3755_v28, %v1273_v19  ;;  %v1288_v12 = vmul.f32 0.5, %v3757_v9  ;;  %v3759_v26 = vpop.eup %3758  ;;  %v6008_v22 = vld [vmem:[#allocation24_spill] sm:$0xff] }
 0x1bf   :  { %v1289_v13 = vmul.f32 0.5, %v3759_v26 }
 0x1c0   :  { %3760 = vtanh.f32 %v4840_v6  ;;  %v1293_v44 = vmul.f32 %v1281_v27, %v105_v0  ;;  %v1290_v50 = vadd.f32 0.5, %v1288_v12  ;;  %v6009_v27 = vld [vmem:[#allocation22_spill] sm:$0xff] }
 0x1c1   :  { %v1291_v35 = vadd.f32 0.5, %v1289_v13  ;;  %v6010_v12 = vld [vmem:[#allocation26_spill] sm:$0xff] }
 0x1c2   :  { %v4843_v8 = vadd.f32 %v1295_v62, %v1293_v44  ;;  %v690_v62 = vadd.f32 %v6009_v27, %v4832_v16  ;;  %v694_v26 = vadd.f32 %v6010_v12, %v4832_v16  ;;  %v4910_v27 = vld [vmem:[#allocation10 + $0xc4] ss:$16 sps:$4 sm:$0xff]  }
 0x1c3   :  { %v4924_v12 = vld [vmem:[#allocation10 + $0xa4] ss:$16 sps:$4 sm:$0xff]  }
 0x1c4   :  { %3762 = vtanh.f32 %v4843_v8 }
 0x1cd   :  { %v3761_v15 = vpop.eup %3760 }
 0x1ce   :  { %v1300_v32 = vmul.f32 %v3761_v15, %v1290_v50 }
 0x1d0   :  { %1302 = vst [vmem:[#allocation14] sm:$0xff] %v1300_v32 }
 0x1d1   :  { %v3763_v11 = vpop.eup %3762 }
 0x1d2   :  { %v1301_v17 = vmul.f32 %v3763_v11, %v1291_v35 }
 0x1d4   :  { %1303 = vst [vmem:[#allocation14 + $0x8] sm:$0xff] %v1301_v17  ;;  %v1315_v21 = vpack.c.bf16 %v1301_v17, %v1300_v32 }
 0x1d6   :  { %1349 = vmatmul.mubr.bf16.vlgmr.msra.gmra.mxu0 %v1315_v21  ;;  %1392 = vmatmul.mubr.bf16.vlgmr.msra.gmra.mxu1 %v1315_v21 }
 0x1d7   :  { %1462 = vmatpush1.bf16.msra.mxu0 %v4397_v36  ;;  %1505 = vmatpush1.bf16.msra.mxu1 %v4399_v37  ;;  %v495_v36 = vadd.f32 %v4573_v29, %v4808_v20 }
 0x1d8   :  { %1463 = vmatprep.subr.bf16.mxu0 %v4403_v38  ;;  %1506 = vmatprep.subr.bf16.mxu1 %v4405_v39  ;;  %v497_v39 = vadd.f32 %v4577_v31, %v4814_v10 }
 0x1d9   :  { %1493 = vmatprep.mubr.bf16.mxu0 %v6005_v24  ;;  %1536 = vmatprep.mubr.bf16.mxu1 %v6005_v24 }
 0x1db   :  { %1464 = vmatpush1.bf16.msra.mxu0 %v4409_v40  ;;  %1507 = vmatpush1.bf16.msra.mxu1 %v4413_v41  ;;  %v688_v41 = vadd.f32 %v4575_v30, %v4816_v7  ;;  %v692_v30 = vadd.f32 %v6008_v22, %v4816_v7 }
 0x1dc   :  { %1465 = vmatprep.subr.bf16.mxu0 %v4415_v42  ;;  %1508 = vmatprep.subr.bf16.mxu1 %v4419_v43 }
 0x1df   :  { %1466 = vmatpush1.bf16.msra.mxu0 %v4421_v45  ;;  %1509 = vmatpush1.bf16.msra.mxu1 %v4424_v46  ;;  %v6006_v45 = vld [vmem:[#allocation23_spill] sm:$0xff] }
 0x1e0   :  { %1467 = vmatprep.subr.bf16.mxu0 %v4428_v47  ;;  %1510 = vmatprep.subr.bf16.mxu1 %v4431_v48  ;;  %v499_v46 = vadd.f32 %v6006_v45, %v4808_v20 }
 0x1e3   :  { %1468 = vmatpush1.bf16.msra.mxu0 %v4435_v49  ;;  %1511 = vmatpush1.bf16.msra.mxu1 %v4439_v51  ;;  %v6007_v49 = vld [vmem:[#allocation25_spill] sm:$0xff] }
 0x1e4   :  { %1469 = vmatprep.subr.bf16.mxu0 %v4443_v52  ;;  %1512 = vmatprep.subr.bf16.mxu1 %v4445_v53  ;;  %v501_v29 = vadd.f32 %v6007_v49, %v4814_v10 }
 0x1e7   :  { %1470 = vmatpush1.bf16.msra.mxu0 %v4447_v54  ;;  %1513 = vmatpush1.bf16.msra.mxu1 %v4449_v55 }
 0x1e8   :  { %1471 = vmatprep.subr.bf16.mxu0 %v4453_v56  ;;  %1514 = vmatprep.subr.bf16.mxu1 %v4457_v57 }
 0x1eb   :  { %1472 = vmatpush1.bf16.msra.mxu0 %v4461_v58  ;;  %1515 = vmatpush1.bf16.msra.mxu1 %v4465_v59 }
 0x1ec   :  { %1473 = vmatprep.subr.bf16.mxu0 %v4467_v60  ;;  %1516 = vmatprep.subr.bf16.mxu1 %v4471_v61 }
 0x1ef   :  { %1474 = vmatpush1.bf16.msra.mxu0 %v4473_v63  ;;  %1517 = vmatpush1.bf16.msra.mxu1 %v4477_v1 }
 0x1f0   :  { %1475 = vmatprep.subr.bf16.mxu0 %v4481_v2  ;;  %1518 = vmatprep.subr.bf16.mxu1 %v4483_v3 }
 0x1f3   :  { %1476 = vmatpush1.bf16.msra.mxu0 %v4489_v4  ;;  %1519 = vmatpush1.bf16.msra.mxu1 %v4491_v5 }
 0x1f4   :  { %1606 = vmatprep.subr.bf16.mxu0 %v4393_v33  ;;  %1649 = vmatprep.subr.bf16.mxu1 %v4395_v34 }
 0x296   :  { %v1350_v37 = vpop.f32.mrf.mxu0  ;;  %v1393_v38 = vpop.f32.mrf.mxu1 }
 0x297   :  { %v1402_v40 = vadd.f32 %v1350_v37, %v495_v36  ;;  %v1404_v34 = vadd.f32 %v1393_v38, %v688_v41 }
 0x298   :  { %v1352_v42 = vpop.f32.mrf.mxu0  ;;  %v1395_v43 = vpop.f32.mrf.mxu1 }
 0x299   :  { %v1410_v33 = vmul.f32 0.5, %v1402_v40  ;;  %v1403_v47 = vadd.f32 %v1352_v42, %v497_v39  ;;  %v1405_v44 = vadd.f32 %v1395_v43, %v690_v62  ;;  %v4913_v62 = vld [vmem:[#allocation10 + $0xcc] ss:$16 sps:$4 sm:$0xff]  }
 0x29a   :  { %v1354_v48 = vpop.f32.mrf.mxu0  ;;  %v1397_v31 = vpop.f32.mrf.mxu1 }
 0x29b   :  { %3764 = vtanh.f32 %v1410_v33  ;;  %v1418_v23 = vmul.f32 0.5, %v1403_v47  ;;  %v1406_v18 = vadd.f32 %v1354_v48, %v499_v46  ;;  %v1408_v28 = vadd.f32 %v1397_v31, %v692_v30 }
 0x29c   :  { %v1356_v14 = vpop.f32.mrf.mxu0  ;;  %v1399_v9 = vpop.f32.mrf.mxu1  ;;  %v1428_v50 = vmul.f32 0.5, %v1405_v44  ;;  %v4918_v44 = vld [vmem:[#allocation10 + $0xc0] ss:$16 sps:$4 sm:$0xff]  }
 0x29d   :  { %3766 = vtanh.f32 %v1418_v23  ;;  %v1411_v19 = vmul.f32 0.5, %v1406_v18  ;;  %v1407_v25 = vadd.f32 %v1356_v14, %v501_v29  ;;  %v1409_v13 = vadd.f32 %v1399_v9, %v694_v26  ;;  %v4921_v9 = vld [vmem:[#allocation10 + $0xc8] ss:$16 sps:$4 sm:$0xff]   ;;  %v4927_v26 = vld [vmem:[#allocation10 + $0xac] ss:$16 sps:$4 sm:$0xff]  }
 0x29e   :  { %3768 = vtanh.f32 %v1404_v34 }
 0x29f   :  { %3770 = vtanh.f32 %v1411_v19  ;;  %v1419_v0 = vmul.f32 0.5, %v1407_v25  ;;  %v1429_v36 = vmul.f32 0.5, %v1409_v13  ;;  %v4933_v13 = vld [vmem:[#allocation10 + $0xa8] ss:$16 sps:$4 sm:$0xff]  }
 0x2a1   :  { %3772 = vtanh.f32 %v1419_v0  ;;  %v4907_v0 = vld [vmem:[#allocation10 + $0xe8] ss:$16 sps:$4 sm:$0xff]  }
 0x2a2   :  { %3774 = vtanh.f32 %v1408_v28 }
 0x2a3   :  { %3776 = vtanh.f32 %v1428_v50  ;;  %v4930_v50 = vld [vmem:[#allocation10 + $0xa0] ss:$16 sps:$4 sm:$0xff]  }
 0x2a4   :  { %3778 = vtanh.f32 %v1429_v36 }
 0x2a8   :  { %v3765_v15 = vpop.eup %3764 }
 0x2a9   :  { %v1414_v32 = vmul.f32 0.5, %v3765_v15  ;;  %v4936_v15 = vld [vmem:[#allocation10 + $0x84] ss:$16 sps:$4 sm:$0xff]  }
 0x2aa   :  { %v3767_v35 = vpop.eup %3766 }
 0x2ab   :  { %v3769_v11 = vpop.eup %3768  ;;  %v1416_v17 = vadd.f32 0.5, %v1414_v32  ;;  %v1422_v21 = vmul.f32 0.5, %v3767_v35  ;;  %v4939_v32 = vld [vmem:[#allocation10 + $0x8c] ss:$16 sps:$4 sm:$0xff]   ;;  %v4942_v35 = vld [vmem:[#allocation10 + $0x80] ss:$16 sps:$4 sm:$0xff]  }
 0x2ac   :  { %v3771_v37 = vpop.eup %3770 }
 0x2ad   :  { %v1424_v38 = vadd.f32 0.5, %v1422_v21  ;;  %v1438_v39 = vmul.f32 %v3769_v11, %v1416_v17  ;;  %v1415_v40 = vmul.f32 0.5, %v3771_v37  ;;  %v6015_v21 = vld [vmem:[#allocation33_spill] sm:$0xff] }
 0x2ae   :  { %v3773_v41 = vpop.eup %3772  ;;  %v511_v36 = vadd.f32 %v6015_v21, %v4814_v10 }
 0x2af   :  { %v1436_v42 = vmul.f32 %v1424_v38, %v4840_v6  ;;  %v1417_v43 = vadd.f32 0.5, %v1415_v40  ;;  %v1423_v45 = vmul.f32 0.5, %v3773_v41  ;;  %v3775_v46 = vpop.eup %3774  ;;  %v6016_v41 = vld [vmem:[#allocation32_spill] sm:$0xff] }
 0x2b0   :  { %v3777_v29 = vpop.eup %3776 }
 0x2b1   :  { %v4897_v33 = vadd.f32 %v1438_v39, %v1436_v42  ;;  %v1425_v47 = vadd.f32 0.5, %v1423_v45  ;;  %v1439_v34 = vmul.f32 %v3775_v46, %v1417_v43  ;;  %v1432_v23 = vmul.f32 0.5, %v3777_v29  ;;  %v3779_v18 = vpop.eup %3778 }
 0x2b2   :  { %v1433_v31 = vmul.f32 0.5, %v3779_v18  ;;  %v702_v42 = vadd.f32 %v6016_v41, %v4816_v7  ;;  %v6018_v18 = vld [vmem:[#allocation34_spill] sm:$0xff] }
 0x2b3   :  { %3780 = vtanh.f32 %v4897_v33  ;;  %v1437_v48 = vmul.f32 %v1425_v47, %v4843_v8  ;;  %v1434_v6 = vadd.f32 0.5, %v1432_v23  ;;  %v4904_v8 = vld [vmem:[#allocation10 + $0xe0] ss:$16 sps:$4 sm:$0xff]  }
 0x2b4   :  { %v1435_v30 = vadd.f32 0.5, %v1433_v31 }
 0x2b5   :  { %v4901_v49 = vadd.f32 %v1439_v34, %v1437_v48  ;;  %v6017_v34 = vld [vmem:[#allocation30_spill] sm:$0xff] }
 0x2b6   :  { %v700_v48 = vadd.f32 %v6017_v34, %v4832_v16  ;;  %v5019_v34 = vld [vmem:[#allocation10 + $0x68] ss:$16 sps:$4 sm:$0xff]  }
 0x2b7   :  { %3782 = vtanh.f32 %v4901_v49 }
 0x2c0   :  { %v3781_v14 = vpop.eup %3780 }
 0x2c1   :  { %v1444_v22 = vmul.f32 %v3781_v14, %v1434_v6  ;;  %v704_v6 = vadd.f32 %v6018_v18, %v4832_v16  ;;  %v5031_v18 = vld [vmem:[#allocation10 + $0x48] ss:$16 sps:$4 sm:$0xff]  }
 0x2c3   :  { %1447 = vst [vmem:[#allocation14 + $0x10] sm:$0xff] %v1444_v22 }
 0x2c4   :  { %v3783_v19 = vpop.eup %3782 }
 0x2c5   :  { %v1445_v25 = vmul.f32 %v3783_v19, %v1435_v30 }
 0x2c7   :  { %1448 = vst [vmem:[#allocation14 + $0x18] sm:$0xff] %v1445_v25  ;;  %v1460_v28 = vpack.c.bf16 %v1445_v25, %v1444_v22 }
 0x2c9   :  { %1494 = vmatmul.mubr.bf16.vlgmr.msra.gmra.mxu0 %v1460_v28  ;;  %1537 = vmatmul.mubr.bf16.vlgmr.msra.gmra.mxu1 %v1460_v28 }
 0x2ca   :  { %1607 = vmatpush1.bf16.msra.mxu0 %v4904_v8  ;;  %1650 = vmatpush1.bf16.msra.mxu1 %v4907_v0 }
 0x2cb   :  { %1608 = vmatprep.subr.bf16.mxu0 %v4910_v27  ;;  %1651 = vmatprep.subr.bf16.mxu1 %v4913_v62 }
 0x2cc   :  { %1638 = vmatprep.mubr.bf16.mxu0 %v6005_v24  ;;  %1681 = vmatprep.mubr.bf16.mxu1 %v6005_v24 }
 0x2ce   :  { %1609 = vmatpush1.bf16.msra.mxu0 %v4918_v44  ;;  %1652 = vmatpush1.bf16.msra.mxu1 %v4921_v9 }
 0x2cf   :  { %1610 = vmatprep.subr.bf16.mxu0 %v4924_v12  ;;  %1653 = vmatprep.subr.bf16.mxu1 %v4927_v26 }
 0x2d2   :  { %1611 = vmatpush1.bf16.msra.mxu0 %v4930_v50  ;;  %1654 = vmatpush1.bf16.msra.mxu1 %v4933_v13 }
 0x2d3   :  { %1612 = vmatprep.subr.bf16.mxu0 %v4936_v15  ;;  %1655 = vmatprep.subr.bf16.mxu1 %v4939_v32 }
 0x2d6   :  { %1613 = vmatpush1.bf16.msra.mxu0 %v4942_v35  ;;  %1656 = vmatpush1.bf16.msra.mxu1 %v4439_v51  ;;  %v4962_v51 = vld [vmem:[#allocation10 + $0xe4] ss:$16 sps:$4 sm:$0xff]  }
 0x2d7   :  { %1614 = vmatprep.subr.bf16.mxu0 %v4443_v52  ;;  %1657 = vmatprep.subr.bf16.mxu1 %v4445_v53  ;;  %v4965_v52 = vld [vmem:[#allocation10 + $0xec] ss:$16 sps:$4 sm:$0xff]  }
 0x2d8   :  { %v6011_v53 = vld [vmem:[#allocation27_spill] sm:$0xff] }
 0x2da   :  { %1615 = vmatpush1.bf16.msra.mxu0 %v4447_v54  ;;  %1658 = vmatpush1.bf16.msra.mxu1 %v4449_v55  ;;  %v505_v54 = vadd.f32 %v6011_v53, %v4808_v20 }
 0x2db   :  { %1616 = vmatprep.subr.bf16.mxu0 %v4453_v56  ;;  %1659 = vmatprep.subr.bf16.mxu1 %v4457_v57  ;;  %v6012_v57 = vld [vmem:[#allocation29_spill] sm:$0xff] }
 0x2de   :  { %1617 = vmatpush1.bf16.msra.mxu0 %v4461_v58  ;;  %1660 = vmatpush1.bf16.msra.mxu1 %v4465_v59  ;;  %v507_v58 = vadd.f32 %v6012_v57, %v4814_v10 }
 0x2df   :  { %1618 = vmatprep.subr.bf16.mxu0 %v4467_v60  ;;  %1661 = vmatprep.subr.bf16.mxu1 %v4471_v61  ;;  %v6013_v60 = vld [vmem:[#allocation28_spill] sm:$0xff] }
 0x2e0   :  { %v698_v61 = vadd.f32 %v6013_v60, %v4816_v7 }
 0x2e2   :  { %1619 = vmatpush1.bf16.msra.mxu0 %v4473_v63  ;;  %1662 = vmatpush1.bf16.msra.mxu1 %v4477_v1 }
 0x2e3   :  { %1620 = vmatprep.subr.bf16.mxu0 %v4481_v2  ;;  %1663 = vmatprep.subr.bf16.mxu1 %v4483_v3  ;;  %v6014_v2 = vld [vmem:[#allocation31_spill] sm:$0xff] }
 0x2e4   :  { %v509_v3 = vadd.f32 %v6014_v2, %v4808_v20 }
 0x2e6   :  { %1621 = vmatpush1.bf16.msra.mxu0 %v4489_v4  ;;  %1664 = vmatpush1.bf16.msra.mxu1 %v4491_v5 }
 0x2e7   :  { %1751 = vmatprep.subr.bf16.mxu0 %v4962_v51  ;;  %1794 = vmatprep.subr.bf16.mxu1 %v4965_v52 }
 0x389   :  { %v1495_v55 = vpop.f32.mrf.mxu0  ;;  %v1538_v56 = vpop.f32.mrf.mxu1 }
 0x38a   :  { %v1547_v59 = vadd.f32 %v1495_v55, %v505_v54  ;;  %v1549_v11 = vadd.f32 %v1538_v56, %v698_v61 }
 0x38b   :  { %v1497_v63 = vpop.f32.mrf.mxu0  ;;  %v1540_v1 = vpop.f32.mrf.mxu1 }
 0x38c   :  { %v1555_v4 = vmul.f32 0.5, %v1547_v59  ;;  %v1548_v5 = vadd.f32 %v1497_v63, %v507_v58  ;;  %v1550_v29 = vadd.f32 %v1540_v1, %v700_v48  ;;  %v5022_v48 = vld [vmem:[#allocation10 + $0x44] ss:$16 sps:$4 sm:$0xff]  }
 0x38d   :  { %v1499_v17 = vpop.f32.mrf.mxu0  ;;  %v1542_v39 = vpop.f32.mrf.mxu1 }
 0x38e   :  { %3784 = vtanh.f32 %v1555_v4  ;;  %v1563_v37 = vmul.f32 0.5, %v1548_v5  ;;  %v1551_v38 = vadd.f32 %v1499_v17, %v509_v3  ;;  %v1553_v46 = vadd.f32 %v1542_v39, %v702_v42 }
 0x38f   :  { %v1501_v40 = vpop.f32.mrf.mxu0  ;;  %v1544_v23 = vpop.f32.mrf.mxu1  ;;  %v1573_v31 = vmul.f32 0.5, %v1550_v29  ;;  %v5025_v29 = vld [vmem:[#allocation10 + $0x4c] ss:$16 sps:$4 sm:$0xff]  }
 0x390   :  { %3786 = vtanh.f32 %v1563_v37  ;;  %v1556_v43 = vmul.f32 0.5, %v1551_v38  ;;  %v1552_v45 = vadd.f32 %v1501_v40, %v511_v36  ;;  %v1554_v14 = vadd.f32 %v1544_v23, %v704_v6  ;;  %v5028_v23 = vld [vmem:[#allocation10 + $0x40] ss:$16 sps:$4 sm:$0xff]   ;;  %v5034_v6 = vld [vmem:[#allocation10 + $0x24] ss:$16 sps:$4 sm:$0xff]  }
 0x391   :  { %3788 = vtanh.f32 %v1549_v11 }
 0x392   :  { %3790 = vtanh.f32 %v1556_v43  ;;  %v1564_v47 = vmul.f32 0.5, %v1552_v45  ;;  %v1574_v54 = vmul.f32 0.5, %v1554_v14  ;;  %v5010_v45 = vld [vmem:[#allocation10 + $0x64] ss:$16 sps:$4 sm:$0xff]   ;;  %v5040_v14 = vld [vmem:[#allocation10 + $0x20] ss:$16 sps:$4 sm:$0xff]  }
 0x394   :  { %3792 = vtanh.f32 %v1564_v47  ;;  %v5016_v47 = vld [vmem:[#allocation10 + $0x60] ss:$16 sps:$4 sm:$0xff]  }
 0x395   :  { %3794 = vtanh.f32 %v1553_v46  ;;  %v5013_v46 = vld [vmem:[#allocation10 + $0x6c] ss:$16 sps:$4 sm:$0xff]  }
 0x396   :  { %3796 = vtanh.f32 %v1573_v31  ;;  %v5037_v31 = vld [vmem:[#allocation10 + $0x2c] ss:$16 sps:$4 sm:$0xff]  }
 0x397   :  { %3798 = vtanh.f32 %v1574_v54 }
 0x39b   :  { %v3785_v22 = vpop.eup %3784 }
 0x39c   :  { %v1559_v30 = vmul.f32 0.5, %v3785_v22  ;;  %v5043_v22 = vld [vmem:[#allocation10 + $0x28] ss:$16 sps:$4 sm:$0xff]  }
 0x39d   :  { %v3787_v19 = vpop.eup %3786 }
 0x39e   :  { %v3789_v25 = vpop.eup %3788  ;;  %v1561_v28 = vadd.f32 0.5, %v1559_v30  ;;  %v1567_v53 = vmul.f32 0.5, %v3787_v19  ;;  %v5046_v30 = vld [vmem:[#allocation10 + $0x4] ss:$16 sps:$4 sm:$0xff]   ;;  %v5049_v19 = vld [vmem:[#allocation10 + $0xc] ss:$16 sps:$4 sm:$0xff]  }
 0x39f   :  { %v3791_v55 = vpop.eup %3790 }
 0x3a0   :  { %v1569_v56 = vadd.f32 0.5, %v1567_v53  ;;  %v1583_v57 = vmul.f32 %v3789_v25, %v1561_v28  ;;  %v1560_v58 = vmul.f32 0.5, %v3791_v55  ;;  %v5052_v25 = vld [vmem:[#allocation10] ss:$16 sps:$4 sm:$0xff]   ;;  %v5055_v28 = vld [vmem:[#allocation10 + $0x8] ss:$16 sps:$4 sm:$0xff]  }
 0x3a1   :  { %v3793_v59 = vpop.eup %3792  ;;  %v6019_v53 = vld [vmem:[#allocation35_spill] sm:$0xff] }
 0x3a2   :  { %v1581_v60 = vmul.f32 %v1569_v56, %v4897_v33  ;;  %v1562_v61 = vadd.f32 0.5, %v1560_v58  ;;  %v1568_v63 = vmul.f32 0.5, %v3793_v59  ;;  %v3795_v1 = vpop.eup %3794  ;;  %v515_v54 = vadd.f32 %v6019_v53, %v4808_v20 }
 0x3a3   :  { %v3797_v17 = vpop.eup %3796 }
 0x3a4   :  { %v4985_v2 = vadd.f32 %v1583_v57, %v1581_v60  ;;  %v1570_v3 = vadd.f32 0.5, %v1568_v63  ;;  %v1584_v4 = vmul.f32 %v3795_v1, %v1562_v61  ;;  %v1577_v21 = vmul.f32 0.5, %v3797_v17  ;;  %v3799_v36 = vpop.eup %3798  ;;  %v6020_v57 = vld [vmem:[#allocation37_spill] sm:$0xff]  ;;  %v6021_v60 = vld [vmem:[#allocation36_spill] sm:$0xff] }
 0x3a5   :  { %v1578_v37 = vmul.f32 0.5, %v3799_v36  ;;  %v517_v58 = vadd.f32 %v6020_v57, %v4814_v10  ;;  %v708_v61 = vadd.f32 %v6021_v60, %v4816_v7 }
 0x3a6   :  { %3800 = vtanh.f32 %v4985_v2  ;;  %v1582_v5 = vmul.f32 %v1570_v3, %v4901_v49  ;;  %v1579_v33 = vadd.f32 0.5, %v1577_v21  ;;  %v5007_v49 = vld [vmem:[#allocation10 + $0x88] ss:$16 sps:$4 sm:$0xff]  }
 0x3a7   :  { %v1580_v40 = vadd.f32 0.5, %v1578_v37  ;;  %v6022_v3 = vld [vmem:[#allocation39_spill] sm:$0xff] }
 0x3a8   :  { %v4989_v11 = vadd.f32 %v1584_v4, %v1582_v5  ;;  %v519_v4 = vadd.f32 %v6022_v3, %v4808_v20 }
 0x3aa   :  { %3802 = vtanh.f32 %v4989_v11 }
 0x3b3   :  { %v3801_v38 = vpop.eup %3800 }
 0x3b4   :  { %v1589_v39 = vmul.f32 %v3801_v38, %v1579_v33  ;;  %v6023_v33 = vld [vmem:[#allocation41_spill] sm:$0xff] }
 0x3b5   :  { %v521_v37 = vadd.f32 %v6023_v33, %v4814_v10 }
 0x3b6   :  { %1592 = vst [vmem:[#allocation14 + $0x20] sm:$0xff] %v1589_v39 }
 0x3b7   :  { %v3803_v41 = vpop.eup %3802 }
 0x3b8   :  { %v1590_v42 = vmul.f32 %v3803_v41, %v1580_v40 }
 0x3ba   :  { %1593 = vst [vmem:[#allocation14 + $0x28] sm:$0xff] %v1590_v42  ;;  %v1605_v43 = vpack.c.bf16 %v1590_v42, %v1589_v39  ;;  %v6024_v42 = vld [vmem:[#allocation40_spill] sm:$0xff] }
 0x3bc   :  { %1639 = vmatmul.mubr.bf16.vlgmr.msra.gmra.mxu0 %v1605_v43  ;;  %1682 = vmatmul.mubr.bf16.vlgmr.msra.gmra.mxu1 %v1605_v43  ;;  %v712_v43 = vadd.f32 %v6024_v42, %v4816_v7 }
 0x3bd   :  { %1752 = vmatpush1.bf16.msra.mxu0 %v4904_v8  ;;  %1795 = vmatpush1.bf16.msra.mxu1 %v4907_v0 }
 0x3be   :  { %1753 = vmatprep.subr.bf16.mxu0 %v4910_v27  ;;  %1796 = vmatprep.subr.bf16.mxu1 %v4913_v62 }
 0x3bf   :  { %1783 = vmatprep.mubr.bf16.mxu0 %v6005_v24  ;;  %1826 = vmatprep.mubr.bf16.mxu1 %v6005_v24 }
 0x3c1   :  { %1754 = vmatpush1.bf16.msra.mxu0 %v4918_v44  ;;  %1797 = vmatpush1.bf16.msra.mxu1 %v4921_v9 }
 0x3c2   :  { %1755 = vmatprep.subr.bf16.mxu0 %v4924_v12  ;;  %1798 = vmatprep.subr.bf16.mxu1 %v4927_v26 }
 0x3c5   :  { %1756 = vmatpush1.bf16.msra.mxu0 %v4930_v50  ;;  %1799 = vmatpush1.bf16.msra.mxu1 %v4933_v13 }
 0x3c6   :  { %1757 = vmatprep.subr.bf16.mxu0 %v4936_v15  ;;  %1800 = vmatprep.subr.bf16.mxu1 %v4939_v32 }
 0x3c9   :  { %1758 = vmatpush1.bf16.msra.mxu0 %v4942_v35  ;;  %1801 = vmatpush1.bf16.msra.mxu1 %v5007_v49 }
 0x3ca   :  { %1759 = vmatprep.subr.bf16.mxu0 %v5010_v45  ;;  %1802 = vmatprep.subr.bf16.mxu1 %v5013_v46 }
 0x3cd   :  { %1760 = vmatpush1.bf16.msra.mxu0 %v5016_v47  ;;  %1803 = vmatpush1.bf16.msra.mxu1 %v5019_v34 }
 0x3ce   :  { %1761 = vmatprep.subr.bf16.mxu0 %v5022_v48  ;;  %1804 = vmatprep.subr.bf16.mxu1 %v5025_v29 }
 0x3d1   :  { %1762 = vmatpush1.bf16.msra.mxu0 %v5028_v23  ;;  %1805 = vmatpush1.bf16.msra.mxu1 %v5031_v18 }
 0x3d2   :  { %1763 = vmatprep.subr.bf16.mxu0 %v5034_v6  ;;  %1806 = vmatprep.subr.bf16.mxu1 %v5037_v31 }
 0x3d5   :  { %1764 = vmatpush1.bf16.msra.mxu0 %v5040_v14  ;;  %1807 = vmatpush1.bf16.msra.mxu1 %v5043_v22 }
 0x3d6   :  { %1765 = vmatprep.subr.bf16.mxu0 %v5046_v30  ;;  %1808 = vmatprep.subr.bf16.mxu1 %v5049_v19 }
 0x3d9   :  { %1766 = vmatpush1.bf16.msra.mxu0 %v5052_v25  ;;  %1809 = vmatpush1.bf16.msra.mxu1 %v5055_v28 }
 0x3da   :  { %1896 = vmatprep.subr.bf16.mxu0 %v4962_v51  ;;  %1939 = vmatprep.subr.bf16.mxu1 %v4965_v52 }
 0x47c   :  { %v1640_v55 = vpop.f32.mrf.mxu0  ;;  %v1683_v56 = vpop.f32.mrf.mxu1 }
 0x47d   :  { %v1692_v59 = vadd.f32 %v1640_v55, %v515_v54  ;;  %v1694_v21 = vadd.f32 %v1683_v56, %v708_v61  ;;  %v6025_v56 = vld [vmem:[#allocation38_spill] sm:$0xff] }
 0x47e   :  { %v1642_v63 = vpop.f32.mrf.mxu0  ;;  %v1685_v1 = vpop.f32.mrf.mxu1  ;;  %v6026_v61 = vld [vmem:[#allocation42_spill] sm:$0xff] }
 0x47f   :  { %v1700_v5 = vmul.f32 0.5, %v1692_v59  ;;  %v1693_v17 = vadd.f32 %v1642_v63, %v517_v58  ;;  %v710_v58 = vadd.f32 %v6025_v56, %v4832_v16  ;;  %v714_v63 = vadd.f32 %v6026_v61, %v4832_v16 }
 0x480   :  { %v1644_v36 = vpop.f32.mrf.mxu0  ;;  %v1687_v40 = vpop.f32.mrf.mxu1 }
 0x481   :  { %3804 = vtanh.f32 %v1700_v5  ;;  %v1708_v38 = vmul.f32 0.5, %v1693_v17  ;;  %v1696_v39 = vadd.f32 %v1644_v36, %v519_v4  ;;  %v1698_v55 = vadd.f32 %v1687_v40, %v712_v43 }
 0x482   :  { %v1646_v41 = vpop.f32.mrf.mxu0  ;;  %v1695_v59 = vadd.f32 %v1685_v1, %v710_v58  ;;  %v1689_v60 = vpop.f32.mrf.mxu1 }
 0x483   :  { %3806 = vtanh.f32 %v1708_v38  ;;  %v1701_v53 = vmul.f32 0.5, %v1696_v39  ;;  %v1697_v54 = vadd.f32 %v1646_v41, %v521_v37  ;;  %v1699_v4 = vadd.f32 %v1689_v60, %v714_v63 }
 0x484   :  { %3808 = vtanh.f32 %v1694_v21  ;;  %v1718_v3 = vmul.f32 0.5, %v1695_v59 }
 0x485   :  { %3810 = vtanh.f32 %v1701_v53  ;;  %v1709_v57 = vmul.f32 0.5, %v1697_v54  ;;  %v1719_v38 = vmul.f32 0.5, %v1699_v4 }
 0x487   :  { %3812 = vtanh.f32 %v1709_v57 }
 0x488   :  { %3814 = vtanh.f32 %v1698_v55 }
 0x489   :  { %3816 = vtanh.f32 %v1718_v3 }
 0x48a   :  { %3818 = vtanh.f32 %v1719_v38 }
 0x48e   :  { %v3805_v5 = vpop.eup %3804 }
 0x48f   :  { %v1704_v17 = vmul.f32 0.5, %v3805_v5 }
 0x490   :  { %v3807_v36 = vpop.eup %3806 }
 0x491   :  { %v3809_v33 = vpop.eup %3808  ;;  %v1706_v21 = vadd.f32 0.5, %v1704_v17  ;;  %v1712_v37 = vmul.f32 0.5, %v3807_v36 }
 0x492   :  { %v3811_v39 = vpop.eup %3810 }
 0x493   :  { %v1714_v40 = vadd.f32 0.5, %v1712_v37  ;;  %v1728_v41 = vmul.f32 %v3809_v33, %v1706_v21  ;;  %v1705_v42 = vmul.f32 0.5, %v3811_v39 }
 0x494   :  { %v3813_v1 = vpop.eup %3812 }
 0x495   :  { %v1726_v43 = vmul.f32 %v1714_v40, %v4985_v2  ;;  %v1707_v53 = vadd.f32 0.5, %v1705_v42  ;;  %v1713_v54 = vmul.f32 0.5, %v3813_v1  ;;  %v3815_v55 = vpop.eup %3814 }
 0x496   :  { %v3817_v61 = vpop.eup %3816 }
 0x497   :  { %v5077_v57 = vadd.f32 %v1728_v41, %v1726_v43  ;;  %v1715_v56 = vadd.f32 0.5, %v1713_v54  ;;  %v1729_v58 = vmul.f32 %v3815_v55, %v1707_v53  ;;  %v1722_v63 = vmul.f32 0.5, %v3817_v61  ;;  %v3819_v3 = vpop.eup %3818  ;;  %v6028_v41 = vld [vmem:[#allocation45_spill] sm:$0xff]  ;;  %v6029_v43 = vld [vmem:[#allocation44_spill] sm:$0xff] }
 0x498   :  { %v1723_v4 = vmul.f32 0.5, %v3819_v3  ;;  %v527_v42 = vadd.f32 %v6028_v41, %v4814_v10  ;;  %v718_v53 = vadd.f32 %v6029_v43, %v4816_v7 }
 0x499   :  { %3820 = vtanh.f32 %v5077_v57  ;;  %v1727_v59 = vmul.f32 %v1715_v56, %v4989_v11  ;;  %v1724_v2 = vadd.f32 0.5, %v1722_v63  ;;  %v6027_v11 = vld [vmem:[#allocation43_spill] sm:$0xff] }
 0x49a   :  { %v1725_v36 = vadd.f32 0.5, %v1723_v4  ;;  %v525_v38 = vadd.f32 %v6027_v11, %v4808_v20  ;;  %v6030_v56 = vld [vmem:[#allocation47_spill] sm:$0xff] }
 0x49b   :  { %v5081_v60 = vadd.f32 %v1729_v58, %v1727_v59  ;;  %v529_v58 = vadd.f32 %v6030_v56, %v4808_v20 }
 0x49d   :  { %3822 = vtanh.f32 %v5081_v60 }
 0x4a6   :  { %v3821_v5 = vpop.eup %3820 }
 0x4a7   :  { %v1734_v17 = vmul.f32 %v3821_v5, %v1724_v2  ;;  %v6031_v2 = vld [vmem:[#allocation49_spill] sm:$0xff] }
 0x4a8   :  { %v531_v4 = vadd.f32 %v6031_v2, %v4814_v10 }
 0x4a9   :  { %1737 = vst [vmem:[#allocation14 + $0x30] sm:$0xff] %v1734_v17 }
 0x4aa   :  { %v3823_v33 = vpop.eup %3822 }
 0x4ab   :  { %v1735_v21 = vmul.f32 %v3823_v33, %v1725_v36 }
 0x4ad   :  { %1738 = vst [vmem:[#allocation14 + $0x38] sm:$0xff] %v1735_v21  ;;  %v1750_v37 = vpack.c.bf16 %v1735_v21, %v1734_v17  ;;  %v6032_v21 = vld [vmem:[#allocation48_spill] sm:$0xff] }
 0x4af   :  { %1784 = vmatmul.mubr.bf16.vlgmr.msra.gmra.mxu0 %v1750_v37  ;;  %1827 = vmatmul.mubr.bf16.vlgmr.msra.gmra.mxu1 %v1750_v37  ;;  %v722_v37 = vadd.f32 %v6032_v21, %v4816_v7 }
 0x4b0   :  { %1897 = vmatpush1.bf16.msra.mxu0 %v4904_v8  ;;  %1940 = vmatpush1.bf16.msra.mxu1 %v4907_v0 }
 0x4b1   :  { %1898 = vmatprep.subr.bf16.mxu0 %v4910_v27  ;;  %1941 = vmatprep.subr.bf16.mxu1 %v4913_v62 }
 0x4b2   :  { %1928 = vmatprep.mubr.bf16.mxu0 %v6005_v24  ;;  %1971 = vmatprep.mubr.bf16.mxu1 %v6005_v24 }
 0x4b4   :  { %1899 = vmatpush1.bf16.msra.mxu0 %v4918_v44  ;;  %1942 = vmatpush1.bf16.msra.mxu1 %v4921_v9 }
 0x4b5   :  { %1900 = vmatprep.subr.bf16.mxu0 %v4924_v12  ;;  %1943 = vmatprep.subr.bf16.mxu1 %v4927_v26 }
 0x4b8   :  { %1901 = vmatpush1.bf16.msra.mxu0 %v4930_v50  ;;  %1944 = vmatpush1.bf16.msra.mxu1 %v4933_v13 }
 0x4b9   :  { %1902 = vmatprep.subr.bf16.mxu0 %v4936_v15  ;;  %1945 = vmatprep.subr.bf16.mxu1 %v4939_v32 }
 0x4bc   :  { %1903 = vmatpush1.bf16.msra.mxu0 %v4942_v35  ;;  %1946 = vmatpush1.bf16.msra.mxu1 %v5007_v49 }
 0x4bd   :  { %1904 = vmatprep.subr.bf16.mxu0 %v5010_v45  ;;  %1947 = vmatprep.subr.bf16.mxu1 %v5013_v46 }
 0x4c0   :  { %1905 = vmatpush1.bf16.msra.mxu0 %v5016_v47  ;;  %1948 = vmatpush1.bf16.msra.mxu1 %v5019_v34 }
 0x4c1   :  { %1906 = vmatprep.subr.bf16.mxu0 %v5022_v48  ;;  %1949 = vmatprep.subr.bf16.mxu1 %v5025_v29 }
 0x4c4   :  { %1907 = vmatpush1.bf16.msra.mxu0 %v5028_v23  ;;  %1950 = vmatpush1.bf16.msra.mxu1 %v5031_v18 }
 0x4c5   :  { %1908 = vmatprep.subr.bf16.mxu0 %v5034_v6  ;;  %1951 = vmatprep.subr.bf16.mxu1 %v5037_v31 }
 0x4c8   :  { %1909 = vmatpush1.bf16.msra.mxu0 %v5040_v14  ;;  %1952 = vmatpush1.bf16.msra.mxu1 %v5043_v22 }
 0x4c9   :  { %1910 = vmatprep.subr.bf16.mxu0 %v5046_v30  ;;  %1953 = vmatprep.subr.bf16.mxu1 %v5049_v19 }
 0x4cc   :  { %1911 = vmatpush1.bf16.msra.mxu0 %v5052_v25  ;;  %1954 = vmatpush1.bf16.msra.mxu1 %v5055_v28 }
 0x4cd   :  { %2041 = vmatprep.subr.bf16.mxu0 %v4962_v51  ;;  %2084 = vmatprep.subr.bf16.mxu1 %v4965_v52 }
 0x56f   :  { %v1785_v39 = vpop.f32.mrf.mxu0  ;;  %v1828_v40 = vpop.f32.mrf.mxu1 }
 0x570   :  { %v1837_v1 = vadd.f32 %v1785_v39, %v525_v38  ;;  %v1839_v63 = vadd.f32 %v1828_v40, %v718_v53  ;;  %v6033_v40 = vld [vmem:[#allocation46_spill] sm:$0xff] }
 0x571   :  { %v1787_v54 = vpop.f32.mrf.mxu0  ;;  %v1830_v55 = vpop.f32.mrf.mxu1  ;;  %v6034_v53 = vld [vmem:[#allocation50_spill] sm:$0xff] }
 0x572   :  { %v1845_v59 = vmul.f32 0.5, %v1837_v1  ;;  %v1838_v61 = vadd.f32 %v1787_v54, %v527_v42  ;;  %v720_v42 = vadd.f32 %v6033_v40, %v4832_v16  ;;  %v724_v54 = vadd.f32 %v6034_v53, %v4832_v16 }
 0x573   :  { %v1789_v3 = vpop.f32.mrf.mxu0  ;;  %v1832_v36 = vpop.f32.mrf.mxu1 }
 0x574   :  { %3824 = vtanh.f32 %v1845_v59  ;;  %v1853_v5 = vmul.f32 0.5, %v1838_v61  ;;  %v1841_v17 = vadd.f32 %v1789_v3, %v529_v58  ;;  %v1843_v39 = vadd.f32 %v1832_v36, %v722_v37 }
 0x575   :  { %v1791_v33 = vpop.f32.mrf.mxu0  ;;  %v1840_v1 = vadd.f32 %v1830_v55, %v720_v42  ;;  %v1834_v43 = vpop.f32.mrf.mxu1 }
 0x576   :  { %3826 = vtanh.f32 %v1853_v5  ;;  %v1846_v11 = vmul.f32 0.5, %v1841_v17  ;;  %v1842_v38 = vadd.f32 %v1791_v33, %v531_v4  ;;  %v1844_v58 = vadd.f32 %v1834_v43, %v724_v54 }
 0x577   :  { %3828 = vtanh.f32 %v1839_v63  ;;  %v1863_v56 = vmul.f32 0.5, %v1840_v1 }
 0x578   :  { %3830 = vtanh.f32 %v1846_v11  ;;  %v1854_v41 = vmul.f32 0.5, %v1842_v38  ;;  %v1864_v5 = vmul.f32 0.5, %v1844_v58 }
 0x57a   :  { %3832 = vtanh.f32 %v1854_v41 }
 0x57b   :  { %3834 = vtanh.f32 %v1843_v39 }
 0x57c   :  { %3836 = vtanh.f32 %v1863_v56 }
 0x57d   :  { %3838 = vtanh.f32 %v1864_v5 }
 0x581   :  { %v3825_v59 = vpop.eup %3824 }
 0x582   :  { %v1849_v61 = vmul.f32 0.5, %v3825_v59 }
 0x583   :  { %v3827_v3 = vpop.eup %3826 }
 0x584   :  { %v3829_v2 = vpop.eup %3828  ;;  %v1851_v63 = vadd.f32 0.5, %v1849_v61  ;;  %v1857_v4 = vmul.f32 0.5, %v3827_v3 }
 0x585   :  { %v3831_v17 = vpop.eup %3830 }
 0x586   :  { %v1859_v36 = vadd.f32 0.5, %v1857_v4  ;;  %v1873_v33 = vmul.f32 %v3829_v2, %v1851_v63  ;;  %v1850_v21 = vmul.f32 0.5, %v3831_v17 }
 0x587   :  { %v3833_v55 = vpop.eup %3832 }
 0x588   :  { %v1871_v37 = vmul.f32 %v1859_v36, %v5077_v57  ;;  %v1852_v11 = vadd.f32 0.5, %v1850_v21  ;;  %v1858_v38 = vmul.f32 0.5, %v3833_v55  ;;  %v3835_v39 = vpop.eup %3834 }
 0x589   :  { %v3837_v53 = vpop.eup %3836 }
 0x58a   :  { %v5135_v41 = vadd.f32 %v1873_v33, %v1871_v37  ;;  %v1860_v40 = vadd.f32 0.5, %v1858_v38  ;;  %v1874_v42 = vmul.f32 %v3835_v39, %v1852_v11  ;;  %v1867_v54 = vmul.f32 0.5, %v3837_v53  ;;  %v3839_v56 = vpop.eup %3838  ;;  %v6036_v33 = vld [vmem:[#allocation53_spill] sm:$0xff]  ;;  %v6037_v37 = vld [vmem:[#allocation52_spill] sm:$0xff] }
 0x58b   :  { %v1868_v58 = vmul.f32 0.5, %v3839_v56  ;;  %v537_v21 = vadd.f32 %v6036_v33, %v4814_v10  ;;  %v728_v11 = vadd.f32 %v6037_v37, %v4816_v7 }
 0x58c   :  { %3840 = vtanh.f32 %v5135_v41  ;;  %v1872_v1 = vmul.f32 %v1860_v40, %v5081_v60  ;;  %v1869_v57 = vadd.f32 0.5, %v1867_v54  ;;  %v6035_v60 = vld [vmem:[#allocation51_spill] sm:$0xff] }
 0x58d   :  { %v1870_v3 = vadd.f32 0.5, %v1868_v58  ;;  %v535_v5 = vadd.f32 %v6035_v60, %v4808_v20  ;;  %v6038_v40 = vld [vmem:[#allocation55_spill] sm:$0xff] }
 0x58e   :  { %v5139_v43 = vadd.f32 %v1874_v42, %v1872_v1  ;;  %v539_v42 = vadd.f32 %v6038_v40, %v4808_v20 }
 0x590   :  { %3842 = vtanh.f32 %v5139_v43 }
 0x599   :  { %v3841_v59 = vpop.eup %3840 }
 0x59a   :  { %v1879_v61 = vmul.f32 %v3841_v59, %v1869_v57  ;;  %v6039_v57 = vld [vmem:[#allocation57_spill] sm:$0xff] }
 0x59b   :  { %v541_v58 = vadd.f32 %v6039_v57, %v4814_v10 }
 0x59c   :  { %1882 = vst [vmem:[#allocation14 + $0x40] sm:$0xff] %v1879_v61 }
 0x59d   :  { %v3843_v2 = vpop.eup %3842 }
 0x59e   :  { %v1880_v63 = vmul.f32 %v3843_v2, %v1870_v3 }
 0x5a0   :  { %1883 = vst [vmem:[#allocation14 + $0x48] sm:$0xff] %v1880_v63  ;;  %v1895_v4 = vpack.c.bf16 %v1880_v63, %v1879_v61  ;;  %v6040_v63 = vld [vmem:[#allocation56_spill] sm:$0xff] }
 0x5a2   :  { %1929 = vmatmul.mubr.bf16.vlgmr.msra.gmra.mxu0 %v1895_v4  ;;  %1972 = vmatmul.mubr.bf16.vlgmr.msra.gmra.mxu1 %v1895_v4  ;;  %v732_v4 = vadd.f32 %v6040_v63, %v4816_v7 }
 0x5a3   :  { %2042 = vmatpush1.bf16.msra.mxu0 %v4904_v8  ;;  %2085 = vmatpush1.bf16.msra.mxu1 %v4907_v0 }
 0x5a4   :  { %2043 = vmatprep.subr.bf16.mxu0 %v4910_v27  ;;  %2086 = vmatprep.subr.bf16.mxu1 %v4913_v62 }
 0x5a5   :  { %2073 = vmatprep.mubr.bf16.mxu0 %v6005_v24  ;;  %2116 = vmatprep.mubr.bf16.mxu1 %v6005_v24 }
 0x5a7   :  { %2044 = vmatpush1.bf16.msra.mxu0 %v4918_v44  ;;  %2087 = vmatpush1.bf16.msra.mxu1 %v4921_v9 }
 0x5a8   :  { %2045 = vmatprep.subr.bf16.mxu0 %v4924_v12  ;;  %2088 = vmatprep.subr.bf16.mxu1 %v4927_v26 }
 0x5ab   :  { %2046 = vmatpush1.bf16.msra.mxu0 %v4930_v50  ;;  %2089 = vmatpush1.bf16.msra.mxu1 %v4933_v13 }
 0x5ac   :  { %2047 = vmatprep.subr.bf16.mxu0 %v4936_v15  ;;  %2090 = vmatprep.subr.bf16.mxu1 %v4939_v32 }
 0x5af   :  { %2048 = vmatpush1.bf16.msra.mxu0 %v4942_v35  ;;  %2091 = vmatpush1.bf16.msra.mxu1 %v5007_v49 }
 0x5b0   :  { %2049 = vmatprep.subr.bf16.mxu0 %v5010_v45  ;;  %2092 = vmatprep.subr.bf16.mxu1 %v5013_v46 }
 0x5b3   :  { %2050 = vmatpush1.bf16.msra.mxu0 %v5016_v47  ;;  %2093 = vmatpush1.bf16.msra.mxu1 %v5019_v34 }
 0x5b4   :  { %2051 = vmatprep.subr.bf16.mxu0 %v5022_v48  ;;  %2094 = vmatprep.subr.bf16.mxu1 %v5025_v29 }
 0x5b7   :  { %2052 = vmatpush1.bf16.msra.mxu0 %v5028_v23  ;;  %2095 = vmatpush1.bf16.msra.mxu1 %v5031_v18 }
 0x5b8   :  { %2053 = vmatprep.subr.bf16.mxu0 %v5034_v6  ;;  %2096 = vmatprep.subr.bf16.mxu1 %v5037_v31 }
 0x5bb   :  { %2054 = vmatpush1.bf16.msra.mxu0 %v5040_v14  ;;  %2097 = vmatpush1.bf16.msra.mxu1 %v5043_v22 }
 0x5bc   :  { %2055 = vmatprep.subr.bf16.mxu0 %v5046_v30  ;;  %2098 = vmatprep.subr.bf16.mxu1 %v5049_v19 }
 0x5bf   :  { %2056 = vmatpush1.bf16.msra.mxu0 %v5052_v25  ;;  %2099 = vmatpush1.bf16.msra.mxu1 %v5055_v28 }
 0x5c0   :  { %2186 = vmatprep.subr.bf16.mxu0 %v4962_v51  ;;  %2229 = vmatprep.subr.bf16.mxu1 %v4965_v52 }
 0x662   :  { %v1930_v17 = vpop.f32.mrf.mxu0  ;;  %v1973_v36 = vpop.f32.mrf.mxu1 }
 0x663   :  { %v1982_v55 = vadd.f32 %v1930_v17, %v535_v5  ;;  %v1984_v54 = vadd.f32 %v1973_v36, %v728_v11  ;;  %v6041_v36 = vld [vmem:[#allocation54_spill] sm:$0xff] }
 0x664   :  { %v1932_v38 = vpop.f32.mrf.mxu0  ;;  %v1975_v39 = vpop.f32.mrf.mxu1  ;;  %v6042_v11 = vld [vmem:[#allocation58_spill] sm:$0xff] }
 0x665   :  { %v1990_v1 = vmul.f32 0.5, %v1982_v55  ;;  %v1983_v53 = vadd.f32 %v1932_v38, %v537_v21  ;;  %v730_v21 = vadd.f32 %v6041_v36, %v4832_v16  ;;  %v734_v38 = vadd.f32 %v6042_v11, %v4832_v16 }
 0x666   :  { %v1934_v56 = vpop.f32.mrf.mxu0  ;;  %v1977_v3 = vpop.f32.mrf.mxu1 }
 0x667   :  { %3844 = vtanh.f32 %v1990_v1  ;;  %v1998_v59 = vmul.f32 0.5, %v1983_v53  ;;  %v1986_v61 = vadd.f32 %v1934_v56, %v539_v42  ;;  %v1988_v17 = vadd.f32 %v1977_v3, %v732_v4 }
 0x668   :  { %v1936_v2 = vpop.f32.mrf.mxu0  ;;  %v1985_v55 = vadd.f32 %v1975_v39, %v730_v21  ;;  %v1979_v37 = vpop.f32.mrf.mxu1 }
 0x669   :  { %3846 = vtanh.f32 %v1998_v59  ;;  %v1991_v60 = vmul.f32 0.5, %v1986_v61  ;;  %v1987_v5 = vadd.f32 %v1936_v2, %v541_v58  ;;  %v1989_v42 = vadd.f32 %v1979_v37, %v734_v38 }
 0x66a   :  { %3848 = vtanh.f32 %v1984_v54  ;;  %v2008_v40 = vmul.f32 0.5, %v1985_v55 }
 0x66b   :  { %3850 = vtanh.f32 %v1991_v60  ;;  %v1999_v33 = vmul.f32 0.5, %v1987_v5  ;;  %v2009_v59 = vmul.f32 0.5, %v1989_v42 }
 0x66d   :  { %3852 = vtanh.f32 %v1999_v33 }
 0x66e   :  { %3854 = vtanh.f32 %v1988_v17 }
 0x66f   :  { %3856 = vtanh.f32 %v2008_v40 }
 0x670   :  { %3858 = vtanh.f32 %v2009_v59 }
 0x674   :  { %v3845_v1 = vpop.eup %3844 }
 0x675   :  { %v1994_v53 = vmul.f32 0.5, %v3845_v1 }
 0x676   :  { %v3847_v56 = vpop.eup %3846 }
 0x677   :  { %v3849_v57 = vpop.eup %3848  ;;  %v1996_v54 = vadd.f32 0.5, %v1994_v53  ;;  %v2002_v58 = vmul.f32 0.5, %v3847_v56 }
 0x678   :  { %v3851_v61 = vpop.eup %3850 }
 0x679   :  { %v2004_v3 = vadd.f32 0.5, %v2002_v58  ;;  %v2018_v2 = vmul.f32 %v3849_v57, %v1996_v54  ;;  %v1995_v63 = vmul.f32 0.5, %v3851_v61  ;;  %v6047_v61 = vld [vmem:[#allocation65_spill] sm:$0xff] }
 0x67a   :  { %v3853_v39 = vpop.eup %3852 }
 0x67b   :  { %v2016_v4 = vmul.f32 %v2004_v3, %v5135_v41  ;;  %v1997_v60 = vadd.f32 0.5, %v1995_v63  ;;  %v2003_v5 = vmul.f32 0.5, %v3853_v39  ;;  %v3855_v17 = vpop.eup %3854  ;;  %v551_v3 = vadd.f32 %v6047_v61, %v4814_v10 }
 0x67c   :  { %v3857_v11 = vpop.eup %3856 }
 0x67d   :  { %v5193_v33 = vadd.f32 %v2018_v2, %v2016_v4  ;;  %v2005_v36 = vadd.f32 0.5, %v2003_v5  ;;  %v2019_v21 = vmul.f32 %v3855_v17, %v1997_v60  ;;  %v2012_v38 = vmul.f32 0.5, %v3857_v11  ;;  %v3859_v40 = vpop.eup %3858  ;;  %v6048_v60 = vld [vmem:[#allocation64_spill] sm:$0xff]  ;;  %v6049_v11 = vld [vmem:[#allocation62_spill] sm:$0xff] }
 0x67e   :  { %v2013_v42 = vmul.f32 0.5, %v3859_v40  ;;  %v742_v5 = vadd.f32 %v6048_v60, %v4816_v7 }
 0x67f   :  { %3860 = vtanh.f32 %v5193_v33  ;;  %v2017_v55 = vmul.f32 %v2005_v36, %v5139_v43  ;;  %v2014_v41 = vadd.f32 0.5, %v2012_v38  ;;  %v740_v38 = vadd.f32 %v6049_v11, %v4832_v16  ;;  %v5264_v11 = vld [vmem:[#allocation10 + $0xc4] ss:$16 sps:$4 sm:$0xff]  }
 0x680   :  { %v2015_v56 = vadd.f32 0.5, %v2013_v42  ;;  %v6050_v42 = vld [vmem:[#allocation66_spill] sm:$0xff] }
 0x681   :  { %v5197_v37 = vadd.f32 %v2019_v21, %v2017_v55 }
 0x683   :  { %3862 = vtanh.f32 %v5197_v37 }
 0x68c   :  { %v3861_v1 = vpop.eup %3860 }
 0x68d   :  { %v2024_v53 = vmul.f32 %v3861_v1, %v2014_v41  ;;  %v744_v1 = vadd.f32 %v6050_v42, %v4832_v16  ;;  %v5278_v42 = vld [vmem:[#allocation10 + $0xa4] ss:$16 sps:$4 sm:$0xff]  }
 0x68f   :  { %2027 = vst [vmem:[#allocation14 + $0x50] sm:$0xff] %v2024_v53 }
 0x690   :  { %v3863_v57 = vpop.eup %3862 }
 0x691   :  { %v2025_v54 = vmul.f32 %v3863_v57, %v2015_v56 }
 0x693   :  { %2028 = vst [vmem:[#allocation14 + $0x58] sm:$0xff] %v2025_v54  ;;  %v2040_v58 = vpack.c.bf16 %v2025_v54, %v2024_v53 }
 0x695   :  { %2074 = vmatmul.mubr.bf16.vlgmr.msra.gmra.mxu0 %v2040_v58  ;;  %2117 = vmatmul.mubr.bf16.vlgmr.msra.gmra.mxu1 %v2040_v58 }
 0x696   :  { %2187 = vmatpush1.bf16.msra.mxu0 %v4904_v8  ;;  %2230 = vmatpush1.bf16.msra.mxu1 %v4907_v0  ;;  %v6043_v8 = vld [vmem:[#allocation59_spill] sm:$0xff] }
 0x697   :  { %2188 = vmatprep.subr.bf16.mxu0 %v4910_v27  ;;  %2231 = vmatprep.subr.bf16.mxu1 %v4913_v62  ;;  %v545_v0 = vadd.f32 %v6043_v8, %v4808_v20 }
 0x698   :  { %2218 = vmatprep.mubr.bf16.mxu0 %v6005_v24  ;;  %2261 = vmatprep.mubr.bf16.mxu1 %v6005_v24 }
 0x69a   :  { %2189 = vmatpush1.bf16.msra.mxu0 %v4918_v44  ;;  %2232 = vmatpush1.bf16.msra.mxu1 %v4921_v9  ;;  %v6044_v44 = vld [vmem:[#allocation61_spill] sm:$0xff] }
 0x69b   :  { %2190 = vmatprep.subr.bf16.mxu0 %v4924_v12  ;;  %2233 = vmatprep.subr.bf16.mxu1 %v4927_v26  ;;  %v547_v9 = vadd.f32 %v6044_v44, %v4814_v10  ;;  %v6045_v26 = vld [vmem:[#allocation60_spill] sm:$0xff] }
 0x69e   :  { %2191 = vmatpush1.bf16.msra.mxu0 %v4930_v50  ;;  %2234 = vmatpush1.bf16.msra.mxu1 %v4933_v13  ;;  %v738_v50 = vadd.f32 %v6045_v26, %v4816_v7 }
 0x69f   :  { %2192 = vmatprep.subr.bf16.mxu0 %v4936_v15  ;;  %2235 = vmatprep.subr.bf16.mxu1 %v4939_v32  ;;  %v6046_v32 = vld [vmem:[#allocation63_spill] sm:$0xff] }
 0x6a2   :  { %2193 = vmatpush1.bf16.msra.mxu0 %v4942_v35  ;;  %2236 = vmatpush1.bf16.msra.mxu1 %v5007_v49  ;;  %v549_v35 = vadd.f32 %v6046_v32, %v4808_v20 }
 0x6a3   :  { %2194 = vmatprep.subr.bf16.mxu0 %v5010_v45  ;;  %2237 = vmatprep.subr.bf16.mxu1 %v5013_v46 }
 0x6a6   :  { %2195 = vmatpush1.bf16.msra.mxu0 %v5016_v47  ;;  %2238 = vmatpush1.bf16.msra.mxu1 %v5019_v34 }
 0x6a7   :  { %2196 = vmatprep.subr.bf16.mxu0 %v5022_v48  ;;  %2239 = vmatprep.subr.bf16.mxu1 %v5025_v29 }
 0x6aa   :  { %2197 = vmatpush1.bf16.msra.mxu0 %v5028_v23  ;;  %2240 = vmatpush1.bf16.msra.mxu1 %v5031_v18 }
 0x6ab   :  { %2198 = vmatprep.subr.bf16.mxu0 %v5034_v6  ;;  %2241 = vmatprep.subr.bf16.mxu1 %v5037_v31 }
 0x6ae   :  { %2199 = vmatpush1.bf16.msra.mxu0 %v5040_v14  ;;  %2242 = vmatpush1.bf16.msra.mxu1 %v5043_v22 }
 0x6af   :  { %2200 = vmatprep.subr.bf16.mxu0 %v5046_v30  ;;  %2243 = vmatprep.subr.bf16.mxu1 %v5049_v19 }
 0x6b2   :  { %2201 = vmatpush1.bf16.msra.mxu0 %v5052_v25  ;;  %2244 = vmatpush1.bf16.msra.mxu1 %v5055_v28 }
 0x6b3   :  { %2331 = vmatprep.subr.bf16.mxu0 %v4962_v51  ;;  %2374 = vmatprep.subr.bf16.mxu1 %v4965_v52 }
 0x755   :  { %v2075_v27 = vpop.f32.mrf.mxu0  ;;  %v2118_v62 = vpop.f32.mrf.mxu1 }
 0x756   :  { %v2127_v12 = vadd.f32 %v2075_v27, %v545_v0  ;;  %v2129_v52 = vadd.f32 %v2118_v62, %v738_v50 }
 0x757   :  { %v2077_v13 = vpop.f32.mrf.mxu0  ;;  %v2120_v15 = vpop.f32.mrf.mxu1 }
 0x758   :  { %v2135_v51 = vmul.f32 0.5, %v2127_v12  ;;  %v2128_v43 = vadd.f32 %v2077_v13, %v547_v9  ;;  %v2130_v40 = vadd.f32 %v2120_v15, %v740_v38  ;;  %v5267_v38 = vld [vmem:[#allocation10 + $0xcc] ss:$16 sps:$4 sm:$0xff]  }
 0x759   :  { %v2079_v59 = vpop.f32.mrf.mxu0  ;;  %v2122_v39 = vpop.f32.mrf.mxu1 }
 0x75a   :  { %3864 = vtanh.f32 %v2135_v51  ;;  %v2143_v2 = vmul.f32 0.5, %v2128_v43  ;;  %v2131_v63 = vadd.f32 %v2079_v59, %v549_v35  ;;  %v2133_v21 = vadd.f32 %v2122_v39, %v742_v5 }
 0x75b   :  { %v2081_v4 = vpop.f32.mrf.mxu0  ;;  %v2124_v41 = vpop.f32.mrf.mxu1  ;;  %v2153_v53 = vmul.f32 0.5, %v2130_v40  ;;  %v5272_v40 = vld [vmem:[#allocation10 + $0xc0] ss:$16 sps:$4 sm:$0xff]  }
 0x75c   :  { %3866 = vtanh.f32 %v2143_v2  ;;  %v2136_v17 = vmul.f32 0.5, %v2131_v63  ;;  %v2132_v36 = vadd.f32 %v2081_v4, %v551_v3  ;;  %v2134_v56 = vadd.f32 %v2124_v41, %v744_v1  ;;  %v5275_v41 = vld [vmem:[#allocation10 + $0xc8] ss:$16 sps:$4 sm:$0xff]   ;;  %v5281_v1 = vld [vmem:[#allocation10 + $0xac] ss:$16 sps:$4 sm:$0xff]  }
 0x75d   :  { %3868 = vtanh.f32 %v2129_v52 }
 0x75e   :  { %3870 = vtanh.f32 %v2136_v17  ;;  %v2144_v55 = vmul.f32 0.5, %v2132_v36  ;;  %v2154_v62 = vmul.f32 0.5, %v2134_v56  ;;  %v5287_v56 = vld [vmem:[#allocation10 + $0xa8] ss:$16 sps:$4 sm:$0xff]  }
 0x760   :  { %3872 = vtanh.f32 %v2144_v55  ;;  %v5261_v55 = vld [vmem:[#allocation10 + $0xe8] ss:$16 sps:$4 sm:$0xff]  }
 0x761   :  { %3874 = vtanh.f32 %v2133_v21 }
 0x762   :  { %3876 = vtanh.f32 %v2153_v53  ;;  %v5284_v53 = vld [vmem:[#allocation10 + $0xa0] ss:$16 sps:$4 sm:$0xff]  }
 0x763   :  { %3878 = vtanh.f32 %v2154_v62 }
 0x767   :  { %v3865_v57 = vpop.eup %3864 }
 0x768   :  { %v2139_v54 = vmul.f32 0.5, %v3865_v57  ;;  %v5290_v57 = vld [vmem:[#allocation10 + $0x84] ss:$16 sps:$4 sm:$0xff]  }
 0x769   :  { %v3867_v58 = vpop.eup %3866 }
 0x76a   :  { %v3869_v8 = vpop.eup %3868  ;;  %v2141_v0 = vadd.f32 0.5, %v2139_v54  ;;  %v2147_v27 = vmul.f32 0.5, %v3867_v58  ;;  %v5293_v54 = vld [vmem:[#allocation10 + $0x8c] ss:$16 sps:$4 sm:$0xff]   ;;  %v5296_v58 = vld [vmem:[#allocation10 + $0x80] ss:$16 sps:$4 sm:$0xff]  }
 0x76b   :  { %v3871_v44 = vpop.eup %3870 }
 0x76c   :  { %v2149_v9 = vadd.f32 0.5, %v2147_v27  ;;  %v2163_v12 = vmul.f32 %v3869_v8, %v2141_v0  ;;  %v2140_v26 = vmul.f32 0.5, %v3871_v44  ;;  %v6055_v27 = vld [vmem:[#allocation73_spill] sm:$0xff] }
 0x76d   :  { %v3873_v50 = vpop.eup %3872  ;;  %v561_v62 = vadd.f32 %v6055_v27, %v4814_v10 }
 0x76e   :  { %v2161_v13 = vmul.f32 %v2149_v9, %v5193_v33  ;;  %v2142_v15 = vadd.f32 0.5, %v2140_v26  ;;  %v2148_v32 = vmul.f32 0.5, %v3873_v50  ;;  %v3875_v35 = vpop.eup %3874  ;;  %v6056_v50 = vld [vmem:[#allocation72_spill] sm:$0xff] }
 0x76f   :  { %v3877_v3 = vpop.eup %3876 }
 0x770   :  { %v5251_v51 = vadd.f32 %v2163_v12, %v2161_v13  ;;  %v2150_v43 = vadd.f32 0.5, %v2148_v32  ;;  %v2164_v52 = vmul.f32 %v3875_v35, %v2142_v15  ;;  %v2157_v2 = vmul.f32 0.5, %v3877_v3  ;;  %v3879_v63 = vpop.eup %3878 }
 0x771   :  { %v2158_v39 = vmul.f32 0.5, %v3879_v63  ;;  %v752_v13 = vadd.f32 %v6056_v50, %v4816_v7  ;;  %v6058_v63 = vld [vmem:[#allocation74_spill] sm:$0xff] }
 0x772   :  { %3880 = vtanh.f32 %v5251_v51  ;;  %v2162_v59 = vmul.f32 %v2150_v43, %v5197_v37  ;;  %v2159_v33 = vadd.f32 0.5, %v2157_v2  ;;  %v5258_v37 = vld [vmem:[#allocation10 + $0xe0] ss:$16 sps:$4 sm:$0xff]  }
 0x773   :  { %v2160_v5 = vadd.f32 0.5, %v2158_v39 }
 0x774   :  { %v5255_v61 = vadd.f32 %v2164_v52, %v2162_v59  ;;  %v6057_v52 = vld [vmem:[#allocation70_spill] sm:$0xff] }
 0x775   :  { %v750_v59 = vadd.f32 %v6057_v52, %v4832_v16  ;;  %v5373_v52 = vld [vmem:[#allocation10 + $0x68] ss:$16 sps:$4 sm:$0xff]  }
 0x776   :  { %3882 = vtanh.f32 %v5255_v61 }
 0x77f   :  { %v3881_v4 = vpop.eup %3880 }
 0x780   :  { %v2169_v60 = vmul.f32 %v3881_v4, %v2159_v33  ;;  %v754_v33 = vadd.f32 %v6058_v63, %v4832_v16  ;;  %v5385_v63 = vld [vmem:[#allocation10 + $0x48] ss:$16 sps:$4 sm:$0xff]  }
 0x782   :  { %2172 = vst [vmem:[#allocation14 + $0x60] sm:$0xff] %v2169_v60 }
 0x783   :  { %v3883_v17 = vpop.eup %3882 }
 0x784   :  { %v2170_v36 = vmul.f32 %v3883_v17, %v2160_v5 }
 0x786   :  { %2173 = vst [vmem:[#allocation14 + $0x68] sm:$0xff] %v2170_v36  ;;  %v2185_v21 = vpack.c.bf16 %v2170_v36, %v2169_v60 }
 0x788   :  { %2219 = vmatmul.mubr.bf16.vlgmr.msra.gmra.mxu0 %v2185_v21  ;;  %2262 = vmatmul.mubr.bf16.vlgmr.msra.gmra.mxu1 %v2185_v21 }
 0x789   :  { %2332 = vmatpush1.bf16.msra.mxu0 %v5258_v37  ;;  %2375 = vmatpush1.bf16.msra.mxu1 %v5261_v55 }
 0x78a   :  { %2333 = vmatprep.subr.bf16.mxu0 %v5264_v11  ;;  %2376 = vmatprep.subr.bf16.mxu1 %v5267_v38 }
 0x78b   :  { %2363 = vmatprep.mubr.bf16.mxu0 %v6005_v24  ;;  %2406 = vmatprep.mubr.bf16.mxu1 %v6005_v24 }
 0x78d   :  { %2334 = vmatpush1.bf16.msra.mxu0 %v5272_v40  ;;  %2377 = vmatpush1.bf16.msra.mxu1 %v5275_v41 }
 0x78e   :  { %2335 = vmatprep.subr.bf16.mxu0 %v5278_v42  ;;  %2378 = vmatprep.subr.bf16.mxu1 %v5281_v1 }
 0x791   :  { %2336 = vmatpush1.bf16.msra.mxu0 %v5284_v53  ;;  %2379 = vmatpush1.bf16.msra.mxu1 %v5287_v56 }
 0x792   :  { %2337 = vmatprep.subr.bf16.mxu0 %v5290_v57  ;;  %2380 = vmatprep.subr.bf16.mxu1 %v5293_v54 }
 0x795   :  { %2338 = vmatpush1.bf16.msra.mxu0 %v5296_v58  ;;  %2381 = vmatpush1.bf16.msra.mxu1 %v5007_v49  ;;  %v5316_v49 = vld [vmem:[#allocation10 + $0xe4] ss:$16 sps:$4 sm:$0xff]  }
 0x796   :  { %2339 = vmatprep.subr.bf16.mxu0 %v5010_v45  ;;  %2382 = vmatprep.subr.bf16.mxu1 %v5013_v46  ;;  %v5319_v45 = vld [vmem:[#allocation10 + $0xec] ss:$16 sps:$4 sm:$0xff]  }
 0x797   :  { %v6051_v46 = vld [vmem:[#allocation67_spill] sm:$0xff] }
 0x799   :  { %2340 = vmatpush1.bf16.msra.mxu0 %v5016_v47  ;;  %2383 = vmatpush1.bf16.msra.mxu1 %v5019_v34  ;;  %v555_v47 = vadd.f32 %v6051_v46, %v4808_v20 }
 0x79a   :  { %2341 = vmatprep.subr.bf16.mxu0 %v5022_v48  ;;  %2384 = vmatprep.subr.bf16.mxu1 %v5025_v29  ;;  %v6052_v29 = vld [vmem:[#allocation69_spill] sm:$0xff] }
 0x79d   :  { %2342 = vmatpush1.bf16.msra.mxu0 %v5028_v23  ;;  %2385 = vmatpush1.bf16.msra.mxu1 %v5031_v18  ;;  %v557_v23 = vadd.f32 %v6052_v29, %v4814_v10 }
 0x79e   :  { %2343 = vmatprep.subr.bf16.mxu0 %v5034_v6  ;;  %2386 = vmatprep.subr.bf16.mxu1 %v5037_v31  ;;  %v6053_v6 = vld [vmem:[#allocation68_spill] sm:$0xff] }
 0x79f   :  { %v748_v31 = vadd.f32 %v6053_v6, %v4816_v7 }
 0x7a1   :  { %2344 = vmatpush1.bf16.msra.mxu0 %v5040_v14  ;;  %2387 = vmatpush1.bf16.msra.mxu1 %v5043_v22 }
 0x7a2   :  { %2345 = vmatprep.subr.bf16.mxu0 %v5046_v30  ;;  %2388 = vmatprep.subr.bf16.mxu1 %v5049_v19  ;;  %v6054_v30 = vld [vmem:[#allocation71_spill] sm:$0xff] }
 0x7a3   :  { %v559_v19 = vadd.f32 %v6054_v30, %v4808_v20 }
 0x7a5   :  { %2346 = vmatpush1.bf16.msra.mxu0 %v5052_v25  ;;  %2389 = vmatpush1.bf16.msra.mxu1 %v5055_v28 }
 0x7a6   :  { %2476 = vmatprep.subr.bf16.mxu0 %v5316_v49  ;;  %2519 = vmatprep.subr.bf16.mxu1 %v5319_v45 }
 0x848   :  { %v2220_v34 = vpop.f32.mrf.mxu0  ;;  %v2263_v48 = vpop.f32.mrf.mxu1 }
 0x849   :  { %v2272_v18 = vadd.f32 %v2220_v34, %v555_v47  ;;  %v2274_v8 = vadd.f32 %v2263_v48, %v748_v31 }
 0x84a   :  { %v2222_v14 = vpop.f32.mrf.mxu0  ;;  %v2265_v22 = vpop.f32.mrf.mxu1 }
 0x84b   :  { %v2280_v25 = vmul.f32 0.5, %v2272_v18  ;;  %v2273_v28 = vadd.f32 %v2222_v14, %v557_v23  ;;  %v2275_v3 = vadd.f32 %v2265_v22, %v750_v59  ;;  %v5376_v59 = vld [vmem:[#allocation10 + $0x44] ss:$16 sps:$4 sm:$0xff]  }
 0x84c   :  { %v2224_v0 = vpop.f32.mrf.mxu0  ;;  %v2267_v12 = vpop.f32.mrf.mxu1 }
 0x84d   :  { %3884 = vtanh.f32 %v2280_v25  ;;  %v2288_v44 = vmul.f32 0.5, %v2273_v28  ;;  %v2276_v9 = vadd.f32 %v2224_v0, %v559_v19  ;;  %v2278_v35 = vadd.f32 %v2267_v12, %v752_v13 }
 0x84e   :  { %v2226_v26 = vpop.f32.mrf.mxu0  ;;  %v2269_v2 = vpop.f32.mrf.mxu1  ;;  %v2298_v39 = vmul.f32 0.5, %v2275_v3  ;;  %v5379_v3 = vld [vmem:[#allocation10 + $0x4c] ss:$16 sps:$4 sm:$0xff]  }
 0x84f   :  { %3886 = vtanh.f32 %v2288_v44  ;;  %v2281_v15 = vmul.f32 0.5, %v2276_v9  ;;  %v2277_v32 = vadd.f32 %v2226_v26, %v561_v62  ;;  %v2279_v4 = vadd.f32 %v2269_v2, %v754_v33  ;;  %v5382_v2 = vld [vmem:[#allocation10 + $0x40] ss:$16 sps:$4 sm:$0xff]   ;;  %v5388_v33 = vld [vmem:[#allocation10 + $0x24] ss:$16 sps:$4 sm:$0xff]  }
 0x850   :  { %3888 = vtanh.f32 %v2274_v8 }
 0x851   :  { %3890 = vtanh.f32 %v2281_v15  ;;  %v2289_v43 = vmul.f32 0.5, %v2277_v32  ;;  %v2299_v47 = vmul.f32 0.5, %v2279_v4  ;;  %v5364_v32 = vld [vmem:[#allocation10 + $0x64] ss:$16 sps:$4 sm:$0xff]   ;;  %v5394_v4 = vld [vmem:[#allocation10 + $0x20] ss:$16 sps:$4 sm:$0xff]  }
 0x853   :  { %3892 = vtanh.f32 %v2289_v43  ;;  %v5370_v43 = vld [vmem:[#allocation10 + $0x60] ss:$16 sps:$4 sm:$0xff]  }
 0x854   :  { %3894 = vtanh.f32 %v2278_v35  ;;  %v5367_v35 = vld [vmem:[#allocation10 + $0x6c] ss:$16 sps:$4 sm:$0xff]  }
 0x855   :  { %3896 = vtanh.f32 %v2298_v39  ;;  %v5391_v39 = vld [vmem:[#allocation10 + $0x2c] ss:$16 sps:$4 sm:$0xff]  }
 0x856   :  { %3898 = vtanh.f32 %v2299_v47 }
 0x85a   :  { %v3885_v60 = vpop.eup %3884 }
 0x85b   :  { %v2284_v5 = vmul.f32 0.5, %v3885_v60  ;;  %v5397_v60 = vld [vmem:[#allocation10 + $0x28] ss:$16 sps:$4 sm:$0xff]  }
 0x85c   :  { %v3887_v17 = vpop.eup %3886 }
 0x85d   :  { %v3889_v36 = vpop.eup %3888  ;;  %v2286_v21 = vadd.f32 0.5, %v2284_v5  ;;  %v2292_v46 = vmul.f32 0.5, %v3887_v17  ;;  %v5400_v5 = vld [vmem:[#allocation10 + $0x4] ss:$16 sps:$4 sm:$0xff]   ;;  %v5403_v17 = vld [vmem:[#allocation10 + $0xc] ss:$16 sps:$4 sm:$0xff]  }
 0x85e   :  { %v3891_v34 = vpop.eup %3890 }
 0x85f   :  { %v2294_v48 = vadd.f32 0.5, %v2292_v46  ;;  %v2308_v29 = vmul.f32 %v3889_v36, %v2286_v21  ;;  %v2285_v23 = vmul.f32 0.5, %v3891_v34  ;;  %v5406_v36 = vld [vmem:[#allocation10] ss:$16 sps:$4 sm:$0xff]   ;;  %v5409_v21 = vld [vmem:[#allocation10 + $0x8] ss:$16 sps:$4 sm:$0xff]  }
 0x860   :  { %v3893_v18 = vpop.eup %3892  ;;  %v6059_v46 = vld [vmem:[#allocation75_spill] sm:$0xff] }
 0x861   :  { %v2306_v6 = vmul.f32 %v2294_v48, %v5251_v51  ;;  %v2287_v31 = vadd.f32 0.5, %v2285_v23  ;;  %v2293_v14 = vmul.f32 0.5, %v3893_v18  ;;  %v3895_v22 = vpop.eup %3894  ;;  %v565_v47 = vadd.f32 %v6059_v46, %v4808_v20 }
 0x862   :  { %v3897_v0 = vpop.eup %3896 }
 0x863   :  { %v5339_v30 = vadd.f32 %v2308_v29, %v2306_v6  ;;  %v2295_v19 = vadd.f32 0.5, %v2293_v14  ;;  %v2309_v25 = vmul.f32 %v3895_v22, %v2287_v31  ;;  %v2302_v27 = vmul.f32 0.5, %v3897_v0  ;;  %v3899_v62 = vpop.eup %3898  ;;  %v6060_v29 = vld [vmem:[#allocation77_spill] sm:$0xff]  ;;  %v6061_v6 = vld [vmem:[#allocation76_spill] sm:$0xff] }
 0x864   :  { %v2303_v44 = vmul.f32 0.5, %v3899_v62  ;;  %v567_v23 = vadd.f32 %v6060_v29, %v4814_v10  ;;  %v758_v31 = vadd.f32 %v6061_v6, %v4816_v7 }
 0x865   :  { %3900 = vtanh.f32 %v5339_v30  ;;  %v2307_v28 = vmul.f32 %v2295_v19, %v5255_v61  ;;  %v2304_v51 = vadd.f32 0.5, %v2302_v27  ;;  %v5361_v61 = vld [vmem:[#allocation10 + $0x88] ss:$16 sps:$4 sm:$0xff]  }
 0x866   :  { %v2305_v26 = vadd.f32 0.5, %v2303_v44  ;;  %v6062_v19 = vld [vmem:[#allocation79_spill] sm:$0xff] }
 0x867   :  { %v5343_v8 = vadd.f32 %v2309_v25, %v2307_v28  ;;  %v569_v25 = vadd.f32 %v6062_v19, %v4808_v20 }
 0x869   :  { %3902 = vtanh.f32 %v5343_v8 }
 0x872   :  { %v3901_v9 = vpop.eup %3900 }
 0x873   :  { %v2314_v12 = vmul.f32 %v3901_v9, %v2304_v51  ;;  %v6063_v51 = vld [vmem:[#allocation81_spill] sm:$0xff] }
 0x874   :  { %v571_v44 = vadd.f32 %v6063_v51, %v4814_v10 }
 0x875   :  { %2317 = vst [vmem:[#allocation14 + $0x70] sm:$0xff] %v2314_v12 }
 0x876   :  { %v3903_v50 = vpop.eup %3902 }
 0x877   :  { %v2315_v13 = vmul.f32 %v3903_v50, %v2305_v26 }
 0x879   :  { %2318 = vst [vmem:[#allocation14 + $0x78] sm:$0xff] %v2315_v13  ;;  %v2330_v15 = vpack.c.bf16 %v2315_v13, %v2314_v12  ;;  %v6064_v13 = vld [vmem:[#allocation80_spill] sm:$0xff] }
 0x87b   :  { %2364 = vmatmul.mubr.bf16.vlgmr.msra.gmra.mxu0 %v2330_v15  ;;  %2407 = vmatmul.mubr.bf16.vlgmr.msra.gmra.mxu1 %v2330_v15  ;;  %v762_v15 = vadd.f32 %v6064_v13, %v4816_v7 }
 0x87c   :  { %2477 = vmatpush1.bf16.msra.mxu0 %v5258_v37  ;;  %2520 = vmatpush1.bf16.msra.mxu1 %v5261_v55 }
 0x87d   :  { %2478 = vmatprep.subr.bf16.mxu0 %v5264_v11  ;;  %2521 = vmatprep.subr.bf16.mxu1 %v5267_v38 }
 0x87e   :  { %2508 = vmatprep.mubr.bf16.mxu0 %v6005_v24  ;;  %2551 = vmatprep.mubr.bf16.mxu1 %v6005_v24 }
 0x880   :  { %2479 = vmatpush1.bf16.msra.mxu0 %v5272_v40  ;;  %2522 = vmatpush1.bf16.msra.mxu1 %v5275_v41 }
 0x881   :  { %2480 = vmatprep.subr.bf16.mxu0 %v5278_v42  ;;  %2523 = vmatprep.subr.bf16.mxu1 %v5281_v1 }
 0x884   :  { %2481 = vmatpush1.bf16.msra.mxu0 %v5284_v53  ;;  %2524 = vmatpush1.bf16.msra.mxu1 %v5287_v56 }
 0x885   :  { %2482 = vmatprep.subr.bf16.mxu0 %v5290_v57  ;;  %2525 = vmatprep.subr.bf16.mxu1 %v5293_v54 }
 0x888   :  { %2483 = vmatpush1.bf16.msra.mxu0 %v5296_v58  ;;  %2526 = vmatpush1.bf16.msra.mxu1 %v5361_v61 }
 0x889   :  { %2484 = vmatprep.subr.bf16.mxu0 %v5364_v32  ;;  %2527 = vmatprep.subr.bf16.mxu1 %v5367_v35 }
 0x88c   :  { %2485 = vmatpush1.bf16.msra.mxu0 %v5370_v43  ;;  %2528 = vmatpush1.bf16.msra.mxu1 %v5373_v52 }
 0x88d   :  { %2486 = vmatprep.subr.bf16.mxu0 %v5376_v59  ;;  %2529 = vmatprep.subr.bf16.mxu1 %v5379_v3 }
 0x890   :  { %2487 = vmatpush1.bf16.msra.mxu0 %v5382_v2  ;;  %2530 = vmatpush1.bf16.msra.mxu1 %v5385_v63 }
 0x891   :  { %2488 = vmatprep.subr.bf16.mxu0 %v5388_v33  ;;  %2531 = vmatprep.subr.bf16.mxu1 %v5391_v39 }
 0x894   :  { %2489 = vmatpush1.bf16.msra.mxu0 %v5394_v4  ;;  %2532 = vmatpush1.bf16.msra.mxu1 %v5397_v60 }
 0x895   :  { %2490 = vmatprep.subr.bf16.mxu0 %v5400_v5  ;;  %2533 = vmatprep.subr.bf16.mxu1 %v5403_v17 }
 0x898   :  { %2491 = vmatpush1.bf16.msra.mxu0 %v5406_v36  ;;  %2534 = vmatpush1.bf16.msra.mxu1 %v5409_v21 }
 0x899   :  { %2621 = vmatprep.subr.bf16.mxu0 %v5316_v49  ;;  %2664 = vmatprep.subr.bf16.mxu1 %v5319_v45 }
 0x93b   :  { %v2365_v34 = vpop.f32.mrf.mxu0  ;;  %v2408_v48 = vpop.f32.mrf.mxu1 }
 0x93c   :  { %v2417_v18 = vadd.f32 %v2365_v34, %v565_v47  ;;  %v2419_v27 = vadd.f32 %v2408_v48, %v758_v31  ;;  %v6065_v48 = vld [vmem:[#allocation78_spill] sm:$0xff] }
 0x93d   :  { %v2367_v14 = vpop.f32.mrf.mxu0  ;;  %v2410_v22 = vpop.f32.mrf.mxu1  ;;  %v6066_v31 = vld [vmem:[#allocation82_spill] sm:$0xff] }
 0x93e   :  { %v2425_v28 = vmul.f32 0.5, %v2417_v18  ;;  %v2418_v0 = vadd.f32 %v2367_v14, %v567_v23  ;;  %v760_v23 = vadd.f32 %v6065_v48, %v4832_v16  ;;  %v764_v14 = vadd.f32 %v6066_v31, %v4832_v16 }
 0x93f   :  { %v2369_v62 = vpop.f32.mrf.mxu0  ;;  %v2412_v26 = vpop.f32.mrf.mxu1 }
 0x940   :  { %3904 = vtanh.f32 %v2425_v28  ;;  %v2433_v9 = vmul.f32 0.5, %v2418_v0  ;;  %v2421_v12 = vadd.f32 %v2369_v62, %v569_v25  ;;  %v2423_v34 = vadd.f32 %v2412_v26, %v762_v15 }
 0x941   :  { %v2371_v50 = vpop.f32.mrf.mxu0  ;;  %v2420_v18 = vadd.f32 %v2410_v22, %v760_v23  ;;  %v2414_v6 = vpop.f32.mrf.mxu1 }
 0x942   :  { %3906 = vtanh.f32 %v2433_v9  ;;  %v2426_v46 = vmul.f32 0.5, %v2421_v12  ;;  %v2422_v47 = vadd.f32 %v2371_v50, %v571_v44  ;;  %v2424_v25 = vadd.f32 %v2414_v6, %v764_v14 }
 0x943   :  { %3908 = vtanh.f32 %v2419_v27  ;;  %v2443_v19 = vmul.f32 0.5, %v2420_v18 }
 0x944   :  { %3910 = vtanh.f32 %v2426_v46  ;;  %v2434_v29 = vmul.f32 0.5, %v2422_v47  ;;  %v2444_v9 = vmul.f32 0.5, %v2424_v25 }
 0x946   :  { %3912 = vtanh.f32 %v2434_v29 }
 0x947   :  { %3914 = vtanh.f32 %v2423_v34 }
 0x948   :  { %3916 = vtanh.f32 %v2443_v19 }
 0x949   :  { %3918 = vtanh.f32 %v2444_v9 }
 0x94d   :  { %v3905_v28 = vpop.eup %3904 }
 0x94e   :  { %v2429_v0 = vmul.f32 0.5, %v3905_v28 }
 0x94f   :  { %v3907_v62 = vpop.eup %3906 }
 0x950   :  { %v3909_v51 = vpop.eup %3908  ;;  %v2431_v27 = vadd.f32 0.5, %v2429_v0  ;;  %v2437_v44 = vmul.f32 0.5, %v3907_v62 }
 0x951   :  { %v3911_v12 = vpop.eup %3910 }
 0x952   :  { %v2439_v26 = vadd.f32 0.5, %v2437_v44  ;;  %v2453_v50 = vmul.f32 %v3909_v51, %v2431_v27  ;;  %v2430_v13 = vmul.f32 0.5, %v3911_v12 }
 0x953   :  { %v3913_v22 = vpop.eup %3912 }
 0x954   :  { %v2451_v15 = vmul.f32 %v2439_v26, %v5339_v30  ;;  %v2432_v46 = vadd.f32 0.5, %v2430_v13  ;;  %v2438_v47 = vmul.f32 0.5, %v3913_v22  ;;  %v3915_v34 = vpop.eup %3914 }
 0x955   :  { %v3917_v31 = vpop.eup %3916 }
 0x956   :  { %v5431_v29 = vadd.f32 %v2453_v50, %v2451_v15  ;;  %v2440_v48 = vadd.f32 0.5, %v2438_v47  ;;  %v2454_v23 = vmul.f32 %v3915_v34, %v2432_v46  ;;  %v2447_v14 = vmul.f32 0.5, %v3917_v31  ;;  %v3919_v19 = vpop.eup %3918  ;;  %v6068_v50 = vld [vmem:[#allocation85_spill] sm:$0xff]  ;;  %v6069_v15 = vld [vmem:[#allocation84_spill] sm:$0xff] }
 0x957   :  { %v2448_v25 = vmul.f32 0.5, %v3919_v19  ;;  %v577_v13 = vadd.f32 %v6068_v50, %v4814_v10  ;;  %v768_v46 = vadd.f32 %v6069_v15, %v4816_v7 }
 0x958   :  { %3920 = vtanh.f32 %v5431_v29  ;;  %v2452_v18 = vmul.f32 %v2440_v48, %v5343_v8  ;;  %v2449_v30 = vadd.f32 0.5, %v2447_v14  ;;  %v6067_v8 = vld [vmem:[#allocation83_spill] sm:$0xff] }
 0x959   :  { %v2450_v62 = vadd.f32 0.5, %v2448_v25  ;;  %v575_v9 = vadd.f32 %v6067_v8, %v4808_v20  ;;  %v6070_v48 = vld [vmem:[#allocation87_spill] sm:$0xff] }
 0x95a   :  { %v5435_v6 = vadd.f32 %v2454_v23, %v2452_v18  ;;  %v579_v23 = vadd.f32 %v6070_v48, %v4808_v20 }
 0x95c   :  { %3922 = vtanh.f32 %v5435_v6 }
 0x965   :  { %v3921_v28 = vpop.eup %3920 }
 0x966   :  { %v2459_v0 = vmul.f32 %v3921_v28, %v2449_v30  ;;  %v6071_v30 = vld [vmem:[#allocation89_spill] sm:$0xff] }
 0x967   :  { %v581_v25 = vadd.f32 %v6071_v30, %v4814_v10 }
 0x968   :  { %2462 = vst [vmem:[#allocation14 + $0x80] sm:$0xff] %v2459_v0 }
 0x969   :  { %v3923_v51 = vpop.eup %3922 }
 0x96a   :  { %v2460_v27 = vmul.f32 %v3923_v51, %v2450_v62 }
 0x96c   :  { %2463 = vst [vmem:[#allocation14 + $0x88] sm:$0xff] %v2460_v27  ;;  %v2475_v44 = vpack.c.bf16 %v2460_v27, %v2459_v0  ;;  %v6072_v27 = vld [vmem:[#allocation88_spill] sm:$0xff] }
 0x96e   :  { %2509 = vmatmul.mubr.bf16.vlgmr.msra.gmra.mxu0 %v2475_v44  ;;  %2552 = vmatmul.mubr.bf16.vlgmr.msra.gmra.mxu1 %v2475_v44  ;;  %v772_v44 = vadd.f32 %v6072_v27, %v4816_v7 }
 0x96f   :  { %2622 = vmatpush1.bf16.msra.mxu0 %v5258_v37  ;;  %2665 = vmatpush1.bf16.msra.mxu1 %v5261_v55 }
 0x970   :  { %2623 = vmatprep.subr.bf16.mxu0 %v5264_v11  ;;  %2666 = vmatprep.subr.bf16.mxu1 %v5267_v38 }
 0x971   :  { %2653 = vmatprep.mubr.bf16.mxu0 %v6005_v24  ;;  %2696 = vmatprep.mubr.bf16.mxu1 %v6005_v24 }
 0x973   :  { %2624 = vmatpush1.bf16.msra.mxu0 %v5272_v40  ;;  %2667 = vmatpush1.bf16.msra.mxu1 %v5275_v41 }
 0x974   :  { %2625 = vmatprep.subr.bf16.mxu0 %v5278_v42  ;;  %2668 = vmatprep.subr.bf16.mxu1 %v5281_v1 }
 0x977   :  { %2626 = vmatpush1.bf16.msra.mxu0 %v5284_v53  ;;  %2669 = vmatpush1.bf16.msra.mxu1 %v5287_v56 }
 0x978   :  { %2627 = vmatprep.subr.bf16.mxu0 %v5290_v57  ;;  %2670 = vmatprep.subr.bf16.mxu1 %v5293_v54 }
 0x97b   :  { %2628 = vmatpush1.bf16.msra.mxu0 %v5296_v58  ;;  %2671 = vmatpush1.bf16.msra.mxu1 %v5361_v61 }
 0x97c   :  { %2629 = vmatprep.subr.bf16.mxu0 %v5364_v32  ;;  %2672 = vmatprep.subr.bf16.mxu1 %v5367_v35 }
 0x97f   :  { %2630 = vmatpush1.bf16.msra.mxu0 %v5370_v43  ;;  %2673 = vmatpush1.bf16.msra.mxu1 %v5373_v52 }
 0x980   :  { %2631 = vmatprep.subr.bf16.mxu0 %v5376_v59  ;;  %2674 = vmatprep.subr.bf16.mxu1 %v5379_v3 }
 0x983   :  { %2632 = vmatpush1.bf16.msra.mxu0 %v5382_v2  ;;  %2675 = vmatpush1.bf16.msra.mxu1 %v5385_v63 }
 0x984   :  { %2633 = vmatprep.subr.bf16.mxu0 %v5388_v33  ;;  %2676 = vmatprep.subr.bf16.mxu1 %v5391_v39 }
 0x987   :  { %2634 = vmatpush1.bf16.msra.mxu0 %v5394_v4  ;;  %2677 = vmatpush1.bf16.msra.mxu1 %v5397_v60 }
 0x988   :  { %2635 = vmatprep.subr.bf16.mxu0 %v5400_v5  ;;  %2678 = vmatprep.subr.bf16.mxu1 %v5403_v17 }
 0x98b   :  { %2636 = vmatpush1.bf16.msra.mxu0 %v5406_v36  ;;  %2679 = vmatpush1.bf16.msra.mxu1 %v5409_v21 }
 0x98c   :  { %2766 = vmatprep.subr.bf16.mxu0 %v5316_v49  ;;  %2809 = vmatprep.subr.bf16.mxu1 %v5319_v45 }
 0xa2e   :  { %v2510_v12 = vpop.f32.mrf.mxu0  ;;  %v2553_v26 = vpop.f32.mrf.mxu1 }
 0xa2f   :  { %v2562_v22 = vadd.f32 %v2510_v12, %v575_v9  ;;  %v2564_v14 = vadd.f32 %v2553_v26, %v768_v46  ;;  %v6073_v26 = vld [vmem:[#allocation86_spill] sm:$0xff] }
 0xa30   :  { %v2512_v47 = vpop.f32.mrf.mxu0  ;;  %v2555_v34 = vpop.f32.mrf.mxu1  ;;  %v6074_v46 = vld [vmem:[#allocation90_spill] sm:$0xff] }
 0xa31   :  { %v2570_v18 = vmul.f32 0.5, %v2562_v22  ;;  %v2563_v31 = vadd.f32 %v2512_v47, %v577_v13  ;;  %v770_v13 = vadd.f32 %v6073_v26, %v4832_v16  ;;  %v774_v47 = vadd.f32 %v6074_v46, %v4832_v16 }
 0xa32   :  { %v2514_v19 = vpop.f32.mrf.mxu0  ;;  %v2557_v62 = vpop.f32.mrf.mxu1 }
 0xa33   :  { %3924 = vtanh.f32 %v2570_v18  ;;  %v2578_v28 = vmul.f32 0.5, %v2563_v31  ;;  %v2566_v0 = vadd.f32 %v2514_v19, %v579_v23  ;;  %v2568_v12 = vadd.f32 %v2557_v62, %v772_v44 }
 0xa34   :  { %v2516_v51 = vpop.f32.mrf.mxu0  ;;  %v2565_v22 = vadd.f32 %v2555_v34, %v770_v13  ;;  %v2559_v15 = vpop.f32.mrf.mxu1 }
 0xa35   :  { %3926 = vtanh.f32 %v2578_v28  ;;  %v2571_v8 = vmul.f32 0.5, %v2566_v0  ;;  %v2567_v9 = vadd.f32 %v2516_v51, %v581_v25  ;;  %v2569_v23 = vadd.f32 %v2559_v15, %v774_v47 }
 0xa36   :  { %3928 = vtanh.f32 %v2564_v14  ;;  %v2588_v48 = vmul.f32 0.5, %v2565_v22 }
 0xa37   :  { %3930 = vtanh.f32 %v2571_v8  ;;  %v2579_v50 = vmul.f32 0.5, %v2567_v9  ;;  %v2589_v28 = vmul.f32 0.5, %v2569_v23 }
 0xa39   :  { %3932 = vtanh.f32 %v2579_v50 }
 0xa3a   :  { %3934 = vtanh.f32 %v2568_v12 }
 0xa3b   :  { %3936 = vtanh.f32 %v2588_v48 }
 0xa3c   :  { %3938 = vtanh.f32 %v2589_v28 }
 0xa40   :  { %v3925_v18 = vpop.eup %3924 }
 0xa41   :  { %v2574_v31 = vmul.f32 0.5, %v3925_v18 }
 0xa42   :  { %v3927_v19 = vpop.eup %3926 }
 0xa43   :  { %v3929_v30 = vpop.eup %3928  ;;  %v2576_v14 = vadd.f32 0.5, %v2574_v31  ;;  %v2582_v25 = vmul.f32 0.5, %v3927_v19 }
 0xa44   :  { %v3931_v0 = vpop.eup %3930 }
 0xa45   :  { %v2584_v62 = vadd.f32 0.5, %v2582_v25  ;;  %v2598_v51 = vmul.f32 %v3929_v30, %v2576_v14  ;;  %v2575_v27 = vmul.f32 0.5, %v3931_v0 }
 0xa46   :  { %v3933_v34 = vpop.eup %3932 }
 0xa47   :  { %v2596_v44 = vmul.f32 %v2584_v62, %v5431_v29  ;;  %v2577_v8 = vadd.f32 0.5, %v2575_v27  ;;  %v2583_v9 = vmul.f32 0.5, %v3933_v34  ;;  %v3935_v12 = vpop.eup %3934 }
 0xa48   :  { %v3937_v46 = vpop.eup %3936 }
 0xa49   :  { %v5489_v50 = vadd.f32 %v2598_v51, %v2596_v44  ;;  %v2585_v26 = vadd.f32 0.5, %v2583_v9  ;;  %v2599_v13 = vmul.f32 %v3935_v12, %v2577_v8  ;;  %v2592_v47 = vmul.f32 0.5, %v3937_v46  ;;  %v3939_v48 = vpop.eup %3938  ;;  %v6076_v51 = vld [vmem:[#allocation93_spill] sm:$0xff]  ;;  %v6077_v44 = vld [vmem:[#allocation92_spill] sm:$0xff] }
 0xa4a   :  { %v2593_v23 = vmul.f32 0.5, %v3939_v48  ;;  %v587_v27 = vadd.f32 %v6076_v51, %v4814_v10  ;;  %v778_v8 = vadd.f32 %v6077_v44, %v4816_v7 }
 0xa4b   :  { %3940 = vtanh.f32 %v5489_v50  ;;  %v2597_v22 = vmul.f32 %v2585_v26, %v5435_v6  ;;  %v2594_v29 = vadd.f32 0.5, %v2592_v47  ;;  %v6075_v6 = vld [vmem:[#allocation91_spill] sm:$0xff] }
 0xa4c   :  { %v2595_v19 = vadd.f32 0.5, %v2593_v23  ;;  %v585_v28 = vadd.f32 %v6075_v6, %v4808_v20  ;;  %v6078_v26 = vld [vmem:[#allocation95_spill] sm:$0xff] }
 0xa4d   :  { %v5493_v15 = vadd.f32 %v2599_v13, %v2597_v22  ;;  %v589_v13 = vadd.f32 %v6078_v26, %v4808_v20 }
 0xa4f   :  { %3942 = vtanh.f32 %v5493_v15 }
 0xa58   :  { %v3941_v18 = vpop.eup %3940 }
 0xa59   :  { %v2604_v31 = vmul.f32 %v3941_v18, %v2594_v29  ;;  %v6079_v29 = vld [vmem:[#allocation97_spill] sm:$0xff] }
 0xa5a   :  { %v591_v23 = vadd.f32 %v6079_v29, %v4814_v10 }
 0xa5b   :  { %2607 = vst [vmem:[#allocation14 + $0x90] sm:$0xff] %v2604_v31 }
 0xa5c   :  { %v3943_v30 = vpop.eup %3942 }
 0xa5d   :  { %v2605_v14 = vmul.f32 %v3943_v30, %v2595_v19 }
 0xa5f   :  { %2608 = vst [vmem:[#allocation14 + $0x98] sm:$0xff] %v2605_v14  ;;  %v2620_v25 = vpack.c.bf16 %v2605_v14, %v2604_v31  ;;  %v6080_v14 = vld [vmem:[#allocation96_spill] sm:$0xff] }
 0xa61   :  { %2654 = vmatmul.mubr.bf16.vlgmr.msra.gmra.mxu0 %v2620_v25  ;;  %2697 = vmatmul.mubr.bf16.vlgmr.msra.gmra.mxu1 %v2620_v25  ;;  %v782_v25 = vadd.f32 %v6080_v14, %v4816_v7 }
 0xa62   :  { %2767 = vmatpush1.bf16.msra.mxu0 %v5258_v37  ;;  %2810 = vmatpush1.bf16.msra.mxu1 %v5261_v55 }
 0xa63   :  { %2768 = vmatprep.subr.bf16.mxu0 %v5264_v11  ;;  %2811 = vmatprep.subr.bf16.mxu1 %v5267_v38 }
 0xa64   :  { %2798 = vmatprep.mubr.bf16.mxu0 %v6005_v24  ;;  %2841 = vmatprep.mubr.bf16.mxu1 %v6005_v24 }
 0xa66   :  { %2769 = vmatpush1.bf16.msra.mxu0 %v5272_v40  ;;  %2812 = vmatpush1.bf16.msra.mxu1 %v5275_v41 }
 0xa67   :  { %2770 = vmatprep.subr.bf16.mxu0 %v5278_v42  ;;  %2813 = vmatprep.subr.bf16.mxu1 %v5281_v1 }
 0xa6a   :  { %2771 = vmatpush1.bf16.msra.mxu0 %v5284_v53  ;;  %2814 = vmatpush1.bf16.msra.mxu1 %v5287_v56 }
 0xa6b   :  { %2772 = vmatprep.subr.bf16.mxu0 %v5290_v57  ;;  %2815 = vmatprep.subr.bf16.mxu1 %v5293_v54 }
 0xa6e   :  { %2773 = vmatpush1.bf16.msra.mxu0 %v5296_v58  ;;  %2816 = vmatpush1.bf16.msra.mxu1 %v5361_v61 }
 0xa6f   :  { %2774 = vmatprep.subr.bf16.mxu0 %v5364_v32  ;;  %2817 = vmatprep.subr.bf16.mxu1 %v5367_v35 }
 0xa72   :  { %2775 = vmatpush1.bf16.msra.mxu0 %v5370_v43  ;;  %2818 = vmatpush1.bf16.msra.mxu1 %v5373_v52 }
 0xa73   :  { %2776 = vmatprep.subr.bf16.mxu0 %v5376_v59  ;;  %2819 = vmatprep.subr.bf16.mxu1 %v5379_v3 }
 0xa76   :  { %2777 = vmatpush1.bf16.msra.mxu0 %v5382_v2  ;;  %2820 = vmatpush1.bf16.msra.mxu1 %v5385_v63 }
 0xa77   :  { %2778 = vmatprep.subr.bf16.mxu0 %v5388_v33  ;;  %2821 = vmatprep.subr.bf16.mxu1 %v5391_v39 }
 0xa7a   :  { %2779 = vmatpush1.bf16.msra.mxu0 %v5394_v4  ;;  %2822 = vmatpush1.bf16.msra.mxu1 %v5397_v60 }
 0xa7b   :  { %2780 = vmatprep.subr.bf16.mxu0 %v5400_v5  ;;  %2823 = vmatprep.subr.bf16.mxu1 %v5403_v17 }
 0xa7e   :  { %2781 = vmatpush1.bf16.msra.mxu0 %v5406_v36  ;;  %2824 = vmatpush1.bf16.msra.mxu1 %v5409_v21 }
 0xa7f   :  { %2911 = vmatprep.subr.bf16.mxu0 %v5316_v49  ;;  %2954 = vmatprep.subr.bf16.mxu1 %v5319_v45 }
 0xb21   :  { %v2655_v0 = vpop.f32.mrf.mxu0  ;;  %v2698_v62 = vpop.f32.mrf.mxu1 }
 0xb22   :  { %v2707_v34 = vadd.f32 %v2655_v0, %v585_v28  ;;  %v2709_v47 = vadd.f32 %v2698_v62, %v778_v8  ;;  %v6081_v62 = vld [vmem:[#allocation94_spill] sm:$0xff] }
 0xb23   :  { %v2657_v9 = vpop.f32.mrf.mxu0  ;;  %v2700_v12 = vpop.f32.mrf.mxu1  ;;  %v6082_v8 = vld [vmem:[#allocation98_spill] sm:$0xff] }
 0xb24   :  { %v2715_v22 = vmul.f32 0.5, %v2707_v34  ;;  %v2708_v46 = vadd.f32 %v2657_v9, %v587_v27  ;;  %v780_v27 = vadd.f32 %v6081_v62, %v4832_v16  ;;  %v784_v9 = vadd.f32 %v6082_v8, %v4832_v16 }
 0xb25   :  { %v2659_v48 = vpop.f32.mrf.mxu0  ;;  %v2702_v19 = vpop.f32.mrf.mxu1 }
 0xb26   :  { %3944 = vtanh.f32 %v2715_v22  ;;  %v2723_v18 = vmul.f32 0.5, %v2708_v46  ;;  %v2711_v31 = vadd.f32 %v2659_v48, %v589_v13  ;;  %v2713_v0 = vadd.f32 %v2702_v19, %v782_v25 }
 0xb27   :  { %v2661_v30 = vpop.f32.mrf.mxu0  ;;  %v2710_v34 = vadd.f32 %v2700_v12, %v780_v27  ;;  %v2704_v44 = vpop.f32.mrf.mxu1 }
 0xb28   :  { %3946 = vtanh.f32 %v2723_v18  ;;  %v2716_v6 = vmul.f32 0.5, %v2711_v31  ;;  %v2712_v28 = vadd.f32 %v2661_v30, %v591_v23  ;;  %v2714_v13 = vadd.f32 %v2704_v44, %v784_v9 }
 0xb29   :  { %3948 = vtanh.f32 %v2709_v47  ;;  %v2733_v26 = vmul.f32 0.5, %v2710_v34 }
 0xb2a   :  { %3950 = vtanh.f32 %v2716_v6  ;;  %v2724_v51 = vmul.f32 0.5, %v2712_v28  ;;  %v2734_v18 = vmul.f32 0.5, %v2714_v13 }
 0xb2c   :  { %3952 = vtanh.f32 %v2724_v51 }
 0xb2d   :  { %3954 = vtanh.f32 %v2713_v0 }
 0xb2e   :  { %3956 = vtanh.f32 %v2733_v26 }
 0xb2f   :  { %3958 = vtanh.f32 %v2734_v18 }
 0xb33   :  { %v3945_v22 = vpop.eup %3944 }
 0xb34   :  { %v2719_v46 = vmul.f32 0.5, %v3945_v22 }
 0xb35   :  { %v3947_v48 = vpop.eup %3946 }
 0xb36   :  { %v3949_v29 = vpop.eup %3948  ;;  %v2721_v47 = vadd.f32 0.5, %v2719_v46  ;;  %v2727_v23 = vmul.f32 0.5, %v3947_v48 }
 0xb37   :  { %v3951_v31 = vpop.eup %3950 }
 0xb38   :  { %v2729_v19 = vadd.f32 0.5, %v2727_v23  ;;  %v2743_v30 = vmul.f32 %v3949_v29, %v2721_v47  ;;  %v2720_v14 = vmul.f32 0.5, %v3951_v31  ;;  %v6087_v31 = vld [vmem:[#allocation105_spill] sm:$0xff] }
 0xb39   :  { %v3953_v12 = vpop.eup %3952 }
 0xb3a   :  { %v2741_v25 = vmul.f32 %v2729_v19, %v5489_v50  ;;  %v2722_v6 = vadd.f32 0.5, %v2720_v14  ;;  %v2728_v28 = vmul.f32 0.5, %v3953_v12  ;;  %v3955_v0 = vpop.eup %3954  ;;  %v601_v19 = vadd.f32 %v6087_v31, %v4814_v10 }
 0xb3b   :  { %v3957_v8 = vpop.eup %3956 }
 0xb3c   :  { %v5547_v51 = vadd.f32 %v2743_v30, %v2741_v25  ;;  %v2730_v62 = vadd.f32 0.5, %v2728_v28  ;;  %v2744_v27 = vmul.f32 %v3955_v0, %v2722_v6  ;;  %v2737_v9 = vmul.f32 0.5, %v3957_v8  ;;  %v3959_v26 = vpop.eup %3958  ;;  %v6088_v6 = vld [vmem:[#allocation104_spill] sm:$0xff]  ;;  %v6089_v8 = vld [vmem:[#allocation102_spill] sm:$0xff] }
 0xb3d   :  { %v2738_v13 = vmul.f32 0.5, %v3959_v26  ;;  %v792_v28 = vadd.f32 %v6088_v6, %v4816_v7 }
 0xb3e   :  { %3960 = vtanh.f32 %v5547_v51  ;;  %v2742_v34 = vmul.f32 %v2730_v62, %v5493_v15  ;;  %v2739_v50 = vadd.f32 0.5, %v2737_v9  ;;  %v790_v9 = vadd.f32 %v6089_v8, %v4832_v16  ;;  %v5618_v8 = vld [vmem:[#allocation10 + $0xc4] ss:$16 sps:$4 sm:$0xff]  }
 0xb3f   :  { %v2740_v48 = vadd.f32 0.5, %v2738_v13  ;;  %v6090_v13 = vld [vmem:[#allocation106_spill] sm:$0xff] }
 0xb40   :  { %v5551_v44 = vadd.f32 %v2744_v27, %v2742_v34 }
 0xb42   :  { %3962 = vtanh.f32 %v5551_v44 }
 0xb4b   :  { %v3961_v22 = vpop.eup %3960 }
 0xb4c   :  { %v2749_v46 = vmul.f32 %v3961_v22, %v2739_v50  ;;  %v794_v22 = vadd.f32 %v6090_v13, %v4832_v16  ;;  %v5632_v13 = vld [vmem:[#allocation10 + $0xa4] ss:$16 sps:$4 sm:$0xff]  }
 0xb4e   :  { %2752 = vst [vmem:[#allocation14 + $0xa0] sm:$0xff] %v2749_v46 }
 0xb4f   :  { %v3963_v29 = vpop.eup %3962 }
 0xb50   :  { %v2750_v47 = vmul.f32 %v3963_v29, %v2740_v48 }
 0xb52   :  { %2753 = vst [vmem:[#allocation14 + $0xa8] sm:$0xff] %v2750_v47  ;;  %v2765_v23 = vpack.c.bf16 %v2750_v47, %v2749_v46 }
 0xb54   :  { %2799 = vmatmul.mubr.bf16.vlgmr.msra.gmra.mxu0 %v2765_v23  ;;  %2842 = vmatmul.mubr.bf16.vlgmr.msra.gmra.mxu1 %v2765_v23 }
 0xb55   :  { %2912 = vmatpush1.bf16.msra.mxu0 %v5258_v37  ;;  %2955 = vmatpush1.bf16.msra.mxu1 %v5261_v55  ;;  %v6083_v37 = vld [vmem:[#allocation99_spill] sm:$0xff] }
 0xb56   :  { %2913 = vmatprep.subr.bf16.mxu0 %v5264_v11  ;;  %2956 = vmatprep.subr.bf16.mxu1 %v5267_v38  ;;  %v595_v55 = vadd.f32 %v6083_v37, %v4808_v20 }
 0xb57   :  { %2943 = vmatprep.mubr.bf16.mxu0 %v6005_v24  ;;  %2986 = vmatprep.mubr.bf16.mxu1 %v6005_v24 }
 0xb59   :  { %2914 = vmatpush1.bf16.msra.mxu0 %v5272_v40  ;;  %2957 = vmatpush1.bf16.msra.mxu1 %v5275_v41  ;;  %v6084_v40 = vld [vmem:[#allocation101_spill] sm:$0xff] }
 0xb5a   :  { %2915 = vmatprep.subr.bf16.mxu0 %v5278_v42  ;;  %2958 = vmatprep.subr.bf16.mxu1 %v5281_v1  ;;  %v597_v41 = vadd.f32 %v6084_v40, %v4814_v10  ;;  %v6085_v1 = vld [vmem:[#allocation100_spill] sm:$0xff] }
 0xb5d   :  { %2916 = vmatpush1.bf16.msra.mxu0 %v5284_v53  ;;  %2959 = vmatpush1.bf16.msra.mxu1 %v5287_v56  ;;  %v788_v53 = vadd.f32 %v6085_v1, %v4816_v7 }
 0xb5e   :  { %2917 = vmatprep.subr.bf16.mxu0 %v5290_v57  ;;  %2960 = vmatprep.subr.bf16.mxu1 %v5293_v54  ;;  %v6086_v54 = vld [vmem:[#allocation103_spill] sm:$0xff] }
 0xb61   :  { %2918 = vmatpush1.bf16.msra.mxu0 %v5296_v58  ;;  %2961 = vmatpush1.bf16.msra.mxu1 %v5361_v61  ;;  %v599_v58 = vadd.f32 %v6086_v54, %v4808_v20 }
 0xb62   :  { %2919 = vmatprep.subr.bf16.mxu0 %v5364_v32  ;;  %2962 = vmatprep.subr.bf16.mxu1 %v5367_v35 }
 0xb65   :  { %2920 = vmatpush1.bf16.msra.mxu0 %v5370_v43  ;;  %2963 = vmatpush1.bf16.msra.mxu1 %v5373_v52 }
 0xb66   :  { %2921 = vmatprep.subr.bf16.mxu0 %v5376_v59  ;;  %2964 = vmatprep.subr.bf16.mxu1 %v5379_v3 }
 0xb69   :  { %2922 = vmatpush1.bf16.msra.mxu0 %v5382_v2  ;;  %2965 = vmatpush1.bf16.msra.mxu1 %v5385_v63 }
 0xb6a   :  { %2923 = vmatprep.subr.bf16.mxu0 %v5388_v33  ;;  %2966 = vmatprep.subr.bf16.mxu1 %v5391_v39 }
 0xb6d   :  { %2924 = vmatpush1.bf16.msra.mxu0 %v5394_v4  ;;  %2967 = vmatpush1.bf16.msra.mxu1 %v5397_v60 }
 0xb6e   :  { %2925 = vmatprep.subr.bf16.mxu0 %v5400_v5  ;;  %2968 = vmatprep.subr.bf16.mxu1 %v5403_v17 }
 0xb71   :  { %2926 = vmatpush1.bf16.msra.mxu0 %v5406_v36  ;;  %2969 = vmatpush1.bf16.msra.mxu1 %v5409_v21 }
 0xb72   :  { %3056 = vmatprep.subr.bf16.mxu0 %v5316_v49  ;;  %3099 = vmatprep.subr.bf16.mxu1 %v5319_v45 }
 0xc14   :  { %v2800_v11 = vpop.f32.mrf.mxu0  ;;  %v2843_v38 = vpop.f32.mrf.mxu1 }
 0xc15   :  { %v2852_v42 = vadd.f32 %v2800_v11, %v595_v55  ;;  %v2854_v45 = vadd.f32 %v2843_v38, %v788_v53 }
 0xc16   :  { %v2802_v56 = vpop.f32.mrf.mxu0  ;;  %v2845_v57 = vpop.f32.mrf.mxu1 }
 0xc17   :  { %v2860_v49 = vmul.f32 0.5, %v2852_v42  ;;  %v2853_v15 = vadd.f32 %v2802_v56, %v597_v41  ;;  %v2855_v26 = vadd.f32 %v2845_v57, %v790_v9  ;;  %v5621_v9 = vld [vmem:[#allocation10 + $0xcc] ss:$16 sps:$4 sm:$0xff]  }
 0xc18   :  { %v2804_v18 = vpop.f32.mrf.mxu0  ;;  %v2847_v12 = vpop.f32.mrf.mxu1 }
 0xc19   :  { %3964 = vtanh.f32 %v2860_v49  ;;  %v2868_v30 = vmul.f32 0.5, %v2853_v15  ;;  %v2856_v14 = vadd.f32 %v2804_v18, %v599_v58  ;;  %v2858_v27 = vadd.f32 %v2847_v12, %v792_v28 }
 0xc1a   :  { %v2806_v25 = vpop.f32.mrf.mxu0  ;;  %v2849_v50 = vpop.f32.mrf.mxu1  ;;  %v2878_v46 = vmul.f32 0.5, %v2855_v26  ;;  %v5626_v26 = vld [vmem:[#allocation10 + $0xc0] ss:$16 sps:$4 sm:$0xff]  }
 0xc1b   :  { %3966 = vtanh.f32 %v2868_v30  ;;  %v2861_v0 = vmul.f32 0.5, %v2856_v14  ;;  %v2857_v62 = vadd.f32 %v2806_v25, %v601_v19  ;;  %v2859_v48 = vadd.f32 %v2849_v50, %v794_v22  ;;  %v5629_v50 = vld [vmem:[#allocation10 + $0xc8] ss:$16 sps:$4 sm:$0xff]   ;;  %v5635_v22 = vld [vmem:[#allocation10 + $0xac] ss:$16 sps:$4 sm:$0xff]  }
 0xc1c   :  { %3968 = vtanh.f32 %v2854_v45 }
 0xc1d   :  { %3970 = vtanh.f32 %v2861_v0  ;;  %v2869_v34 = vmul.f32 0.5, %v2857_v62  ;;  %v2879_v38 = vmul.f32 0.5, %v2859_v48  ;;  %v5641_v48 = vld [vmem:[#allocation10 + $0xa8] ss:$16 sps:$4 sm:$0xff]  }
 0xc1f   :  { %3972 = vtanh.f32 %v2869_v34  ;;  %v5615_v34 = vld [vmem:[#allocation10 + $0xe8] ss:$16 sps:$4 sm:$0xff]  }
 0xc20   :  { %3974 = vtanh.f32 %v2858_v27 }
 0xc21   :  { %3976 = vtanh.f32 %v2878_v46  ;;  %v5638_v46 = vld [vmem:[#allocation10 + $0xa0] ss:$16 sps:$4 sm:$0xff]  }
 0xc22   :  { %3978 = vtanh.f32 %v2879_v38 }
 0xc26   :  { %v3965_v29 = vpop.eup %3964 }
 0xc27   :  { %v2864_v47 = vmul.f32 0.5, %v3965_v29  ;;  %v5644_v29 = vld [vmem:[#allocation10 + $0x84] ss:$16 sps:$4 sm:$0xff]  }
 0xc28   :  { %v3967_v23 = vpop.eup %3966 }
 0xc29   :  { %v3969_v37 = vpop.eup %3968  ;;  %v2866_v55 = vadd.f32 0.5, %v2864_v47  ;;  %v2872_v11 = vmul.f32 0.5, %v3967_v23  ;;  %v5647_v47 = vld [vmem:[#allocation10 + $0x8c] ss:$16 sps:$4 sm:$0xff]   ;;  %v5650_v23 = vld [vmem:[#allocation10 + $0x80] ss:$16 sps:$4 sm:$0xff]  }
 0xc2a   :  { %v3971_v40 = vpop.eup %3970 }
 0xc2b   :  { %v2874_v41 = vadd.f32 0.5, %v2872_v11  ;;  %v2888_v42 = vmul.f32 %v3969_v37, %v2866_v55  ;;  %v2865_v1 = vmul.f32 0.5, %v3971_v40  ;;  %v6095_v11 = vld [vmem:[#allocation113_spill] sm:$0xff] }
 0xc2c   :  { %v3973_v53 = vpop.eup %3972  ;;  %v611_v38 = vadd.f32 %v6095_v11, %v4814_v10 }
 0xc2d   :  { %v2886_v56 = vmul.f32 %v2874_v41, %v5547_v51  ;;  %v2867_v57 = vadd.f32 0.5, %v2865_v1  ;;  %v2873_v54 = vmul.f32 0.5, %v3973_v53  ;;  %v3975_v58 = vpop.eup %3974  ;;  %v6096_v53 = vld [vmem:[#allocation112_spill] sm:$0xff] }
 0xc2e   :  { %v3977_v19 = vpop.eup %3976 }
 0xc2f   :  { %v5605_v49 = vadd.f32 %v2888_v42, %v2886_v56  ;;  %v2875_v15 = vadd.f32 0.5, %v2873_v54  ;;  %v2889_v45 = vmul.f32 %v3975_v58, %v2867_v57  ;;  %v2882_v30 = vmul.f32 0.5, %v3977_v19  ;;  %v3979_v14 = vpop.eup %3978 }
 0xc30   :  { %v2883_v12 = vmul.f32 0.5, %v3979_v14  ;;  %v802_v56 = vadd.f32 %v6096_v53, %v4816_v7  ;;  %v6098_v14 = vld [vmem:[#allocation114_spill] sm:$0xff] }
 0xc31   :  { %3980 = vtanh.f32 %v5605_v49  ;;  %v2887_v18 = vmul.f32 %v2875_v15, %v5551_v44  ;;  %v2884_v51 = vadd.f32 0.5, %v2882_v30  ;;  %v5612_v44 = vld [vmem:[#allocation10 + $0xe0] ss:$16 sps:$4 sm:$0xff]  }
 0xc32   :  { %v2885_v28 = vadd.f32 0.5, %v2883_v12 }
 0xc33   :  { %v5609_v31 = vadd.f32 %v2889_v45, %v2887_v18  ;;  %v6097_v45 = vld [vmem:[#allocation110_spill] sm:$0xff] }
 0xc34   :  { %v800_v18 = vadd.f32 %v6097_v45, %v4832_v16  ;;  %v5727_v45 = vld [vmem:[#allocation10 + $0x68] ss:$16 sps:$4 sm:$0xff]  }
 0xc35   :  { %3982 = vtanh.f32 %v5609_v31 }
 0xc3e   :  { %v3981_v25 = vpop.eup %3980 }
 0xc3f   :  { %v2894_v6 = vmul.f32 %v3981_v25, %v2884_v51  ;;  %v804_v51 = vadd.f32 %v6098_v14, %v4832_v16  ;;  %v5739_v14 = vld [vmem:[#allocation10 + $0x48] ss:$16 sps:$4 sm:$0xff]  }
 0xc41   :  { %2897 = vst [vmem:[#allocation14 + $0xb0] sm:$0xff] %v2894_v6 }
 0xc42   :  { %v3983_v0 = vpop.eup %3982 }
 0xc43   :  { %v2895_v62 = vmul.f32 %v3983_v0, %v2885_v28 }
 0xc45   :  { %2898 = vst [vmem:[#allocation14 + $0xb8] sm:$0xff] %v2895_v62  ;;  %v2910_v27 = vpack.c.bf16 %v2895_v62, %v2894_v6 }
 0xc47   :  { %2944 = vmatmul.mubr.bf16.vlgmr.msra.gmra.mxu0 %v2910_v27  ;;  %2987 = vmatmul.mubr.bf16.vlgmr.msra.gmra.mxu1 %v2910_v27 }
 0xc48   :  { %3057 = vmatpush1.bf16.msra.mxu0 %v5612_v44  ;;  %3100 = vmatpush1.bf16.msra.mxu1 %v5615_v34 }
 0xc49   :  { %3058 = vmatprep.subr.bf16.mxu0 %v5618_v8  ;;  %3101 = vmatprep.subr.bf16.mxu1 %v5621_v9 }
 0xc4a   :  { %3088 = vmatprep.mubr.bf16.mxu0 %v6005_v24  ;;  %3131 = vmatprep.mubr.bf16.mxu1 %v6005_v24 }
 0xc4c   :  { %3059 = vmatpush1.bf16.msra.mxu0 %v5626_v26  ;;  %3102 = vmatpush1.bf16.msra.mxu1 %v5629_v50 }
 0xc4d   :  { %3060 = vmatprep.subr.bf16.mxu0 %v5632_v13  ;;  %3103 = vmatprep.subr.bf16.mxu1 %v5635_v22 }
 0xc50   :  { %3061 = vmatpush1.bf16.msra.mxu0 %v5638_v46  ;;  %3104 = vmatpush1.bf16.msra.mxu1 %v5641_v48 }
 0xc51   :  { %3062 = vmatprep.subr.bf16.mxu0 %v5644_v29  ;;  %3105 = vmatprep.subr.bf16.mxu1 %v5647_v47 }
 0xc54   :  { %3063 = vmatpush1.bf16.msra.mxu0 %v5650_v23  ;;  %3106 = vmatpush1.bf16.msra.mxu1 %v5361_v61  ;;  %v5670_v61 = vld [vmem:[#allocation10 + $0xe4] ss:$16 sps:$4 sm:$0xff]  }
 0xc55   :  { %3064 = vmatprep.subr.bf16.mxu0 %v5364_v32  ;;  %3107 = vmatprep.subr.bf16.mxu1 %v5367_v35  ;;  %v5673_v32 = vld [vmem:[#allocation10 + $0xec] ss:$16 sps:$4 sm:$0xff]  }
 0xc56   :  { %v6091_v35 = vld [vmem:[#allocation107_spill] sm:$0xff] }
 0xc58   :  { %3065 = vmatpush1.bf16.msra.mxu0 %v5370_v43  ;;  %3108 = vmatpush1.bf16.msra.mxu1 %v5373_v52  ;;  %v605_v43 = vadd.f32 %v6091_v35, %v4808_v20 }
 0xc59   :  { %3066 = vmatprep.subr.bf16.mxu0 %v5376_v59  ;;  %3109 = vmatprep.subr.bf16.mxu1 %v5379_v3  ;;  %v6092_v3 = vld [vmem:[#allocation109_spill] sm:$0xff] }
 0xc5c   :  { %3067 = vmatpush1.bf16.msra.mxu0 %v5382_v2  ;;  %3110 = vmatpush1.bf16.msra.mxu1 %v5385_v63  ;;  %v607_v2 = vadd.f32 %v6092_v3, %v4814_v10 }
 0xc5d   :  { %3068 = vmatprep.subr.bf16.mxu0 %v5388_v33  ;;  %3111 = vmatprep.subr.bf16.mxu1 %v5391_v39  ;;  %v6093_v33 = vld [vmem:[#allocation108_spill] sm:$0xff] }
 0xc5e   :  { %v798_v39 = vadd.f32 %v6093_v33, %v4816_v7 }
 0xc60   :  { %3069 = vmatpush1.bf16.msra.mxu0 %v5394_v4  ;;  %3112 = vmatpush1.bf16.msra.mxu1 %v5397_v60 }
 0xc61   :  { %3070 = vmatprep.subr.bf16.mxu0 %v5400_v5  ;;  %3113 = vmatprep.subr.bf16.mxu1 %v5403_v17  ;;  %v6094_v5 = vld [vmem:[#allocation111_spill] sm:$0xff] }
 0xc62   :  { %v609_v17 = vadd.f32 %v6094_v5, %v4808_v20 }
 0xc64   :  { %3071 = vmatpush1.bf16.msra.mxu0 %v5406_v36  ;;  %3114 = vmatpush1.bf16.msra.mxu1 %v5409_v21 }
 0xc65   :  { %3201 = vmatprep.subr.bf16.mxu0 %v5670_v61  ;;  %3244 = vmatprep.subr.bf16.mxu1 %v5673_v32 }
 0xd07   :  { %v2945_v52 = vpop.f32.mrf.mxu0  ;;  %v2988_v59 = vpop.f32.mrf.mxu1 }
 0xd08   :  { %v2997_v63 = vadd.f32 %v2945_v52, %v605_v43  ;;  %v2999_v37 = vadd.f32 %v2988_v59, %v798_v39 }
 0xd09   :  { %v2947_v4 = vpop.f32.mrf.mxu0  ;;  %v2990_v60 = vpop.f32.mrf.mxu1 }
 0xd0a   :  { %v3005_v36 = vmul.f32 0.5, %v2997_v63  ;;  %v2998_v21 = vadd.f32 %v2947_v4, %v607_v2  ;;  %v3000_v19 = vadd.f32 %v2990_v60, %v800_v18  ;;  %v5730_v18 = vld [vmem:[#allocation10 + $0x44] ss:$16 sps:$4 sm:$0xff]  }
 0xd0b   :  { %v2949_v55 = vpop.f32.mrf.mxu0  ;;  %v2992_v42 = vpop.f32.mrf.mxu1 }
 0xd0c   :  { %3984 = vtanh.f32 %v3005_v36  ;;  %v3013_v40 = vmul.f32 0.5, %v2998_v21  ;;  %v3001_v41 = vadd.f32 %v2949_v55, %v609_v17  ;;  %v3003_v58 = vadd.f32 %v2992_v42, %v802_v56 }
 0xd0d   :  { %v2951_v1 = vpop.f32.mrf.mxu0  ;;  %v2994_v30 = vpop.f32.mrf.mxu1  ;;  %v3023_v12 = vmul.f32 0.5, %v3000_v19  ;;  %v5733_v19 = vld [vmem:[#allocation10 + $0x4c] ss:$16 sps:$4 sm:$0xff]  }
 0xd0e   :  { %3986 = vtanh.f32 %v3013_v40  ;;  %v3006_v57 = vmul.f32 0.5, %v3001_v41  ;;  %v3002_v54 = vadd.f32 %v2951_v1, %v611_v38  ;;  %v3004_v25 = vadd.f32 %v2994_v30, %v804_v51  ;;  %v5736_v30 = vld [vmem:[#allocation10 + $0x40] ss:$16 sps:$4 sm:$0xff]   ;;  %v5742_v51 = vld [vmem:[#allocation10 + $0x24] ss:$16 sps:$4 sm:$0xff]  }
 0xd0f   :  { %3988 = vtanh.f32 %v2999_v37 }
 0xd10   :  { %3990 = vtanh.f32 %v3006_v57  ;;  %v3014_v15 = vmul.f32 0.5, %v3002_v54  ;;  %v3024_v43 = vmul.f32 0.5, %v3004_v25  ;;  %v5718_v54 = vld [vmem:[#allocation10 + $0x64] ss:$16 sps:$4 sm:$0xff]   ;;  %v5748_v25 = vld [vmem:[#allocation10 + $0x20] ss:$16 sps:$4 sm:$0xff]  }
 0xd12   :  { %3992 = vtanh.f32 %v3014_v15  ;;  %v5724_v15 = vld [vmem:[#allocation10 + $0x60] ss:$16 sps:$4 sm:$0xff]  }
 0xd13   :  { %3994 = vtanh.f32 %v3003_v58  ;;  %v5721_v58 = vld [vmem:[#allocation10 + $0x6c] ss:$16 sps:$4 sm:$0xff]  }
 0xd14   :  { %3996 = vtanh.f32 %v3023_v12  ;;  %v5745_v12 = vld [vmem:[#allocation10 + $0x2c] ss:$16 sps:$4 sm:$0xff]  }
 0xd15   :  { %3998 = vtanh.f32 %v3024_v43 }
 0xd19   :  { %v3985_v6 = vpop.eup %3984 }
 0xd1a   :  { %v3009_v28 = vmul.f32 0.5, %v3985_v6  ;;  %v5751_v6 = vld [vmem:[#allocation10 + $0x28] ss:$16 sps:$4 sm:$0xff]  }
 0xd1b   :  { %v3987_v0 = vpop.eup %3986 }
 0xd1c   :  { %v3989_v62 = vpop.eup %3988  ;;  %v3011_v27 = vadd.f32 0.5, %v3009_v28  ;;  %v3017_v35 = vmul.f32 0.5, %v3987_v0  ;;  %v5754_v28 = vld [vmem:[#allocation10 + $0x4] ss:$16 sps:$4 sm:$0xff]   ;;  %v5757_v0 = vld [vmem:[#allocation10 + $0xc] ss:$16 sps:$4 sm:$0xff]  }
 0xd1d   :  { %v3991_v52 = vpop.eup %3990 }
 0xd1e   :  { %v3019_v59 = vadd.f32 0.5, %v3017_v35  ;;  %v3033_v3 = vmul.f32 %v3989_v62, %v3011_v27  ;;  %v3010_v2 = vmul.f32 0.5, %v3991_v52  ;;  %v5760_v62 = vld [vmem:[#allocation10] ss:$16 sps:$4 sm:$0xff]   ;;  %v5763_v27 = vld [vmem:[#allocation10 + $0x8] ss:$16 sps:$4 sm:$0xff]  }
 0xd1f   :  { %v3993_v63 = vpop.eup %3992  ;;  %v6099_v35 = vld [vmem:[#allocation115_spill] sm:$0xff] }
 0xd20   :  { %v3031_v33 = vmul.f32 %v3019_v59, %v5605_v49  ;;  %v3012_v39 = vadd.f32 0.5, %v3010_v2  ;;  %v3018_v4 = vmul.f32 0.5, %v3993_v63  ;;  %v3995_v60 = vpop.eup %3994  ;;  %v615_v43 = vadd.f32 %v6099_v35, %v4808_v20 }
 0xd21   :  { %v3997_v55 = vpop.eup %3996 }
 0xd22   :  { %v5693_v5 = vadd.f32 %v3033_v3, %v3031_v33  ;;  %v3020_v17 = vadd.f32 0.5, %v3018_v4  ;;  %v3034_v36 = vmul.f32 %v3995_v60, %v3012_v39  ;;  %v3027_v11 = vmul.f32 0.5, %v3997_v55  ;;  %v3999_v38 = vpop.eup %3998  ;;  %v6100_v3 = vld [vmem:[#allocation117_spill] sm:$0xff]  ;;  %v6101_v33 = vld [vmem:[#allocation116_spill] sm:$0xff] }
 0xd23   :  { %v3028_v40 = vmul.f32 0.5, %v3999_v38  ;;  %v617_v2 = vadd.f32 %v6100_v3, %v4814_v10  ;;  %v808_v39 = vadd.f32 %v6101_v33, %v4816_v7 }
 0xd24   :  { %4000 = vtanh.f32 %v5693_v5  ;;  %v3032_v21 = vmul.f32 %v3020_v17, %v5609_v31  ;;  %v3029_v49 = vadd.f32 0.5, %v3027_v11  ;;  %v5715_v31 = vld [vmem:[#allocation10 + $0x88] ss:$16 sps:$4 sm:$0xff]  }
 0xd25   :  { %v3030_v1 = vadd.f32 0.5, %v3028_v40  ;;  %v6102_v17 = vld [vmem:[#allocation119_spill] sm:$0xff]  ;;  %v6103_v11 = vld [vmem:[#allocation121_spill] sm:$0xff] }
 0xd26   :  { %v5697_v37 = vadd.f32 %v3034_v36, %v3032_v21  ;;  %v619_v36 = vadd.f32 %v6102_v17, %v4808_v20  ;;  %v621_v38 = vadd.f32 %v6103_v11, %v4814_v10 }
 0xd28   :  { %4002 = vtanh.f32 %v5697_v37 }
 0xd31   :  { %v4001_v41 = vpop.eup %4000 }
 0xd32   :  { %v3039_v42 = vmul.f32 %v4001_v41, %v3029_v49 }
 0xd34   :  { %3042 = vst [vmem:[#allocation14 + $0xc0] sm:$0xff] %v3039_v42 }
 0xd35   :  { %v4003_v53 = vpop.eup %4002 }
 0xd36   :  { %v3040_v56 = vmul.f32 %v4003_v53, %v3030_v1  ;;  %v6104_v1 = vld [vmem:[#allocation120_spill] sm:$0xff] }
 0xd37   :  { %v812_v53 = vadd.f32 %v6104_v1, %v4816_v7 }
 0xd38   :  { %3043 = vst [vmem:[#allocation14 + $0xc8] sm:$0xff] %v3040_v56  ;;  %v3055_v57 = vpack.c.bf16 %v3040_v56, %v3039_v42 }
 0xd3a   :  { %3089 = vmatmul.mubr.bf16.vlgmr.msra.gmra.mxu0 %v3055_v57  ;;  %3132 = vmatmul.mubr.bf16.vlgmr.msra.gmra.mxu1 %v3055_v57 }
 0xd3b   :  { %3202 = vmatpush1.bf16.msra.mxu0 %v5612_v44  ;;  %3245 = vmatpush1.bf16.msra.mxu1 %v5615_v34 }
 0xd3c   :  { %3203 = vmatprep.subr.bf16.mxu0 %v5618_v8  ;;  %3246 = vmatprep.subr.bf16.mxu1 %v5621_v9 }
 0xd3d   :  { %3233 = vmatprep.mubr.bf16.mxu0 %v6005_v24  ;;  %3276 = vmatprep.mubr.bf16.mxu1 %v6005_v24 }
 0xd3f   :  { %3204 = vmatpush1.bf16.msra.mxu0 %v5626_v26  ;;  %3247 = vmatpush1.bf16.msra.mxu1 %v5629_v50 }
 0xd40   :  { %3205 = vmatprep.subr.bf16.mxu0 %v5632_v13  ;;  %3248 = vmatprep.subr.bf16.mxu1 %v5635_v22 }
 0xd43   :  { %3206 = vmatpush1.bf16.msra.mxu0 %v5638_v46  ;;  %3249 = vmatpush1.bf16.msra.mxu1 %v5641_v48 }
 0xd44   :  { %3207 = vmatprep.subr.bf16.mxu0 %v5644_v29  ;;  %3250 = vmatprep.subr.bf16.mxu1 %v5647_v47 }
 0xd47   :  { %3208 = vmatpush1.bf16.msra.mxu0 %v5650_v23  ;;  %3251 = vmatpush1.bf16.msra.mxu1 %v5715_v31 }
 0xd48   :  { %3209 = vmatprep.subr.bf16.mxu0 %v5718_v54  ;;  %3252 = vmatprep.subr.bf16.mxu1 %v5721_v58 }
 0xd4b   :  { %3210 = vmatpush1.bf16.msra.mxu0 %v5724_v15  ;;  %3253 = vmatpush1.bf16.msra.mxu1 %v5727_v45 }
 0xd4c   :  { %3211 = vmatprep.subr.bf16.mxu0 %v5730_v18  ;;  %3254 = vmatprep.subr.bf16.mxu1 %v5733_v19 }
 0xd4f   :  { %3212 = vmatpush1.bf16.msra.mxu0 %v5736_v30  ;;  %3255 = vmatpush1.bf16.msra.mxu1 %v5739_v14 }
 0xd50   :  { %3213 = vmatprep.subr.bf16.mxu0 %v5742_v51  ;;  %3256 = vmatprep.subr.bf16.mxu1 %v5745_v12 }
 0xd53   :  { %3214 = vmatpush1.bf16.msra.mxu0 %v5748_v25  ;;  %3257 = vmatpush1.bf16.msra.mxu1 %v5751_v6 }
 0xd54   :  { %3215 = vmatprep.subr.bf16.mxu0 %v5754_v28  ;;  %3258 = vmatprep.subr.bf16.mxu1 %v5757_v0 }
 0xd57   :  { %3216 = vmatpush1.bf16.msra.mxu0 %v5760_v62  ;;  %3259 = vmatpush1.bf16.msra.mxu1 %v5763_v27 }
 0xd58   :  { %3346 = vmatprep.subr.bf16.mxu0 %v5670_v61  ;;  %3389 = vmatprep.subr.bf16.mxu1 %v5673_v32 }
 0xdfa   :  { %v3090_v52 = vpop.f32.mrf.mxu0  ;;  %v3133_v59 = vpop.f32.mrf.mxu1 }
 0xdfb   :  { %v3142_v63 = vadd.f32 %v3090_v52, %v615_v43  ;;  %v3144_v32 = vadd.f32 %v3133_v59, %v808_v39  ;;  %v6105_v52 = vld [vmem:[#allocation118_spill] sm:$0xff] }
 0xdfc   :  { %v3092_v4 = vpop.f32.mrf.mxu0  ;;  %v3135_v60 = vpop.f32.mrf.mxu1  ;;  %v810_v59 = vadd.f32 %v6105_v52, %v4832_v16 }
 0xdfd   :  { %v3150_v61 = vmul.f32 0.5, %v3142_v63  ;;  %v3143_v21 = vadd.f32 %v3092_v4, %v617_v2  ;;  %v6106_v63 = vld [vmem:[#allocation122_spill] sm:$0xff] }
 0xdfe   :  { %v3094_v55 = vpop.f32.mrf.mxu0  ;;  %v3137_v41 = vpop.f32.mrf.mxu1  ;;  %v3145_v3 = vadd.f32 %v3135_v60, %v810_v59  ;;  %v814_v33 = vadd.f32 %v6106_v63, %v4832_v16 }
 0xdff   :  { %4004 = vtanh.f32 %v3150_v61  ;;  %v3158_v49 = vmul.f32 0.5, %v3143_v21  ;;  %v3146_v40 = vadd.f32 %v3094_v55, %v619_v36  ;;  %v3148_v35 = vadd.f32 %v3137_v41, %v812_v53 }
 0xe00   :  { %v3096_v42 = vpop.f32.mrf.mxu0  ;;  %v3139_v2 = vpop.f32.mrf.mxu1  ;;  %v3168_v39 = vmul.f32 0.5, %v3145_v3 }
 0xe01   :  { %4006 = vtanh.f32 %v3158_v49  ;;  %v3151_v56 = vmul.f32 0.5, %v3146_v40  ;;  %v3147_v57 = vadd.f32 %v3096_v42, %v621_v38  ;;  %v3149_v4 = vadd.f32 %v3139_v2, %v814_v33 }
 0xe02   :  { %4008 = vtanh.f32 %v3144_v32 }
 0xe03   :  { %4010 = vtanh.f32 %v3151_v56  ;;  %v3159_v43 = vmul.f32 0.5, %v3147_v57  ;;  %v3169_v11 = vmul.f32 0.5, %v3149_v4 }
 0xe05   :  { %4012 = vtanh.f32 %v3159_v43 }
 0xe06   :  { %4014 = vtanh.f32 %v3148_v35 }
 0xe07   :  { %4016 = vtanh.f32 %v3168_v39 }
 0xe08   :  { %4018 = vtanh.f32 %v3169_v11 }
 0xe0c   :  { %v4005_v17 = vpop.eup %4004 }
 0xe0d   :  { %v3154_v36 = vmul.f32 0.5, %v4005_v17 }
 0xe0e   :  { %v4007_v61 = vpop.eup %4006 }
 0xe0f   :  { %v4009_v21 = vpop.eup %4008  ;;  %v3156_v32 = vadd.f32 0.5, %v3154_v36  ;;  %v3162_v55 = vmul.f32 0.5, %v4007_v61 }
 0xe10   :  { %v4011_v38 = vpop.eup %4010 }
 0xe11   :  { %v3164_v49 = vadd.f32 0.5, %v3162_v55  ;;  %v3178_v40 = vmul.f32 %v4009_v21, %v3156_v32  ;;  %v3155_v41 = vmul.f32 0.5, %v4011_v38  ;;  %v6114_v55 = vld [vmem:[#allocation130_spill] sm:$0xff] }
 0xe12   :  { %v4013_v60 = vpop.eup %4012  ;;  %v824_v11 = vadd.f32 %v6114_v55, %v4832_v16 }
 0xe13   :  { %v3176_v42 = vmul.f32 %v3164_v49, %v5693_v5  ;;  %v3157_v1 = vadd.f32 0.5, %v3155_v41  ;;  %v3163_v53 = vmul.f32 0.5, %v4013_v60  ;;  %v4015_v56 = vpop.eup %4014 }
 0xe14   :  { %v4017_v3 = vpop.eup %4016 }
 0xe15   :  { %v5785_v57 = vadd.f32 %v3178_v40, %v3176_v42  ;;  %v3165_v35 = vadd.f32 0.5, %v3163_v53  ;;  %v3179_v43 = vmul.f32 %v4015_v56, %v3157_v1  ;;  %v3172_v2 = vmul.f32 0.5, %v4017_v3  ;;  %v4019_v63 = vpop.eup %4018 }
 0xe16   :  { %v3173_v33 = vmul.f32 0.5, %v4019_v63 }
 0xe17   :  { %4020 = vtanh.f32 %v5785_v57  ;;  %v3177_v52 = vmul.f32 %v3165_v35, %v5697_v37  ;;  %v3174_v5 = vadd.f32 0.5, %v3172_v2 }
 0xe18   :  { %v3175_v17 = vadd.f32 0.5, %v3173_v33 }
 0xe19   :  { %v5789_v59 = vadd.f32 %v3179_v43, %v3177_v52 }
 0xe1b   :  { %4022 = vtanh.f32 %v5789_v59 }
 0xe24   :  { %v4021_v39 = vpop.eup %4020 }
 0xe25   :  { %v3184_v4 = vmul.f32 %v4021_v39, %v3174_v5 }
 0xe27   :  { %3187 = vst [vmem:[#allocation14 + $0xd0] sm:$0xff] %v3184_v4 }
 0xe28   :  { %v4023_v36 = vpop.eup %4022 }
 0xe29   :  { %v3185_v61 = vmul.f32 %v4023_v36, %v3175_v17 }
 0xe2b   :  { %3188 = vst [vmem:[#allocation14 + $0xd8] sm:$0xff] %v3185_v61  ;;  %v3200_v21 = vpack.c.bf16 %v3185_v61, %v3184_v4 }
 0xe2d   :  { %3234 = vmatmul.mubr.bf16.vlgmr.msra.gmra.mxu0 %v3200_v21  ;;  %3277 = vmatmul.mubr.bf16.vlgmr.msra.gmra.mxu1 %v3200_v21 }
 0xe2e   :  { %3347 = vmatpush1.bf16.msra.mxu0 %v5612_v44  ;;  %3390 = vmatpush1.bf16.msra.mxu1 %v5615_v34 }
 0xe2f   :  { %3348 = vmatprep.subr.bf16.mxu0 %v5618_v8  ;;  %3391 = vmatprep.subr.bf16.mxu1 %v5621_v9  ;;  %v6108_v9 = vld [vmem:[#allocation125_spill] sm:$0xff] }
 0xe30   :  { %3378 = vmatprep.mubr.bf16.mxu0 %v6005_v24  ;;  %3421 = vmatprep.mubr.bf16.mxu1 %v6005_v24  ;;  %v6107_v24 = vld [vmem:[#allocation123_spill] sm:$0xff] }
 0xe31   :  { %v625_v44 = vadd.f32 %v6107_v24, %v4808_v20 }
 0xe32   :  { %3349 = vmatpush1.bf16.msra.mxu0 %v5626_v26  ;;  %3392 = vmatpush1.bf16.msra.mxu1 %v5629_v50  ;;  %v627_v26 = vadd.f32 %v6108_v9, %v4814_v10 }
 0xe33   :  { %3350 = vmatprep.subr.bf16.mxu0 %v5632_v13  ;;  %3393 = vmatprep.subr.bf16.mxu1 %v5635_v22  ;;  %v6109_v13 = vld [vmem:[#allocation124_spill] sm:$0xff] }
 0xe34   :  { %v818_v22 = vadd.f32 %v6109_v13, %v4816_v7 }
 0xe36   :  { %3351 = vmatpush1.bf16.msra.mxu0 %v5638_v46  ;;  %3394 = vmatpush1.bf16.msra.mxu1 %v5641_v48 }
 0xe37   :  { %3352 = vmatprep.subr.bf16.mxu0 %v5644_v29  ;;  %3395 = vmatprep.subr.bf16.mxu1 %v5647_v47  ;;  %v6110_v29 = vld [vmem:[#allocation127_spill] sm:$0xff] }
 0xe38   :  { %v629_v47 = vadd.f32 %v6110_v29, %v4808_v20 }
 0xe3a   :  { %3353 = vmatpush1.bf16.msra.mxu0 %v5650_v23  ;;  %3396 = vmatpush1.bf16.msra.mxu1 %v5715_v31 }
 0xe3b   :  { %3354 = vmatprep.subr.bf16.mxu0 %v5718_v54  ;;  %3397 = vmatprep.subr.bf16.mxu1 %v5721_v58  ;;  %v6111_v58 = vld [vmem:[#allocation129_spill] sm:$0xff] }
 0xe3e   :  { %3355 = vmatpush1.bf16.msra.mxu0 %v5724_v15  ;;  %3398 = vmatpush1.bf16.msra.mxu1 %v5727_v45  ;;  %v631_v15 = vadd.f32 %v6111_v58, %v4814_v10 }
 0xe3f   :  { %3356 = vmatprep.subr.bf16.mxu0 %v5730_v18  ;;  %3399 = vmatprep.subr.bf16.mxu1 %v5733_v19 }
 0xe42   :  { %3357 = vmatpush1.bf16.msra.mxu0 %v5736_v30  ;;  %3400 = vmatpush1.bf16.msra.mxu1 %v5739_v14  ;;  %v6112_v14 = vld [vmem:[#allocation128_spill] sm:$0xff] }
 0xe43   :  { %3358 = vmatprep.subr.bf16.mxu0 %v5742_v51  ;;  %3401 = vmatprep.subr.bf16.mxu1 %v5745_v12  ;;  %v822_v51 = vadd.f32 %v6112_v14, %v4816_v7 }
 0xe46   :  { %3359 = vmatpush1.bf16.msra.mxu0 %v5748_v25  ;;  %3402 = vmatpush1.bf16.msra.mxu1 %v5751_v6 }
 0xe47   :  { %3360 = vmatprep.subr.bf16.mxu0 %v5754_v28  ;;  %3403 = vmatprep.subr.bf16.mxu1 %v5757_v0  ;;  %v6113_v0 = vld [vmem:[#allocation126_spill] sm:$0xff] }
 0xe4a   :  { %3361 = vmatpush1.bf16.msra.mxu0 %v5760_v62  ;;  %3404 = vmatpush1.bf16.msra.mxu1 %v5763_v27  ;;  %v820_v62 = vadd.f32 %v6113_v0, %v4832_v16 }
 0xeed   :  { %v3235_v34 = vpop.f32.mrf.mxu0  ;;  %v3278_v8 = vpop.f32.mrf.mxu1 }
 0xeee   :  { %v3287_v50 = vadd.f32 %v3235_v34, %v625_v44  ;;  %v3289_v31 = vadd.f32 %v3278_v8, %v818_v22 }
 0xeef   :  { %v3237_v46 = vpop.f32.mrf.mxu0  ;;  %v3280_v48 = vpop.f32.mrf.mxu1 }
 0xef0   :  { %v3295_v23 = vmul.f32 0.5, %v3287_v50  ;;  %v3288_v37 = vadd.f32 %v3237_v46, %v627_v26  ;;  %v3290_v27 = vadd.f32 %v3280_v48, %v820_v62 }
 0xef1   :  { %v3239_v54 = vpop.f32.mrf.mxu0  ;;  %v3282_v19 = vpop.f32.mrf.mxu1 }
 0xef2   :  { %4024 = vtanh.f32 %v3295_v23  ;;  %v3303_v45 = vmul.f32 0.5, %v3288_v37  ;;  %v3291_v18 = vadd.f32 %v3239_v54, %v629_v47  ;;  %v3293_v6 = vadd.f32 %v3282_v19, %v822_v51  ;;  %v6116_v23 = vld [vmem:[#allocation133_spill] sm:$0xff]  ;;  %v6117_v54 = vld [vmem:[#allocation132_spill] sm:$0xff] }
 0xef3   :  { %v3241_v30 = vpop.f32.mrf.mxu0  ;;  %v3284_v32 = vpop.f32.mrf.mxu1  ;;  %v3313_v38 = vmul.f32 0.5, %v3290_v27  ;;  %v637_v37 = vadd.f32 %v6116_v23, %v4814_v10  ;;  %v828_v58 = vadd.f32 %v6117_v54, %v4816_v7 }
 0xef4   :  { %4026 = vtanh.f32 %v3303_v45  ;;  %v3296_v12 = vmul.f32 0.5, %v3291_v18  ;;  %v3292_v25 = vadd.f32 %v3241_v30, %v631_v15  ;;  %v3294_v49 = vadd.f32 %v3284_v32, %v824_v11  ;;  %v6118_v18 = vld [vmem:[#allocation135_spill] sm:$0xff]  ;;  %v6120_v32 = vld [vmem:[#allocation136_spill] sm:$0xff] }
 0xef5   :  { %4028 = vtanh.f32 %v3289_v31  ;;  %v639_v19 = vadd.f32 %v6118_v18, %v4808_v20  ;;  %v832_v55 = vadd.f32 %v6120_v32, %v4816_v7 }
 0xef6   :  { %4030 = vtanh.f32 %v3296_v12  ;;  %v3304_v28 = vmul.f32 0.5, %v3292_v25  ;;  %v3314_v56 = vmul.f32 0.5, %v3294_v49  ;;  %v6119_v25 = vld [vmem:[#allocation137_spill] sm:$0xff] }
 0xef8   :  { %4032 = vtanh.f32 %v3304_v28 }
 0xef9   :  { %4034 = vtanh.f32 %v3293_v6  ;;  %v641_v6 = vadd.f32 %v6119_v25, %v4814_v10 }
 0xefa   :  { %4036 = vtanh.f32 %v3313_v38 }
 0xefb   :  { %4038 = vtanh.f32 %v3314_v56 }
 0xeff   :  { %v4025_v40 = vpop.eup %4024 }
 0xf00   :  { %v3299_v41 = vmul.f32 0.5, %v4025_v40  ;;  %v6121_v40 = vld [vmem:[#allocation134_spill] sm:$0xff] }
 0xf01   :  { %v4027_v60 = vpop.eup %4026 }
 0xf02   :  { %v4029_v42 = vpop.eup %4028  ;;  %v3301_v1 = vadd.f32 0.5, %v3299_v41  ;;  %v3307_v53 = vmul.f32 0.5, %v4027_v60  ;;  %v830_v41 = vadd.f32 %v6121_v40, %v4832_v16 }
 0xf03   :  { %v4031_v35 = vpop.eup %4030 }
 0xf04   :  { %v3309_v43 = vadd.f32 0.5, %v3307_v53  ;;  %v3323_v52 = vmul.f32 %v4029_v42, %v3301_v1  ;;  %v3300_v3 = vmul.f32 0.5, %v4031_v35  ;;  %v6122_v42 = vld [vmem:[#allocation138_spill] sm:$0xff] }
 0xf05   :  { %v4033_v2 = vpop.eup %4032  ;;  %v834_v1 = vadd.f32 %v6122_v42, %v4832_v16 }
 0xf06   :  { %v3321_v63 = vmul.f32 %v3309_v43, %v5785_v57  ;;  %v3302_v5 = vadd.f32 0.5, %v3300_v3  ;;  %v3308_v33 = vmul.f32 0.5, %v4033_v2  ;;  %v4035_v39 = vpop.eup %4034 }
 0xf07   :  { %v4037_v24 = vpop.eup %4036 }
 0xf08   :  { %v5841_v4 = vadd.f32 %v3323_v52, %v3321_v63  ;;  %v3310_v17 = vadd.f32 0.5, %v3308_v33  ;;  %v3324_v36 = vmul.f32 %v4035_v39, %v3302_v5  ;;  %v3317_v44 = vmul.f32 0.5, %v4037_v24  ;;  %v4039_v34 = vpop.eup %4038 }
 0xf09   :  { %v3318_v8 = vmul.f32 0.5, %v4039_v34 }
 0xf0a   :  { %4040 = vtanh.f32 %v5841_v4  ;;  %v3322_v61 = vmul.f32 %v3310_v17, %v5789_v59  ;;  %v3319_v57 = vadd.f32 0.5, %v3317_v44  ;;  %v6115_v59 = vld [vmem:[#allocation131_spill] sm:$0xff] }
 0xf0b   :  { %v3320_v50 = vadd.f32 0.5, %v3318_v8  ;;  %v635_v48 = vadd.f32 %v6115_v59, %v4808_v20 }
 0xf0c   :  { %v5845_v21 = vadd.f32 %v3324_v36, %v3322_v61 }
 0xf0e   :  { %4042 = vtanh.f32 %v5845_v21 }
 0xf17   :  { %v4041_v9 = vpop.eup %4040 }
 0xf18   :  { %v3329_v26 = vmul.f32 %v4041_v9, %v3319_v57 }
 0xf1a   :  { %3332 = vst [vmem:[#allocation14 + $0xe0] sm:$0xff] %v3329_v26 }
 0xf1b   :  { %v4043_v13 = vpop.eup %4042 }
 0xf1c   :  { %v3330_v22 = vmul.f32 %v4043_v13, %v3320_v50 }
 0xf1e   :  { %3333 = vst [vmem:[#allocation14 + $0xe8] sm:$0xff] %v3330_v22  ;;  %v3345_v46 = vpack.c.bf16 %v3330_v22, %v3329_v26 }
 0xf20   :  { %3379 = vmatmul.mubr.bf16.vlgmr.msra.gmra.mxu0 %v3345_v46  ;;  %3422 = vmatmul.mubr.bf16.vlgmr.msra.gmra.mxu1 %v3345_v46 }
 0xfe0   :  { %v3380_v29 = vpop.f32.mrf.mxu0  ;;  %v3423_v47 = vpop.f32.mrf.mxu1 }
 0xfe1   :  { %v3432_v31 = vadd.f32 %v3380_v29, %v635_v48  ;;  %v3434_v51 = vadd.f32 %v3423_v47, %v828_v58 }
 0xfe2   :  { %v3382_v15 = vpop.f32.mrf.mxu0  ;;  %v3425_v45 = vpop.f32.mrf.mxu1 }
 0xfe3   :  { %v3440_v30 = vmul.f32 0.5, %v3432_v31  ;;  %v3433_v14 = vadd.f32 %v3382_v15, %v637_v37  ;;  %v3435_v10 = vadd.f32 %v3425_v45, %v830_v41 }
 0xfe4   :  { %v3384_v12 = vpop.f32.mrf.mxu0  ;;  %v3427_v62 = vpop.f32.mrf.mxu1 }
 0xfe5   :  { %4044 = vtanh.f32 %v3440_v30  ;;  %v3448_v28 = vmul.f32 0.5, %v3433_v14  ;;  %v3436_v0 = vadd.f32 %v3384_v12, %v639_v19  ;;  %v3438_v20 = vadd.f32 %v3427_v62, %v832_v55 }
 0xfe6   :  { %v3386_v27 = vpop.f32.mrf.mxu0  ;;  %v3429_v60 = vpop.f32.mrf.mxu1  ;;  %v3458_v53 = vmul.f32 0.5, %v3435_v10 }
 0xfe7   :  { %4046 = vtanh.f32 %v3448_v28  ;;  %v3441_v11 = vmul.f32 0.5, %v3436_v0  ;;  %v3437_v38 = vadd.f32 %v3386_v27, %v641_v6  ;;  %v3439_v56 = vadd.f32 %v3429_v60, %v834_v1 }
 0xfe8   :  { %4048 = vtanh.f32 %v3434_v51 }
 0xfe9   :  { %4050 = vtanh.f32 %v3441_v11  ;;  %v3449_v49 = vmul.f32 0.5, %v3437_v38  ;;  %v3459_v63 = vmul.f32 0.5, %v3439_v56 }
 0xfeb   :  { %4052 = vtanh.f32 %v3449_v49 }
 0xfec   :  { %4054 = vtanh.f32 %v3438_v20 }
 0xfed   :  { %4056 = vtanh.f32 %v3458_v53 }
 0xfee   :  { %4058 = vtanh.f32 %v3459_v63 }
 0xff2   :  { %v4045_v7 = vpop.eup %4044 }
 0xff3   :  { %v3444_v35 = vmul.f32 0.5, %v4045_v7 }
 0xff4   :  { %v4047_v43 = vpop.eup %4046 }
 0xff5   :  { %v4049_v52 = vpop.eup %4048  ;;  %v3446_v3 = vadd.f32 0.5, %v3444_v35  ;;  %v3452_v2 = vmul.f32 0.5, %v4047_v43 }
 0xff6   :  { %v4051_v5 = vpop.eup %4050 }
 0xff7   :  { %v3454_v33 = vadd.f32 0.5, %v3452_v2  ;;  %v3468_v39 = vmul.f32 %v4049_v52, %v3446_v3  ;;  %v3445_v17 = vmul.f32 0.5, %v4051_v5 }
 0xff8   :  { %v4053_v36 = vpop.eup %4052 }
 0xff9   :  { %v3466_v61 = vmul.f32 %v3454_v33, %v5841_v4  ;;  %v3447_v24 = vadd.f32 0.5, %v3445_v17  ;;  %v3453_v44 = vmul.f32 0.5, %v4053_v36  ;;  %v4055_v16 = vpop.eup %4054 }
 0xffa   :  { %v4057_v50 = vpop.eup %4056 }
 0xffb   :  { %v3470_v34 = vadd.f32 %v3468_v39, %v3466_v61  ;;  %v3455_v57 = vadd.f32 0.5, %v3453_v44  ;;  %v3469_v8 = vmul.f32 %v4055_v16, %v3447_v24 }
 0xffd   :  { %4060 = vtanh.f32 %v3470_v34  ;;  %3486 = vst [vmem:[#allocation15] sm:$0xff] %v3470_v34  ;;  %v3467_v9 = vmul.f32 %v3455_v57, %v5845_v21 }
 0xfff   :  { %v3471_v26 = vadd.f32 %v3469_v8, %v3467_v9 }
0x1001   :  { %4062 = vtanh.f32 %v3471_v26  ;;  %3487 = vst [vmem:[#allocation15 + $0x8] sm:$0xff] %v3471_v26 }
0x1002   :  { %4271 = shalt.err (!%p4268_p1)
}
0x1003   :  { %3511 = dma.vmem_to_hbm [thread:$0]  %s3506_s27, 256, %s5885_s7, [#allocation16], %s4314_s11, %s4314_s11, %s4315_s12   ;;  %v3462_v4 = vmul.f32 0.5, %v4057_v50  ;;  %v4059_v21 = vpop.eup %4058 }
0x1004   :  { %v3463_v22 = vmul.f32 0.5, %v4059_v21  ;;  %s4323_s10 = smov [#allocation14]  }
0x1005   :  { %v3464_v13 = vadd.f32 0.5, %v3462_v4  ;;  %s3493_s13 = sshll.u32 %s4323_s10, 4  ;;  %s3494_s13 = int_to_ptr.vmem [resolvable:$true] %s3493_s13 }
0x1006   :  { %v3465_v48 = vadd.f32 0.5, %v3463_v22  ;;  %s4280_s14 = scalar_lea.vmem %s3494_s13, 4096  ;;  %p4285_p3 = scmp.lt.s32.totalorder %s3494_s13, %s3494_s13 }
0x1007   :  { %p4281_p2 = scmp.ne.s32.totalorder %s3494_s13, %s4280_s14  ;;  %p4286_p4 = scmp.lt.s32.totalorder %s4280_s14, %s4280_s14 }
0x1009   :  { %p4287_p5 = por %p4286_p4, %p4285_p3 }
0x100a   :  { %v4061_v46 = vpop.eup %4060 }
0x100b   :  { %v3474_v59 = vmul.f32 %v4061_v46, %v3464_v13  ;;  %p4288_p6 = pnand %p4287_p5, %p4281_p2 }
0x100d   :  { %3477 = vst [vmem:[#allocation14 + $0xf0] sm:$0xff] %v3474_v59 }
0x100e   :  { %v4063_v29 = vpop.eup %4062 }
0x100f   :  { %v3475_v47 = vmul.f32 %v4063_v29, %v3465_v48 }
0x1011   :  { %3478 = vst [vmem:[#allocation14 + $0xf8] sm:$0xff] %v3475_v47 }
0x1012   :  { %4291 = shalt.err (!%p4288_p6)
}
0x1013   :  { %3499 = dma.vmem_to_hbm [thread:$0]  %s3494_s13, 4096, %s5884_s6, [#allocation7], %s4314_s11, %s4314_s11, %s4315_s12  }
0x1014   :  { %4306 = dma.done.wait [#allocation7], 4096  }
0x1015   :  { %4307 = vsyncadd [#allocation7], 4294963200 }
0x1016   :  { %4308 = dma.done.wait [#allocation16], 256  }
0x1017   :  { %4309 = vsyncadd [#allocation16], 4294967040 }
0x1018   :  { %3518 = vsyncpa [#allocation6], 1 }
0x1019   :  { %3519 = vsyncpa [#allocation9], 1 }
0x101a   :  { %3520 = vsyncpa [#allocation12], 1 }
0x101b   :  { %3521 = vsyncpa [#allocation7], 1 }
0x101c   :  { %3522 = vsyncpa [#allocation16], 1 }

</bundles_post_ra>
